<compile_context>
chip_gen: v7x
topology: tpu7x:2x2x1
jax: 0.10.0
libtpu: 0.0.40
codegen_flags: <defaults>
</compile_context>

<pallas_src>
import functools
import math

import jax
import jax.numpy as jnp
from jax import lax
from jax.experimental import pallas as pl
from jax.experimental.pallas import tpu as pltpu

# ----------------------------- model config (small synthetic BERT) ---------------
HIDDEN = 32          # n_feats analogue (768 in real BERT)
NUM_HEADS = 2
HEAD_DIM = HIDDEN // NUM_HEADS
FFN_DIM = 64
NUM_LAYERS = 2
VOCAB = 64
MAX_POS = 16
TYPE_VOCAB = 2
NUM_CLASSES = 3
LN_EPS = 1e-12
NUM_STACKS = 2       # stack 0 = generator (shared), stack 1 = specific net


# ----------------------------- in-kernel helpers ----------------------------------
def _ln(x, g, b, eps=LN_EPS):
    """LayerNorm over the last (lane) axis; x:[M,H], g/b:[1,H]."""
    mu = jnp.mean(x, axis=-1, keepdims=True)
    xc = x - mu
    var = jnp.mean(xc * xc, axis=-1, keepdims=True)
    return xc * lax.rsqrt(var + eps) * g + b


# ----------------------------- single fused forward kernel ------------------------
def _fused_forward_kernel(
    emb_ref, emb_g_ref, emb_b_ref, extm_ref, bd_ref,
    qkv_w_ref, qkv_b_ref, o_w_ref, o_b_ref,
    ln1_g_ref, ln1_b_ref,
    ffn_i_w_ref, ffn_i_b_ref, ffn_o_w_ref, ffn_o_b_ref,
    ln2_g_ref, ln2_b_ref,
    pool_w_ref, pool_b_ref,
    head_w_ref, head_b_ref,
    preds_ref, feat_sh_ref, feat_sp_ref,
    *, batch, seq,
):
    """Both encoder stacks (shared + specific) + pooler + classifier head, one launch."""
    # Embedding LayerNorm (dropout = identity in eval); shared by both stacks.
    x0 = _ln(emb_ref[...], emb_g_ref[...], emb_b_ref[...])            # [M, H]

    # Full additive attention mask over the flattened token block, built ONCE:
    # block-diagonal batch structure (-1e9 cross-batch) + BERT padding mask (-10000).
    full_mask = bd_ref[...] + extm_ref[...]                           # [M, M]

    pooled = []
    for s in range(NUM_STACKS):                 # static unroll: 2 independent chains
        x = x0
        for l in range(NUM_LAYERS):
            # ---- fused QKV projection (1/sqrt(Dh) folded into W_q / b_q) --------
            qkv = (jnp.dot(x, qkv_w_ref[s, l],
                           preferred_element_type=jnp.float32)
                   + qkv_b_ref[s, l])                                 # [M, 3H]

            # ---- batched multi-head attention over all M rows at once -----------
            heads = []
            for h in range(NUM_HEADS):
                c = h * HEAD_DIM
                qh = qkv[:, c:c + HEAD_DIM]                           # [M, Dh]
                kh = qkv[:, HIDDEN + c:HIDDEN + c + HEAD_DIM]         # [M, Dh]
                vh = qkv[:, 2 * HIDDEN + c:2 * HIDDEN + c + HEAD_DIM]
                # q @ k^T without materializing a transpose (contract last dims).
                sc = lax.dot_general(
                    qh, kh, (((1,), (1,)), ((), ())),
                    preferred_element_type=jnp.float32) + full_mask    # [M, M]
                sc = sc - jnp.max(sc, axis=-1, keepdims=True)
                p = jnp.exp(sc)
                p = p * pl.reciprocal(jnp.sum(p, axis=-1, keepdims=True),
                                      approx=True)
                heads.append(jnp.dot(p, vh,
                                     preferred_element_type=jnp.float32))
            ctx = jnp.concatenate(heads, axis=-1)                      # [M, H]

            # ---- attention output projection + residual + LN --------------------
            attn_out = (jnp.dot(ctx, o_w_ref[s, l],
                                preferred_element_type=jnp.float32)
                        + o_b_ref[s, l])
            x = _ln(attn_out + x, ln1_g_ref[s, l], ln1_b_ref[s, l])

            # ---- FFN (tanh-approx GELU on EUP) + residual + LN -------------------
            inter = (jnp.dot(x, ffn_i_w_ref[s, l],
                             preferred_element_type=jnp.float32)
                     + ffn_i_b_ref[s, l])
            inter = jax.nn.gelu(inter, approximate=True)
            ffn = (jnp.dot(inter, ffn_o_w_ref[s, l],
                           preferred_element_type=jnp.float32)
                   + ffn_o_b_ref[s, l])
            x = _ln(ffn + x, ln2_g_ref[s, l], ln2_b_ref[s, l])

        # ---- pooler: first token of each sequence -> tanh dense ------------------
        first = jnp.concatenate(
            [x[b * seq:b * seq + 1, :] for b in range(batch)], axis=0)  # [B, H]
        pooled.append(jnp.tanh(
            jnp.dot(first, pool_w_ref[s], preferred_element_type=jnp.float32)
            + pool_b_ref[s]))

    feat_shared, feat_specific = pooled[0], pooled[1]
    feat_sh_ref[...] = feat_shared.astype(feat_sh_ref.dtype)
    feat_sp_ref[...] = feat_specific.astype(feat_sp_ref.dtype)

    # ---- classifier head: cat([specific, shared]) @ W + b (dropout = identity) ---
    feat_all = jnp.concatenate([feat_specific, feat_shared], axis=-1)   # [B, 2H]
    preds = (jnp.dot(feat_all, head_w_ref[...],
                     preferred_element_type=jnp.float32)
             + head_b_ref[...])
    preds_ref[...] = preds.astype(preds_ref.dtype)


def fused_forward(emb_sum, emb_g, emb_b, ext_flat, bd_mask, stacks,
                  head_w, head_b, batch, seq):
    """One pallas_call for the whole forward (both stacks + pooler + head)."""
    M = batch * seq
    L = NUM_LAYERS
    kernel = functools.partial(_fused_forward_kernel, batch=batch, seq=seq)

    def full_spec(shape):
        zeros = (0,) * len(shape)
        return pl.BlockSpec(shape, lambda i, z=zeros: z)

    in_specs = [
        full_spec((M, HIDDEN)),                        # embedding sum (pre-LN)
        full_spec((1, HIDDEN)),                        # embedding LN gamma
        full_spec((1, HIDDEN)),                        # embedding LN beta
        full_spec((1, M)),                             # flattened padding mask
        full_spec((M, M)),                             # block-diagonal batch mask
        full_spec((NUM_STACKS, L, HIDDEN, 3 * HIDDEN)),  # fused QKV weight
        full_spec((NUM_STACKS, L, 1, 3 * HIDDEN)),       # fused QKV bias
        full_spec((NUM_STACKS, L, HIDDEN, HIDDEN)),      # attn output weight
        full_spec((NUM_STACKS, L, 1, HIDDEN)),           # attn output bias
        full_spec((NUM_STACKS, L, 1, HIDDEN)),           # ln1 gamma
        full_spec((NUM_STACKS, L, 1, HIDDEN)),           # ln1 beta
        full_spec((NUM_STACKS, L, HIDDEN, FFN_DIM)),     # ffn in weight
        full_spec((NUM_STACKS, L, 1, FFN_DIM)),          # ffn in bias
        full_spec((NUM_STACKS, L, FFN_DIM, HIDDEN)),     # ffn out weight
        full_spec((NUM_STACKS, L, 1, HIDDEN)),           # ffn out bias
        full_spec((NUM_STACKS, L, 1, HIDDEN)),           # ln2 gamma
        full_spec((NUM_STACKS, L, 1, HIDDEN)),           # ln2 beta
        full_spec((NUM_STACKS, HIDDEN, HIDDEN)),         # pooler weight
        full_spec((NUM_STACKS, 1, HIDDEN)),              # pooler bias
        full_spec((2 * HIDDEN, NUM_CLASSES)),            # classifier weight
        full_spec((1, NUM_CLASSES)),                     # classifier bias
    ]
    out_specs = (
        full_spec((batch, NUM_CLASSES)),
        full_spec((batch, HIDDEN)),
        full_spec((batch, HIDDEN)),
    )
    out_shape = (
        jax.ShapeDtypeStruct((batch, NUM_CLASSES), jnp.float32),
        jax.ShapeDtypeStruct((batch, HIDDEN), jnp.float32),
        jax.ShapeDtypeStruct((batch, HIDDEN), jnp.float32),
    )

    return pl.pallas_call(
        kernel,
        out_shape=out_shape,
        grid=(1,),
        in_specs=in_specs,
        out_specs=out_specs,
    )(
        emb_sum, emb_g, emb_b, ext_flat, bd_mask,
        stacks["qkv_w"], stacks["qkv_b"], stacks["o_w"], stacks["o_b"],
        stacks["ln1_g"], stacks["ln1_b"],
        stacks["ffn_i_w"], stacks["ffn_i_b"], stacks["ffn_o_w"], stacks["ffn_o_b"],
        stacks["ln2_g"], stacks["ln2_b"],
        stacks["pool_w"], stacks["pool_b"],
        head_w, head_b,
    )


# ----------------------------- parameter init (deterministic) --------------------
def _dense_params(key, in_dim, out_dim):
    w = jax.random.normal(key, (in_dim, out_dim), jnp.float32) * 0.02
    b = jnp.zeros((out_dim,), jnp.float32)
    return {"w": w, "b": b}


def init_embeddings(key):
    k0, k1, k2 = jax.random.split(key, 3)
    return {
        "word_emb": jax.random.normal(k0, (VOCAB, HIDDEN), jnp.float32) * 0.02,
        "pos_emb": jax.random.normal(k1, (MAX_POS, HIDDEN), jnp.float32) * 0.02,
        "type_emb": jax.random.normal(k2, (TYPE_VOCAB, HIDDEN), jnp.float32) * 0.02,
        "ln_g": jnp.ones((HIDDEN,), jnp.float32),
        "ln_b": jnp.zeros((HIDDEN,), jnp.float32),
    }


def init_encoder_layer(key):
    keys = jax.random.split(key, 6)
    return {
        "q": _dense_params(keys[0], HIDDEN, HIDDEN),
        "k": _dense_params(keys[1], HIDDEN, HIDDEN),
        "v": _dense_params(keys[2], HIDDEN, HIDDEN),
        "o": _dense_params(keys[3], HIDDEN, HIDDEN),
        "ln1_g": jnp.ones((HIDDEN,), jnp.float32),
        "ln1_b": jnp.zeros((HIDDEN,), jnp.float32),
        "ffn_i": _dense_params(keys[4], HIDDEN, FFN_DIM),
        "ffn_o": _dense_params(keys[5], FFN_DIM, HIDDEN),
        "ln2_g": jnp.ones((HIDDEN,), jnp.float32),
        "ln2_b": jnp.zeros((HIDDEN,), jnp.float32),
    }


def init_encoder_pooler(key):
    keys = jax.random.split(key, NUM_LAYERS + 1)
    return {
        "layers": [init_encoder_layer(keys[i]) for i in range(NUM_LAYERS)],
        "pooler": _dense_params(keys[-1], HIDDEN, HIDDEN),
    }


def init_specific_shared(seed=0):
    key = jax.random.PRNGKey(seed)
    ks = jax.random.split(key, 6)
    return {
        "embeddings": init_embeddings(ks[0]),
        "generator": init_encoder_pooler(ks[1]),     # shared feature extractor
        "source_net": init_encoder_pooler(ks[2]),
        "target_net": init_encoder_pooler(ks[3]),
        "last_layers_s": _dense_params(ks[4], 2 * HIDDEN, NUM_CLASSES),
        "last_layers_t": _dense_params(ks[5], 2 * HIDDEN, NUM_CLASSES),
        # discriminator exists in the module but is unused in forward()
        "discriminator": _dense_params(jax.random.fold_in(key, 99), HIDDEN, NUM_CLASSES),
    }


# ----------------------------- one-time weight packing (hoisted out of jit) -------
def _pack_encoder_stack(p):
    """Pack one Encoder_Pooler: fused QKV (scale folded into Q), [L, ...] stacks."""
    scale = 1.0 / math.sqrt(HEAD_DIM)
    acc = {k: [] for k in ("qkv_w", "qkv_b", "o_w", "o_b", "ln1_g", "ln1_b",
                           "ffn_i_w", "ffn_i_b", "ffn_o_w", "ffn_o_b",
                           "ln2_g", "ln2_b")}
    for lp in p["layers"]:
        acc["qkv_w"].append(jnp.concatenate(
            [lp["q"]["w"] * scale, lp["k"]["w"], lp["v"]["w"]], axis=1))
        acc["qkv_b"].append(jnp.concatenate(
            [lp["q"]["b"] * scale, lp["k"]["b"], lp["v"]["b"]],
            axis=0).reshape(1, 3 * HIDDEN))
        acc["o_w"].append(lp["o"]["w"])
        acc["o_b"].append(lp["o"]["b"].reshape(1, HIDDEN))
        acc["ln1_g"].append(lp["ln1_g"].reshape(1, HIDDEN))
        acc["ln1_b"].append(lp["ln1_b"].reshape(1, HIDDEN))
        acc["ffn_i_w"].append(lp["ffn_i"]["w"])
        acc["ffn_i_b"].append(lp["ffn_i"]["b"].reshape(1, FFN_DIM))
        acc["ffn_o_w"].append(lp["ffn_o"]["w"])
        acc["ffn_o_b"].append(lp["ffn_o"]["b"].reshape(1, HIDDEN))
        acc["ln2_g"].append(lp["ln2_g"].reshape(1, HIDDEN))
        acc["ln2_b"].append(lp["ln2_b"].reshape(1, HIDDEN))
    packed = {k: jnp.stack(v, axis=0) for k, v in acc.items()}
    packed["pool_w"] = p["pooler"]["w"]
    packed["pool_b"] = p["pooler"]["b"].reshape(1, HIDDEN)
    return packed


def _stack_two(shared, specific):
    """Stack 0 = shared (generator), stack 1 = specific net."""
    return {k: jnp.stack([shared[k], specific[k]], axis=0) for k in shared}


def pack_specific_shared(params, batch, seq):
    """Run ONCE at init: pre-stack both (shared, source) and (shared, target) pytrees,
    reshape biases, and build the constant block-diagonal batch mask."""
    gen = _pack_encoder_stack(params["generator"])
    src = _pack_encoder_stack(params["source_net"])
    tgt = _pack_encoder_stack(params["target_net"])
    emb = params["embeddings"]
    M = batch * seq
    row_b = jnp.arange(M, dtype=jnp.int32)[:, None] // seq
    col_b = jnp.arange(M, dtype=jnp.int32)[None, :] // seq
    bd_mask = jnp.where(row_b == col_b, 0.0, -1e9).astype(jnp.float32)
    return {
        "stacks_source": _stack_two(gen, src),
        "stacks_target": _stack_two(gen, tgt),
        "word_emb": emb["word_emb"],
        "pos_emb": emb["pos_emb"],
        "type_emb": emb["type_emb"],
        "emb_ln_g": emb["ln_g"].reshape(1, HIDDEN),
        "emb_ln_b": emb["ln_b"].reshape(1, HIDDEN),
        "head_s_w": params["last_layers_s"]["w"],
        "head_s_b": params["last_layers_s"]["b"].reshape(1, NUM_CLASSES),
        "head_t_w": params["last_layers_t"]["w"],
        "head_t_b": params["last_layers_t"]["b"].reshape(1, NUM_CLASSES),
        "bd_mask": bd_mask,
    }


# ----------------------------- model forward --------------------------------------
def specific_shared_forward(packed, source, input_ids,
                            token_type_ids=None, attention_mask=None):
    if attention_mask is None:
        attention_mask = jnp.ones_like(input_ids)
    if token_type_ids is None:
        token_type_ids = jnp.zeros_like(input_ids)
    B, S = input_ids.shape
    M = B * S

    # extended_attention_mask = (1 - mask) * -10000, flattened to [1, M]
    ext_flat = ((1.0 - attention_mask.astype(jnp.float32)) * -10000.0).reshape(1, M)

    # Embedding gathers (data-dependent lookups) stay in XLA; LN fused in-kernel.
    we = jnp.take(packed["word_emb"], input_ids, axis=0)               # [B,S,H]
    pe = packed["pos_emb"][:S][None, :, :]                             # [1,S,H]
    te = jnp.take(packed["type_emb"], token_type_ids, axis=0)          # [B,S,H]
    emb_sum = (we + pe + te).reshape(M, HIDDEN)

    # `source` is static: pure Python selection, zero per-call repacking ops.
    stacks = packed["stacks_source"] if source else packed["stacks_target"]
    head_w = packed["head_s_w"] if source else packed["head_t_w"]
    head_b = packed["head_s_b"] if source else packed["head_t_b"]

    preds, feat_shared, feat_specific = fused_forward(
        emb_sum, packed["emb_ln_g"], packed["emb_ln_b"],
        ext_flat, packed["bd_mask"], stacks, head_w, head_b, B, S)
    return preds, feat_shared, feat_specific


# ----------------------------- main -------------------------------------------------
if __name__ == "__main__":
    B, S = 2, 8
    key = jax.random.PRNGKey(0)
    k_ids, _ = jax.random.split(key)

    input_ids = jax.random.randint(k_ids, (B, S), 0, VOCAB, dtype=jnp.int32)
    token_type_ids = jnp.zeros((B, S), jnp.int32)
    attention_mask = jnp.ones((B, S), jnp.int32)

    params = init_specific_shared(seed=0)
    packed = pack_specific_shared(params, B, S)      # one-time, outside jit

    fwd = jax.jit(specific_shared_forward, static_argnums=(1,))
    preds, feat_shared, feat_specific = fwd(
        packed, True, input_ids, token_type_ids, attention_mask)
    jax.block_until_ready((preds, feat_shared, feat_specific))

    assert preds.shape == (B, NUM_CLASSES)
    assert feat_shared.shape == (B, HIDDEN)
    assert feat_specific.shape == (B, HIDDEN)
    assert jnp.all(jnp.isfinite(preds))
    assert jnp.all(jnp.isfinite(feat_shared))
    assert jnp.all(jnp.isfinite(feat_specific))
    print("KERNEL_OK")
</pallas_src>

<mosaic_0001>
module attributes {stable_mosaic.version = 11 : i64} {
  func.func @_fused_forward_kernel(%arg0: i32, %arg1: memref<16x32xf32, #tpu.memory_space<vmem>>, %arg2: memref<1x32xf32, #tpu.memory_space<vmem>>, %arg3: memref<1x32xf32, #tpu.memory_space<vmem>>, %arg4: memref<1x16xf32, #tpu.memory_space<vmem>>, %arg5: memref<16x16xf32, #tpu.memory_space<vmem>>, %arg6: memref<2x2x32x96xf32, #tpu.memory_space<vmem>>, %arg7: memref<2x2x1x96xf32, #tpu.memory_space<vmem>>, %arg8: memref<2x2x32x32xf32, #tpu.memory_space<vmem>>, %arg9: memref<2x2x1x32xf32, #tpu.memory_space<vmem>>, %arg10: memref<2x2x1x32xf32, #tpu.memory_space<vmem>>, %arg11: memref<2x2x1x32xf32, #tpu.memory_space<vmem>>, %arg12: memref<2x2x32x64xf32, #tpu.memory_space<vmem>>, %arg13: memref<2x2x1x64xf32, #tpu.memory_space<vmem>>, %arg14: memref<2x2x64x32xf32, #tpu.memory_space<vmem>>, %arg15: memref<2x2x1x32xf32, #tpu.memory_space<vmem>>, %arg16: memref<2x2x1x32xf32, #tpu.memory_space<vmem>>, %arg17: memref<2x2x1x32xf32, #tpu.memory_space<vmem>>, %arg18: memref<2x32x32xf32, #tpu.memory_space<vmem>>, %arg19: memref<2x1x32xf32, #tpu.memory_space<vmem>>, %arg20: memref<64x3xf32, #tpu.memory_space<vmem>>, %arg21: memref<1x3xf32, #tpu.memory_space<vmem>>, %arg22: memref<2x3xf32, #tpu.memory_space<vmem>>, %arg23: memref<2x32xf32, #tpu.memory_space<vmem>>, %arg24: memref<2x32xf32, #tpu.memory_space<vmem>>) attributes {dimension_semantics = [#tpu.dimension_semantics<arbitrary>], iteration_bounds = array<i64: 1>, scalar_prefetch = 0 : i64, scratch_operands = 0 : i64, tpu.core_type = #tpu.core_type<tc>, window_params = [{pipeline_mode = #tpu.pipeline_mode<synchronous>, transform_indices = @transform_0, window_bounds = array<i64: 16, 32>}, {pipeline_mode = #tpu.pipeline_mode<synchronous>, transform_indices = @transform_1, window_bounds = array<i64: 1, 32>}, {pipeline_mode = #tpu.pipeline_mode<synchronous>, transform_indices = @transform_2, window_bounds = array<i64: 1, 32>}, {pipeline_mode = #tpu.pipeline_mode<synchronous>, transform_indices = @transform_3, window_bounds = array<i64: 1, 16>}, {pipeline_mode = #tpu.pipeline_mode<synchronous>, transform_indices = @transform_4, window_bounds = array<i64: 16, 16>}, {pipeline_mode = #tpu.pipeline_mode<synchronous>, transform_indices = @transform_5, window_bounds = array<i64: 2, 2, 32, 96>}, {pipeline_mode = #tpu.pipeline_mode<synchronous>, transform_indices = @transform_6, window_bounds = array<i64: 2, 2, 1, 96>}, {pipeline_mode = #tpu.pipeline_mode<synchronous>, transform_indices = @transform_7, window_bounds = array<i64: 2, 2, 32, 32>}, {pipeline_mode = #tpu.pipeline_mode<synchronous>, transform_indices = @transform_8, window_bounds = array<i64: 2, 2, 1, 32>}, {pipeline_mode = #tpu.pipeline_mode<synchronous>, transform_indices = @transform_9, window_bounds = array<i64: 2, 2, 1, 32>}, {pipeline_mode = #tpu.pipeline_mode<synchronous>, transform_indices = @transform_10, window_bounds = array<i64: 2, 2, 1, 32>}, {pipeline_mode = #tpu.pipeline_mode<synchronous>, transform_indices = @transform_11, window_bounds = array<i64: 2, 2, 32, 64>}, {pipeline_mode = #tpu.pipeline_mode<synchronous>, transform_indices = @transform_12, window_bounds = array<i64: 2, 2, 1, 64>}, {pipeline_mode = #tpu.pipeline_mode<synchronous>, transform_indices = @transform_13, window_bounds = array<i64: 2, 2, 64, 32>}, {pipeline_mode = #tpu.pipeline_mode<synchronous>, transform_indices = @transform_14, window_bounds = array<i64: 2, 2, 1, 32>}, {pipeline_mode = #tpu.pipeline_mode<synchronous>, transform_indices = @transform_15, window_bounds = array<i64: 2, 2, 1, 32>}, {pipeline_mode = #tpu.pipeline_mode<synchronous>, transform_indices = @transform_16, window_bounds = array<i64: 2, 2, 1, 32>}, {pipeline_mode = #tpu.pipeline_mode<synchronous>, transform_indices = @transform_17, window_bounds = array<i64: 2, 32, 32>}, {pipeline_mode = #tpu.pipeline_mode<synchronous>, transform_indices = @transform_18, window_bounds = array<i64: 2, 1, 32>}, {pipeline_mode = #tpu.pipeline_mode<synchronous>, transform_indices = @transform_19, window_bounds = array<i64: 64, 3>}, {pipeline_mode = #tpu.pipeline_mode<synchronous>, transform_indices = @transform_20, window_bounds = array<i64: 1, 3>}, {pipeline_mode = #tpu.pipeline_mode<synchronous>, transform_indices = @transform_21, window_bounds = array<i64: 2, 3>}, {pipeline_mode = #tpu.pipeline_mode<synchronous>, transform_indices = @transform_22, window_bounds = array<i64: 2, 32>}, {pipeline_mode = #tpu.pipeline_mode<synchronous>, transform_indices = @transform_23, window_bounds = array<i64: 2, 32>}]} {
    %c0 = arith.constant 0 : index
    %c0_0 = arith.constant 0 : index
    %0 = vector.load %arg1[%c0, %c0_0] : memref<16x32xf32, #tpu.memory_space<vmem>>, vector<16x32xf32>
    %c0_1 = arith.constant 0 : index
    %c0_2 = arith.constant 0 : index
    %1 = vector.load %arg2[%c0_1, %c0_2] : memref<1x32xf32, #tpu.memory_space<vmem>>, vector<1x32xf32>
    %c0_3 = arith.constant 0 : index
    %c0_4 = arith.constant 0 : index
    %2 = vector.load %arg3[%c0_3, %c0_4] : memref<1x32xf32, #tpu.memory_space<vmem>>, vector<1x32xf32>
    %cst = arith.constant dense<0.000000e+00> : vector<16xf32>
    %3 = vector.multi_reduction <add>, %0, %cst [1] : vector<16x32xf32> to vector<16xf32>
    %4 = vector.shape_cast %3 : vector<16xf32> to vector<16x1xf32>
    %cst_5 = arith.constant 3.200000e+01 : f32
    %5 = vector.broadcast %cst_5 : f32 to vector<16x1xf32>
    %6 = arith.divf %4, %5 : vector<16x1xf32>
    %7 = vector.broadcast %6 : vector<16x1xf32> to vector<16x32xf32>
    %8 = arith.subf %0, %7 : vector<16x32xf32>
    %9 = arith.mulf %8, %8 : vector<16x32xf32>
    %cst_6 = arith.constant dense<0.000000e+00> : vector<16xf32>
    %10 = vector.multi_reduction <add>, %9, %cst_6 [1] : vector<16x32xf32> to vector<16xf32>
    %11 = vector.shape_cast %10 : vector<16xf32> to vector<16x1xf32>
    %cst_7 = arith.constant 3.200000e+01 : f32
    %12 = vector.broadcast %cst_7 : f32 to vector<16x1xf32>
    %13 = arith.divf %11, %12 : vector<16x1xf32>
    %cst_8 = arith.constant 9.99999996E-13 : f32
    %14 = vector.broadcast %cst_8 : f32 to vector<16x1xf32>
    %15 = arith.addf %13, %14 : vector<16x1xf32>
    %16 = math.rsqrt %15 : vector<16x1xf32>
    %17 = vector.broadcast %16 : vector<16x1xf32> to vector<16x32xf32>
    %18 = arith.mulf %8, %17 : vector<16x32xf32>
    %19 = vector.broadcast %1 : vector<1x32xf32> to vector<16x32xf32>
    %20 = arith.mulf %18, %19 : vector<16x32xf32>
    %21 = vector.broadcast %2 : vector<1x32xf32> to vector<16x32xf32>
    %22 = arith.addf %20, %21 : vector<16x32xf32>
    %c0_9 = arith.constant 0 : index
    %c0_10 = arith.constant 0 : index
    %23 = vector.load %arg5[%c0_9, %c0_10] : memref<16x16xf32, #tpu.memory_space<vmem>>, vector<16x16xf32>
    %c0_11 = arith.constant 0 : index
    %c0_12 = arith.constant 0 : index
    %24 = vector.load %arg4[%c0_11, %c0_12] : memref<1x16xf32, #tpu.memory_space<vmem>>, vector<1x16xf32>
    %25 = vector.broadcast %24 : vector<1x16xf32> to vector<16x16xf32>
    %26 = arith.addf %23, %25 : vector<16x16xf32>
    %c0_13 = arith.constant 0 : index
    %c0_14 = arith.constant 0 : index
    %c0_15 = arith.constant 0 : index
    %c0_16 = arith.constant 0 : index
    %27 = vector.load %arg6[%c0_13, %c0_14, %c0_15, %c0_16] : memref<2x2x32x96xf32, #tpu.memory_space<vmem>>, vector<1x1x32x96xf32>
    %28 = vector.shape_cast %27 : vector<1x1x32x96xf32> to vector<32x96xf32>
    %cst_17 = arith.constant dense<0.000000e+00> : vector<16x96xf32>
    %29 = tpu.matmul %22, %28, %cst_17 {dimension_numbers = #tpu.dot_dimension_numbers<[1], [0], [0], [1], [0, 0, 1, 1], [], []>} : vector<16x32xf32>, vector<32x96xf32>, vector<16x96xf32> -> vector<16x96xf32>
    %c0_18 = arith.constant 0 : index
    %c0_19 = arith.constant 0 : index
    %c0_20 = arith.constant 0 : index
    %c0_21 = arith.constant 0 : index
    %30 = vector.load %arg7[%c0_18, %c0_19, %c0_20, %c0_21] : memref<2x2x1x96xf32, #tpu.memory_space<vmem>>, vector<1x1x1x96xf32>
    %31 = vector.shape_cast %30 : vector<1x1x1x96xf32> to vector<1x96xf32>
    %32 = vector.broadcast %31 : vector<1x96xf32> to vector<16x96xf32>
    %33 = arith.addf %29, %32 : vector<16x96xf32>
    %34 = vector.extract_strided_slice %33 {offsets = [0, 0], sizes = [16, 16], strides = [1, 1]} : vector<16x96xf32> to vector<16x16xf32>
    %35 = vector.extract_strided_slice %33 {offsets = [0, 32], sizes = [16, 16], strides = [1, 1]} : vector<16x96xf32> to vector<16x16xf32>
    %36 = vector.extract_strided_slice %33 {offsets = [0, 64], sizes = [16, 16], strides = [1, 1]} : vector<16x96xf32> to vector<16x16xf32>
    %cst_22 = arith.constant dense<0.000000e+00> : vector<16x16xf32>
    %37 = tpu.matmul %34, %35, %cst_22 {dimension_numbers = #tpu.dot_dimension_numbers<[1], [1], [0], [0], [0, 0, 1, 0], [], []>} : vector<16x16xf32>, vector<16x16xf32>, vector<16x16xf32> -> vector<16x16xf32>
    %38 = arith.addf %37, %26 : vector<16x16xf32>
    %cst_23 = arith.constant dense<0xFF800000> : vector<16xf32>
    %39 = vector.multi_reduction <maximumf>, %38, %cst_23 [1] : vector<16x16xf32> to vector<16xf32>
    %40 = vector.shape_cast %39 : vector<16xf32> to vector<16x1xf32>
    %41 = vector.broadcast %40 : vector<16x1xf32> to vector<16x16xf32>
    %42 = arith.subf %38, %41 : vector<16x16xf32>
    %43 = math.exp %42 : vector<16x16xf32>
    %cst_24 = arith.constant dense<0.000000e+00> : vector<16xf32>
    %44 = vector.multi_reduction <add>, %43, %cst_24 [1] : vector<16x16xf32> to vector<16xf32>
    %45 = vector.shape_cast %44 : vector<16xf32> to vector<16x1xf32>
    %46 = tpu.reciprocal %45 {approx = true} : vector<16x1xf32> -> vector<16x1xf32>
    %47 = vector.broadcast %46 : vector<16x1xf32> to vector<16x16xf32>
    %48 = arith.mulf %43, %47 : vector<16x16xf32>
    %cst_25 = arith.constant dense<0.000000e+00> : vector<16x16xf32>
    %49 = tpu.matmul %48, %36, %cst_25 {dimension_numbers = #tpu.dot_dimension_numbers<[1], [0], [0], [1], [0, 0, 1, 1], [], []>} : vector<16x16xf32>, vector<16x16xf32>, vector<16x16xf32> -> vector<16x16xf32>
    %50 = vector.extract_strided_slice %33 {offsets = [0, 16], sizes = [16, 16], strides = [1, 1]} : vector<16x96xf32> to vector<16x16xf32>
    %51 = vector.extract_strided_slice %33 {offsets = [0, 48], sizes = [16, 16], strides = [1, 1]} : vector<16x96xf32> to vector<16x16xf32>
    %52 = vector.extract_strided_slice %33 {offsets = [0, 80], sizes = [16, 16], strides = [1, 1]} : vector<16x96xf32> to vector<16x16xf32>
    %cst_26 = arith.constant dense<0.000000e+00> : vector<16x16xf32>
    %53 = tpu.matmul %50, %51, %cst_26 {dimension_numbers = #tpu.dot_dimension_numbers<[1], [1], [0], [0], [0, 0, 1, 0], [], []>} : vector<16x16xf32>, vector<16x16xf32>, vector<16x16xf32> -> vector<16x16xf32>
    %54 = arith.addf %53, %26 : vector<16x16xf32>
    %cst_27 = arith.constant dense<0xFF800000> : vector<16xf32>
    %55 = vector.multi_reduction <maximumf>, %54, %cst_27 [1] : vector<16x16xf32> to vector<16xf32>
    %56 = vector.shape_cast %55 : vector<16xf32> to vector<16x1xf32>
    %57 = vector.broadcast %56 : vector<16x1xf32> to vector<16x16xf32>
    %58 = arith.subf %54, %57 : vector<16x16xf32>
    %59 = math.exp %58 : vector<16x16xf32>
    %cst_28 = arith.constant dense<0.000000e+00> : vector<16xf32>
    %60 = vector.multi_reduction <add>, %59, %cst_28 [1] : vector<16x16xf32> to vector<16xf32>
    %61 = vector.shape_cast %60 : vector<16xf32> to vector<16x1xf32>
    %62 = tpu.reciprocal %61 {approx = true} : vector<16x1xf32> -> vector<16x1xf32>
    %63 = vector.broadcast %62 : vector<16x1xf32> to vector<16x16xf32>
    %64 = arith.mulf %59, %63 : vector<16x16xf32>
    %cst_29 = arith.constant dense<0.000000e+00> : vector<16x16xf32>
    %65 = tpu.matmul %64, %52, %cst_29 {dimension_numbers = #tpu.dot_dimension_numbers<[1], [0], [0], [1], [0, 0, 1, 1], [], []>} : vector<16x16xf32>, vector<16x16xf32>, vector<16x16xf32> -> vector<16x16xf32>
    %66 = tpu.concatenate %49, %65 in 1 : vector<16x16xf32>, vector<16x16xf32> -> vector<16x32xf32>
    %c0_30 = arith.constant 0 : index
    %c0_31 = arith.constant 0 : index
    %c0_32 = arith.constant 0 : index
    %c0_33 = arith.constant 0 : index
    %67 = vector.load %arg8[%c0_30, %c0_31, %c0_32, %c0_33] : memref<2x2x32x32xf32, #tpu.memory_space<vmem>>, vector<1x1x32x32xf32>
    %68 = vector.shape_cast %67 : vector<1x1x32x32xf32> to vector<32x32xf32>
    %cst_34 = arith.constant dense<0.000000e+00> : vector<16x32xf32>
    %69 = tpu.matmul %66, %68, %cst_34 {dimension_numbers = #tpu.dot_dimension_numbers<[1], [0], [0], [1], [0, 0, 1, 1], [], []>} : vector<16x32xf32>, vector<32x32xf32>, vector<16x32xf32> -> vector<16x32xf32>
    %c0_35 = arith.constant 0 : index
    %c0_36 = arith.constant 0 : index
    %c0_37 = arith.constant 0 : index
    %c0_38 = arith.constant 0 : index
    %70 = vector.load %arg9[%c0_35, %c0_36, %c0_37, %c0_38] : memref<2x2x1x32xf32, #tpu.memory_space<vmem>>, vector<1x1x1x32xf32>
    %71 = vector.shape_cast %70 : vector<1x1x1x32xf32> to vector<1x32xf32>
    %72 = vector.broadcast %71 : vector<1x32xf32> to vector<16x32xf32>
    %73 = arith.addf %69, %72 : vector<16x32xf32>
    %74 = arith.addf %73, %22 : vector<16x32xf32>
    %c0_39 = arith.constant 0 : index
    %c0_40 = arith.constant 0 : index
    %c0_41 = arith.constant 0 : index
    %c0_42 = arith.constant 0 : index
    %75 = vector.load %arg10[%c0_39, %c0_40, %c0_41, %c0_42] : memref<2x2x1x32xf32, #tpu.memory_space<vmem>>, vector<1x1x1x32xf32>
    %76 = vector.shape_cast %75 : vector<1x1x1x32xf32> to vector<1x32xf32>
    %c0_43 = arith.constant 0 : index
    %c0_44 = arith.constant 0 : index
    %c0_45 = arith.constant 0 : index
    %c0_46 = arith.constant 0 : index
    %77 = vector.load %arg11[%c0_43, %c0_44, %c0_45, %c0_46] : memref<2x2x1x32xf32, #tpu.memory_space<vmem>>, vector<1x1x1x32xf32>
    %78 = vector.shape_cast %77 : vector<1x1x1x32xf32> to vector<1x32xf32>
    %cst_47 = arith.constant dense<0.000000e+00> : vector<16xf32>
    %79 = vector.multi_reduction <add>, %74, %cst_47 [1] : vector<16x32xf32> to vector<16xf32>
    %80 = vector.shape_cast %79 : vector<16xf32> to vector<16x1xf32>
    %cst_48 = arith.constant 3.200000e+01 : f32
    %81 = vector.broadcast %cst_48 : f32 to vector<16x1xf32>
    %82 = arith.divf %80, %81 : vector<16x1xf32>
    %83 = vector.broadcast %82 : vector<16x1xf32> to vector<16x32xf32>
    %84 = arith.subf %74, %83 : vector<16x32xf32>
    %85 = arith.mulf %84, %84 : vector<16x32xf32>
    %cst_49 = arith.constant dense<0.000000e+00> : vector<16xf32>
    %86 = vector.multi_reduction <add>, %85, %cst_49 [1] : vector<16x32xf32> to vector<16xf32>
    %87 = vector.shape_cast %86 : vector<16xf32> to vector<16x1xf32>
    %cst_50 = arith.constant 3.200000e+01 : f32
    %88 = vector.broadcast %cst_50 : f32 to vector<16x1xf32>
    %89 = arith.divf %87, %88 : vector<16x1xf32>
    %cst_51 = arith.constant 9.99999996E-13 : f32
    %90 = vector.broadcast %cst_51 : f32 to vector<16x1xf32>
    %91 = arith.addf %89, %90 : vector<16x1xf32>
    %92 = math.rsqrt %91 : vector<16x1xf32>
    %93 = vector.broadcast %92 : vector<16x1xf32> to vector<16x32xf32>
    %94 = arith.mulf %84, %93 : vector<16x32xf32>
    %95 = vector.broadcast %76 : vector<1x32xf32> to vector<16x32xf32>
    %96 = arith.mulf %94, %95 : vector<16x32xf32>
    %97 = vector.broadcast %78 : vector<1x32xf32> to vector<16x32xf32>
    %98 = arith.addf %96, %97 : vector<16x32xf32>
    %c0_52 = arith.constant 0 : index
    %c0_53 = arith.constant 0 : index
    %c0_54 = arith.constant 0 : index
    %c0_55 = arith.constant 0 : index
    %99 = vector.load %arg12[%c0_52, %c0_53, %c0_54, %c0_55] : memref<2x2x32x64xf32, #tpu.memory_space<vmem>>, vector<1x1x32x64xf32>
    %100 = vector.shape_cast %99 : vector<1x1x32x64xf32> to vector<32x64xf32>
    %cst_56 = arith.constant dense<0.000000e+00> : vector<16x64xf32>
    %101 = tpu.matmul %98, %100, %cst_56 {dimension_numbers = #tpu.dot_dimension_numbers<[1], [0], [0], [1], [0, 0, 1, 1], [], []>} : vector<16x32xf32>, vector<32x64xf32>, vector<16x64xf32> -> vector<16x64xf32>
    %c0_57 = arith.constant 0 : index
    %c0_58 = arith.constant 0 : index
    %c0_59 = arith.constant 0 : index
    %c0_60 = arith.constant 0 : index
    %102 = vector.load %arg13[%c0_57, %c0_58, %c0_59, %c0_60] : memref<2x2x1x64xf32, #tpu.memory_space<vmem>>, vector<1x1x1x64xf32>
    %103 = vector.shape_cast %102 : vector<1x1x1x64xf32> to vector<1x64xf32>
    %104 = vector.broadcast %103 : vector<1x64xf32> to vector<16x64xf32>
    %105 = arith.addf %101, %104 : vector<16x64xf32>
    %106 = arith.mulf %105, %105 : vector<16x64xf32>
    %107 = arith.mulf %105, %106 : vector<16x64xf32>
    %cst_61 = arith.constant 4.471500e-02 : f32
    %108 = vector.broadcast %cst_61 : f32 to vector<16x64xf32>
    %109 = arith.mulf %108, %107 : vector<16x64xf32>
    %110 = arith.addf %105, %109 : vector<16x64xf32>
    %cst_62 = arith.constant 0.797884583 : f32
    %111 = vector.broadcast %cst_62 : f32 to vector<16x64xf32>
    %112 = arith.mulf %111, %110 : vector<16x64xf32>
    %113 = math.tanh %112 : vector<16x64xf32>
    %cst_63 = arith.constant 1.000000e+00 : f32
    %114 = vector.broadcast %cst_63 : f32 to vector<16x64xf32>
    %115 = arith.addf %114, %113 : vector<16x64xf32>
    %cst_64 = arith.constant 5.000000e-01 : f32
    %116 = vector.broadcast %cst_64 : f32 to vector<16x64xf32>
    %117 = arith.mulf %116, %115 : vector<16x64xf32>
    %118 = arith.mulf %105, %117 : vector<16x64xf32>
    %c0_65 = arith.constant 0 : index
    %c0_66 = arith.constant 0 : index
    %c0_67 = arith.constant 0 : index
    %c0_68 = arith.constant 0 : index
    %119 = vector.load %arg14[%c0_65, %c0_66, %c0_67, %c0_68] : memref<2x2x64x32xf32, #tpu.memory_space<vmem>>, vector<1x1x64x32xf32>
    %120 = vector.shape_cast %119 : vector<1x1x64x32xf32> to vector<64x32xf32>
    %cst_69 = arith.constant dense<0.000000e+00> : vector<16x32xf32>
    %121 = tpu.matmul %118, %120, %cst_69 {dimension_numbers = #tpu.dot_dimension_numbers<[1], [0], [0], [1], [0, 0, 1, 1], [], []>} : vector<16x64xf32>, vector<64x32xf32>, vector<16x32xf32> -> vector<16x32xf32>
    %c0_70 = arith.constant 0 : index
    %c0_71 = arith.constant 0 : index
    %c0_72 = arith.constant 0 : index
    %c0_73 = arith.constant 0 : index
    %122 = vector.load %arg15[%c0_70, %c0_71, %c0_72, %c0_73] : memref<2x2x1x32xf32, #tpu.memory_space<vmem>>, vector<1x1x1x32xf32>
    %123 = vector.shape_cast %122 : vector<1x1x1x32xf32> to vector<1x32xf32>
    %124 = vector.broadcast %123 : vector<1x32xf32> to vector<16x32xf32>
    %125 = arith.addf %121, %124 : vector<16x32xf32>
    %126 = arith.addf %125, %98 : vector<16x32xf32>
    %c0_74 = arith.constant 0 : index
    %c0_75 = arith.constant 0 : index
    %c0_76 = arith.constant 0 : index
    %c0_77 = arith.constant 0 : index
    %127 = vector.load %arg16[%c0_74, %c0_75, %c0_76, %c0_77] : memref<2x2x1x32xf32, #tpu.memory_space<vmem>>, vector<1x1x1x32xf32>
    %128 = vector.shape_cast %127 : vector<1x1x1x32xf32> to vector<1x32xf32>
    %c0_78 = arith.constant 0 : index
    %c0_79 = arith.constant 0 : index
    %c0_80 = arith.constant 0 : index
    %c0_81 = arith.constant 0 : index
    %129 = vector.load %arg17[%c0_78, %c0_79, %c0_80, %c0_81] : memref<2x2x1x32xf32, #tpu.memory_space<vmem>>, vector<1x1x1x32xf32>
    %130 = vector.shape_cast %129 : vector<1x1x1x32xf32> to vector<1x32xf32>
    %cst_82 = arith.constant dense<0.000000e+00> : vector<16xf32>
    %131 = vector.multi_reduction <add>, %126, %cst_82 [1] : vector<16x32xf32> to vector<16xf32>
    %132 = vector.shape_cast %131 : vector<16xf32> to vector<16x1xf32>
    %cst_83 = arith.constant 3.200000e+01 : f32
    %133 = vector.broadcast %cst_83 : f32 to vector<16x1xf32>
    %134 = arith.divf %132, %133 : vector<16x1xf32>
    %135 = vector.broadcast %134 : vector<16x1xf32> to vector<16x32xf32>
    %136 = arith.subf %126, %135 : vector<16x32xf32>
    %137 = arith.mulf %136, %136 : vector<16x32xf32>
    %cst_84 = arith.constant dense<0.000000e+00> : vector<16xf32>
    %138 = vector.multi_reduction <add>, %137, %cst_84 [1] : vector<16x32xf32> to vector<16xf32>
    %139 = vector.shape_cast %138 : vector<16xf32> to vector<16x1xf32>
    %cst_85 = arith.constant 3.200000e+01 : f32
    %140 = vector.broadcast %cst_85 : f32 to vector<16x1xf32>
    %141 = arith.divf %139, %140 : vector<16x1xf32>
    %cst_86 = arith.constant 9.99999996E-13 : f32
    %142 = vector.broadcast %cst_86 : f32 to vector<16x1xf32>
    %143 = arith.addf %141, %142 : vector<16x1xf32>
    %144 = math.rsqrt %143 : vector<16x1xf32>
    %145 = vector.broadcast %144 : vector<16x1xf32> to vector<16x32xf32>
    %146 = arith.mulf %136, %145 : vector<16x32xf32>
    %147 = vector.broadcast %128 : vector<1x32xf32> to vector<16x32xf32>
    %148 = arith.mulf %146, %147 : vector<16x32xf32>
    %149 = vector.broadcast %130 : vector<1x32xf32> to vector<16x32xf32>
    %150 = arith.addf %148, %149 : vector<16x32xf32>
    %c0_87 = arith.constant 0 : index
    %c1 = arith.constant 1 : index
    %c0_88 = arith.constant 0 : index
    %c0_89 = arith.constant 0 : index
    %151 = vector.load %arg6[%c0_87, %c1, %c0_88, %c0_89] : memref<2x2x32x96xf32, #tpu.memory_space<vmem>>, vector<1x1x32x96xf32>
    %152 = vector.shape_cast %151 : vector<1x1x32x96xf32> to vector<32x96xf32>
    %cst_90 = arith.constant dense<0.000000e+00> : vector<16x96xf32>
    %153 = tpu.matmul %150, %152, %cst_90 {dimension_numbers = #tpu.dot_dimension_numbers<[1], [0], [0], [1], [0, 0, 1, 1], [], []>} : vector<16x32xf32>, vector<32x96xf32>, vector<16x96xf32> -> vector<16x96xf32>
    %c0_91 = arith.constant 0 : index
    %c1_92 = arith.constant 1 : index
    %c0_93 = arith.constant 0 : index
    %c0_94 = arith.constant 0 : index
    %154 = vector.load %arg7[%c0_91, %c1_92, %c0_93, %c0_94] : memref<2x2x1x96xf32, #tpu.memory_space<vmem>>, vector<1x1x1x96xf32>
    %155 = vector.shape_cast %154 : vector<1x1x1x96xf32> to vector<1x96xf32>
    %156 = vector.broadcast %155 : vector<1x96xf32> to vector<16x96xf32>
    %157 = arith.addf %153, %156 : vector<16x96xf32>
    %158 = vector.extract_strided_slice %157 {offsets = [0, 0], sizes = [16, 16], strides = [1, 1]} : vector<16x96xf32> to vector<16x16xf32>
    %159 = vector.extract_strided_slice %157 {offsets = [0, 32], sizes = [16, 16], strides = [1, 1]} : vector<16x96xf32> to vector<16x16xf32>
    %160 = vector.extract_strided_slice %157 {offsets = [0, 64], sizes = [16, 16], strides = [1, 1]} : vector<16x96xf32> to vector<16x16xf32>
    %cst_95 = arith.constant dense<0.000000e+00> : vector<16x16xf32>
    %161 = tpu.matmul %158, %159, %cst_95 {dimension_numbers = #tpu.dot_dimension_numbers<[1], [1], [0], [0], [0, 0, 1, 0], [], []>} : vector<16x16xf32>, vector<16x16xf32>, vector<16x16xf32> -> vector<16x16xf32>
    %162 = arith.addf %161, %26 : vector<16x16xf32>
    %cst_96 = arith.constant dense<0xFF800000> : vector<16xf32>
    %163 = vector.multi_reduction <maximumf>, %162, %cst_96 [1] : vector<16x16xf32> to vector<16xf32>
    %164 = vector.shape_cast %163 : vector<16xf32> to vector<16x1xf32>
    %165 = vector.broadcast %164 : vector<16x1xf32> to vector<16x16xf32>
    %166 = arith.subf %162, %165 : vector<16x16xf32>
    %167 = math.exp %166 : vector<16x16xf32>
    %cst_97 = arith.constant dense<0.000000e+00> : vector<16xf32>
    %168 = vector.multi_reduction <add>, %167, %cst_97 [1] : vector<16x16xf32> to vector<16xf32>
    %169 = vector.shape_cast %168 : vector<16xf32> to vector<16x1xf32>
    %170 = tpu.reciprocal %169 {approx = true} : vector<16x1xf32> -> vector<16x1xf32>
    %171 = vector.broadcast %170 : vector<16x1xf32> to vector<16x16xf32>
    %172 = arith.mulf %167, %171 : vector<16x16xf32>
    %cst_98 = arith.constant dense<0.000000e+00> : vector<16x16xf32>
    %173 = tpu.matmul %172, %160, %cst_98 {dimension_numbers = #tpu.dot_dimension_numbers<[1], [0], [0], [1], [0, 0, 1, 1], [], []>} : vector<16x16xf32>, vector<16x16xf32>, vector<16x16xf32> -> vector<16x16xf32>
    %174 = vector.extract_strided_slice %157 {offsets = [0, 16], sizes = [16, 16], strides = [1, 1]} : vector<16x96xf32> to vector<16x16xf32>
    %175 = vector.extract_strided_slice %157 {offsets = [0, 48], sizes = [16, 16], strides = [1, 1]} : vector<16x96xf32> to vector<16x16xf32>
    %176 = vector.extract_strided_slice %157 {offsets = [0, 80], sizes = [16, 16], strides = [1, 1]} : vector<16x96xf32> to vector<16x16xf32>
    %cst_99 = arith.constant dense<0.000000e+00> : vector<16x16xf32>
    %177 = tpu.matmul %174, %175, %cst_99 {dimension_numbers = #tpu.dot_dimension_numbers<[1], [1], [0], [0], [0, 0, 1, 0], [], []>} : vector<16x16xf32>, vector<16x16xf32>, vector<16x16xf32> -> vector<16x16xf32>
    %178 = arith.addf %177, %26 : vector<16x16xf32>
    %cst_100 = arith.constant dense<0xFF800000> : vector<16xf32>
    %179 = vector.multi_reduction <maximumf>, %178, %cst_100 [1] : vector<16x16xf32> to vector<16xf32>
    %180 = vector.shape_cast %179 : vector<16xf32> to vector<16x1xf32>
    %181 = vector.broadcast %180 : vector<16x1xf32> to vector<16x16xf32>
    %182 = arith.subf %178, %181 : vector<16x16xf32>
    %183 = math.exp %182 : vector<16x16xf32>
    %cst_101 = arith.constant dense<0.000000e+00> : vector<16xf32>
    %184 = vector.multi_reduction <add>, %183, %cst_101 [1] : vector<16x16xf32> to vector<16xf32>
    %185 = vector.shape_cast %184 : vector<16xf32> to vector<16x1xf32>
    %186 = tpu.reciprocal %185 {approx = true} : vector<16x1xf32> -> vector<16x1xf32>
    %187 = vector.broadcast %186 : vector<16x1xf32> to vector<16x16xf32>
    %188 = arith.mulf %183, %187 : vector<16x16xf32>
    %cst_102 = arith.constant dense<0.000000e+00> : vector<16x16xf32>
    %189 = tpu.matmul %188, %176, %cst_102 {dimension_numbers = #tpu.dot_dimension_numbers<[1], [0], [0], [1], [0, 0, 1, 1], [], []>} : vector<16x16xf32>, vector<16x16xf32>, vector<16x16xf32> -> vector<16x16xf32>
    %190 = tpu.concatenate %173, %189 in 1 : vector<16x16xf32>, vector<16x16xf32> -> vector<16x32xf32>
    %c0_103 = arith.constant 0 : index
    %c1_104 = arith.constant 1 : index
    %c0_105 = arith.constant 0 : index
    %c0_106 = arith.constant 0 : index
    %191 = vector.load %arg8[%c0_103, %c1_104, %c0_105, %c0_106] : memref<2x2x32x32xf32, #tpu.memory_space<vmem>>, vector<1x1x32x32xf32>
    %192 = vector.shape_cast %191 : vector<1x1x32x32xf32> to vector<32x32xf32>
    %cst_107 = arith.constant dense<0.000000e+00> : vector<16x32xf32>
    %193 = tpu.matmul %190, %192, %cst_107 {dimension_numbers = #tpu.dot_dimension_numbers<[1], [0], [0], [1], [0, 0, 1, 1], [], []>} : vector<16x32xf32>, vector<32x32xf32>, vector<16x32xf32> -> vector<16x32xf32>
    %c0_108 = arith.constant 0 : index
    %c1_109 = arith.constant 1 : index
    %c0_110 = arith.constant 0 : index
    %c0_111 = arith.constant 0 : index
    %194 = vector.load %arg9[%c0_108, %c1_109, %c0_110, %c0_111] : memref<2x2x1x32xf32, #tpu.memory_space<vmem>>, vector<1x1x1x32xf32>
    %195 = vector.shape_cast %194 : vector<1x1x1x32xf32> to vector<1x32xf32>
    %196 = vector.broadcast %195 : vector<1x32xf32> to vector<16x32xf32>
    %197 = arith.addf %193, %196 : vector<16x32xf32>
    %198 = arith.addf %197, %150 : vector<16x32xf32>
    %c0_112 = arith.constant 0 : index
    %c1_113 = arith.constant 1 : index
    %c0_114 = arith.constant 0 : index
    %c0_115 = arith.constant 0 : index
    %199 = vector.load %arg10[%c0_112, %c1_113, %c0_114, %c0_115] : memref<2x2x1x32xf32, #tpu.memory_space<vmem>>, vector<1x1x1x32xf32>
    %200 = vector.shape_cast %199 : vector<1x1x1x32xf32> to vector<1x32xf32>
    %c0_116 = arith.constant 0 : index
    %c1_117 = arith.constant 1 : index
    %c0_118 = arith.constant 0 : index
    %c0_119 = arith.constant 0 : index
    %201 = vector.load %arg11[%c0_116, %c1_117, %c0_118, %c0_119] : memref<2x2x1x32xf32, #tpu.memory_space<vmem>>, vector<1x1x1x32xf32>
    %202 = vector.shape_cast %201 : vector<1x1x1x32xf32> to vector<1x32xf32>
    %cst_120 = arith.constant dense<0.000000e+00> : vector<16xf32>
    %203 = vector.multi_reduction <add>, %198, %cst_120 [1] : vector<16x32xf32> to vector<16xf32>
    %204 = vector.shape_cast %203 : vector<16xf32> to vector<16x1xf32>
    %cst_121 = arith.constant 3.200000e+01 : f32
    %205 = vector.broadcast %cst_121 : f32 to vector<16x1xf32>
    %206 = arith.divf %204, %205 : vector<16x1xf32>
    %207 = vector.broadcast %206 : vector<16x1xf32> to vector<16x32xf32>
    %208 = arith.subf %198, %207 : vector<16x32xf32>
    %209 = arith.mulf %208, %208 : vector<16x32xf32>
    %cst_122 = arith.constant dense<0.000000e+00> : vector<16xf32>
    %210 = vector.multi_reduction <add>, %209, %cst_122 [1] : vector<16x32xf32> to vector<16xf32>
    %211 = vector.shape_cast %210 : vector<16xf32> to vector<16x1xf32>
    %cst_123 = arith.constant 3.200000e+01 : f32
    %212 = vector.broadcast %cst_123 : f32 to vector<16x1xf32>
    %213 = arith.divf %211, %212 : vector<16x1xf32>
    %cst_124 = arith.constant 9.99999996E-13 : f32
    %214 = vector.broadcast %cst_124 : f32 to vector<16x1xf32>
    %215 = arith.addf %213, %214 : vector<16x1xf32>
    %216 = math.rsqrt %215 : vector<16x1xf32>
    %217 = vector.broadcast %216 : vector<16x1xf32> to vector<16x32xf32>
    %218 = arith.mulf %208, %217 : vector<16x32xf32>
    %219 = vector.broadcast %200 : vector<1x32xf32> to vector<16x32xf32>
    %220 = arith.mulf %218, %219 : vector<16x32xf32>
    %221 = vector.broadcast %202 : vector<1x32xf32> to vector<16x32xf32>
    %222 = arith.addf %220, %221 : vector<16x32xf32>
    %c0_125 = arith.constant 0 : index
    %c1_126 = arith.constant 1 : index
    %c0_127 = arith.constant 0 : index
    %c0_128 = arith.constant 0 : index
    %223 = vector.load %arg12[%c0_125, %c1_126, %c0_127, %c0_128] : memref<2x2x32x64xf32, #tpu.memory_space<vmem>>, vector<1x1x32x64xf32>
    %224 = vector.shape_cast %223 : vector<1x1x32x64xf32> to vector<32x64xf32>
    %cst_129 = arith.constant dense<0.000000e+00> : vector<16x64xf32>
    %225 = tpu.matmul %222, %224, %cst_129 {dimension_numbers = #tpu.dot_dimension_numbers<[1], [0], [0], [1], [0, 0, 1, 1], [], []>} : vector<16x32xf32>, vector<32x64xf32>, vector<16x64xf32> -> vector<16x64xf32>
    %c0_130 = arith.constant 0 : index
    %c1_131 = arith.constant 1 : index
    %c0_132 = arith.constant 0 : index
    %c0_133 = arith.constant 0 : index
    %226 = vector.load %arg13[%c0_130, %c1_131, %c0_132, %c0_133] : memref<2x2x1x64xf32, #tpu.memory_space<vmem>>, vector<1x1x1x64xf32>
    %227 = vector.shape_cast %226 : vector<1x1x1x64xf32> to vector<1x64xf32>
    %228 = vector.broadcast %227 : vector<1x64xf32> to vector<16x64xf32>
    %229 = arith.addf %225, %228 : vector<16x64xf32>
    %230 = arith.mulf %229, %229 : vector<16x64xf32>
    %231 = arith.mulf %229, %230 : vector<16x64xf32>
    %cst_134 = arith.constant 4.471500e-02 : f32
    %232 = vector.broadcast %cst_134 : f32 to vector<16x64xf32>
    %233 = arith.mulf %232, %231 : vector<16x64xf32>
    %234 = arith.addf %229, %233 : vector<16x64xf32>
    %cst_135 = arith.constant 0.797884583 : f32
    %235 = vector.broadcast %cst_135 : f32 to vector<16x64xf32>
    %236 = arith.mulf %235, %234 : vector<16x64xf32>
    %237 = math.tanh %236 : vector<16x64xf32>
    %cst_136 = arith.constant 1.000000e+00 : f32
    %238 = vector.broadcast %cst_136 : f32 to vector<16x64xf32>
    %239 = arith.addf %238, %237 : vector<16x64xf32>
    %cst_137 = arith.constant 5.000000e-01 : f32
    %240 = vector.broadcast %cst_137 : f32 to vector<16x64xf32>
    %241 = arith.mulf %240, %239 : vector<16x64xf32>
    %242 = arith.mulf %229, %241 : vector<16x64xf32>
    %c0_138 = arith.constant 0 : index
    %c1_139 = arith.constant 1 : index
    %c0_140 = arith.constant 0 : index
    %c0_141 = arith.constant 0 : index
    %243 = vector.load %arg14[%c0_138, %c1_139, %c0_140, %c0_141] : memref<2x2x64x32xf32, #tpu.memory_space<vmem>>, vector<1x1x64x32xf32>
    %244 = vector.shape_cast %243 : vector<1x1x64x32xf32> to vector<64x32xf32>
    %cst_142 = arith.constant dense<0.000000e+00> : vector<16x32xf32>
    %245 = tpu.matmul %242, %244, %cst_142 {dimension_numbers = #tpu.dot_dimension_numbers<[1], [0], [0], [1], [0, 0, 1, 1], [], []>} : vector<16x64xf32>, vector<64x32xf32>, vector<16x32xf32> -> vector<16x32xf32>
    %c0_143 = arith.constant 0 : index
    %c1_144 = arith.constant 1 : index
    %c0_145 = arith.constant 0 : index
    %c0_146 = arith.constant 0 : index
    %246 = vector.load %arg15[%c0_143, %c1_144, %c0_145, %c0_146] : memref<2x2x1x32xf32, #tpu.memory_space<vmem>>, vector<1x1x1x32xf32>
    %247 = vector.shape_cast %246 : vector<1x1x1x32xf32> to vector<1x32xf32>
    %248 = vector.broadcast %247 : vector<1x32xf32> to vector<16x32xf32>
    %249 = arith.addf %245, %248 : vector<16x32xf32>
    %250 = arith.addf %249, %222 : vector<16x32xf32>
    %c0_147 = arith.constant 0 : index
    %c1_148 = arith.constant 1 : index
    %c0_149 = arith.constant 0 : index
    %c0_150 = arith.constant 0 : index
    %251 = vector.load %arg16[%c0_147, %c1_148, %c0_149, %c0_150] : memref<2x2x1x32xf32, #tpu.memory_space<vmem>>, vector<1x1x1x32xf32>
    %252 = vector.shape_cast %251 : vector<1x1x1x32xf32> to vector<1x32xf32>
    %c0_151 = arith.constant 0 : index
    %c1_152 = arith.constant 1 : index
    %c0_153 = arith.constant 0 : index
    %c0_154 = arith.constant 0 : index
    %253 = vector.load %arg17[%c0_151, %c1_152, %c0_153, %c0_154] : memref<2x2x1x32xf32, #tpu.memory_space<vmem>>, vector<1x1x1x32xf32>
    %254 = vector.shape_cast %253 : vector<1x1x1x32xf32> to vector<1x32xf32>
    %cst_155 = arith.constant dense<0.000000e+00> : vector<16xf32>
    %255 = vector.multi_reduction <add>, %250, %cst_155 [1] : vector<16x32xf32> to vector<16xf32>
    %256 = vector.shape_cast %255 : vector<16xf32> to vector<16x1xf32>
    %cst_156 = arith.constant 3.200000e+01 : f32
    %257 = vector.broadcast %cst_156 : f32 to vector<16x1xf32>
    %258 = arith.divf %256, %257 : vector<16x1xf32>
    %259 = vector.broadcast %258 : vector<16x1xf32> to vector<16x32xf32>
    %260 = arith.subf %250, %259 : vector<16x32xf32>
    %261 = arith.mulf %260, %260 : vector<16x32xf32>
    %cst_157 = arith.constant dense<0.000000e+00> : vector<16xf32>
    %262 = vector.multi_reduction <add>, %261, %cst_157 [1] : vector<16x32xf32> to vector<16xf32>
    %263 = vector.shape_cast %262 : vector<16xf32> to vector<16x1xf32>
    %cst_158 = arith.constant 3.200000e+01 : f32
    %264 = vector.broadcast %cst_158 : f32 to vector<16x1xf32>
    %265 = arith.divf %263, %264 : vector<16x1xf32>
    %cst_159 = arith.constant 9.99999996E-13 : f32
    %266 = vector.broadcast %cst_159 : f32 to vector<16x1xf32>
    %267 = arith.addf %265, %266 : vector<16x1xf32>
    %268 = math.rsqrt %267 : vector<16x1xf32>
    %269 = vector.broadcast %268 : vector<16x1xf32> to vector<16x32xf32>
    %270 = arith.mulf %260, %269 : vector<16x32xf32>
    %271 = vector.broadcast %252 : vector<1x32xf32> to vector<16x32xf32>
    %272 = arith.mulf %270, %271 : vector<16x32xf32>
    %273 = vector.broadcast %254 : vector<1x32xf32> to vector<16x32xf32>
    %274 = arith.addf %272, %273 : vector<16x32xf32>
    %275 = vector.extract_strided_slice %274 {offsets = [0, 0], sizes = [1, 32], strides = [1, 1]} : vector<16x32xf32> to vector<1x32xf32>
    %276 = vector.extract_strided_slice %274 {offsets = [8, 0], sizes = [1, 32], strides = [1, 1]} : vector<16x32xf32> to vector<1x32xf32>
    %277 = tpu.concatenate %275, %276 in 0 : vector<1x32xf32>, vector<1x32xf32> -> vector<2x32xf32>
    %c0_160 = arith.constant 0 : index
    %c0_161 = arith.constant 0 : index
    %c0_162 = arith.constant 0 : index
    %278 = vector.load %arg18[%c0_160, %c0_161, %c0_162] : memref<2x32x32xf32, #tpu.memory_space<vmem>>, vector<1x32x32xf32>
    %279 = vector.shape_cast %278 : vector<1x32x32xf32> to vector<32x32xf32>
    %cst_163 = arith.constant dense<0.000000e+00> : vector<2x32xf32>
    %280 = tpu.matmul %277, %279, %cst_163 {dimension_numbers = #tpu.dot_dimension_numbers<[1], [0], [0], [1], [0, 0, 1, 1], [], []>} : vector<2x32xf32>, vector<32x32xf32>, vector<2x32xf32> -> vector<2x32xf32>
    %c0_164 = arith.constant 0 : index
    %c0_165 = arith.constant 0 : index
    %c0_166 = arith.constant 0 : index
    %281 = vector.load %arg19[%c0_164, %c0_165, %c0_166] : memref<2x1x32xf32, #tpu.memory_space<vmem>>, vector<1x1x32xf32>
    %282 = vector.shape_cast %281 : vector<1x1x32xf32> to vector<1x32xf32>
    %283 = vector.broadcast %282 : vector<1x32xf32> to vector<2x32xf32>
    %284 = arith.addf %280, %283 : vector<2x32xf32>
    %285 = math.tanh %284 : vector<2x32xf32>
    %c1_167 = arith.constant 1 : index
    %c0_168 = arith.constant 0 : index
    %c0_169 = arith.constant 0 : index
    %c0_170 = arith.constant 0 : index
    %286 = vector.load %arg6[%c1_167, %c0_168, %c0_169, %c0_170] : memref<2x2x32x96xf32, #tpu.memory_space<vmem>>, vector<1x1x32x96xf32>
    %287 = vector.shape_cast %286 : vector<1x1x32x96xf32> to vector<32x96xf32>
    %cst_171 = arith.constant dense<0.000000e+00> : vector<16x96xf32>
    %288 = tpu.matmul %22, %287, %cst_171 {dimension_numbers = #tpu.dot_dimension_numbers<[1], [0], [0], [1], [0, 0, 1, 1], [], []>} : vector<16x32xf32>, vector<32x96xf32>, vector<16x96xf32> -> vector<16x96xf32>
    %c1_172 = arith.constant 1 : index
    %c0_173 = arith.constant 0 : index
    %c0_174 = arith.constant 0 : index
    %c0_175 = arith.constant 0 : index
    %289 = vector.load %arg7[%c1_172, %c0_173, %c0_174, %c0_175] : memref<2x2x1x96xf32, #tpu.memory_space<vmem>>, vector<1x1x1x96xf32>
    %290 = vector.shape_cast %289 : vector<1x1x1x96xf32> to vector<1x96xf32>
    %291 = vector.broadcast %290 : vector<1x96xf32> to vector<16x96xf32>
    %292 = arith.addf %288, %291 : vector<16x96xf32>
    %293 = vector.extract_strided_slice %292 {offsets = [0, 0], sizes = [16, 16], strides = [1, 1]} : vector<16x96xf32> to vector<16x16xf32>
    %294 = vector.extract_strided_slice %292 {offsets = [0, 32], sizes = [16, 16], strides = [1, 1]} : vector<16x96xf32> to vector<16x16xf32>
    %295 = vector.extract_strided_slice %292 {offsets = [0, 64], sizes = [16, 16], strides = [1, 1]} : vector<16x96xf32> to vector<16x16xf32>
    %cst_176 = arith.constant dense<0.000000e+00> : vector<16x16xf32>
    %296 = tpu.matmul %293, %294, %cst_176 {dimension_numbers = #tpu.dot_dimension_numbers<[1], [1], [0], [0], [0, 0, 1, 0], [], []>} : vector<16x16xf32>, vector<16x16xf32>, vector<16x16xf32> -> vector<16x16xf32>
    %297 = arith.addf %296, %26 : vector<16x16xf32>
    %cst_177 = arith.constant dense<0xFF800000> : vector<16xf32>
    %298 = vector.multi_reduction <maximumf>, %297, %cst_177 [1] : vector<16x16xf32> to vector<16xf32>
    %299 = vector.shape_cast %298 : vector<16xf32> to vector<16x1xf32>
    %300 = vector.broadcast %299 : vector<16x1xf32> to vector<16x16xf32>
    %301 = arith.subf %297, %300 : vector<16x16xf32>
    %302 = math.exp %301 : vector<16x16xf32>
    %cst_178 = arith.constant dense<0.000000e+00> : vector<16xf32>
    %303 = vector.multi_reduction <add>, %302, %cst_178 [1] : vector<16x16xf32> to vector<16xf32>
    %304 = vector.shape_cast %303 : vector<16xf32> to vector<16x1xf32>
    %305 = tpu.reciprocal %304 {approx = true} : vector<16x1xf32> -> vector<16x1xf32>
    %306 = vector.broadcast %305 : vector<16x1xf32> to vector<16x16xf32>
    %307 = arith.mulf %302, %306 : vector<16x16xf32>
    %cst_179 = arith.constant dense<0.000000e+00> : vector<16x16xf32>
    %308 = tpu.matmul %307, %295, %cst_179 {dimension_numbers = #tpu.dot_dimension_numbers<[1], [0], [0], [1], [0, 0, 1, 1], [], []>} : vector<16x16xf32>, vector<16x16xf32>, vector<16x16xf32> -> vector<16x16xf32>
    %309 = vector.extract_strided_slice %292 {offsets = [0, 16], sizes = [16, 16], strides = [1, 1]} : vector<16x96xf32> to vector<16x16xf32>
    %310 = vector.extract_strided_slice %292 {offsets = [0, 48], sizes = [16, 16], strides = [1, 1]} : vector<16x96xf32> to vector<16x16xf32>
    %311 = vector.extract_strided_slice %292 {offsets = [0, 80], sizes = [16, 16], strides = [1, 1]} : vector<16x96xf32> to vector<16x16xf32>
    %cst_180 = arith.constant dense<0.000000e+00> : vector<16x16xf32>
    %312 = tpu.matmul %309, %310, %cst_180 {dimension_numbers = #tpu.dot_dimension_numbers<[1], [1], [0], [0], [0, 0, 1, 0], [], []>} : vector<16x16xf32>, vector<16x16xf32>, vector<16x16xf32> -> vector<16x16xf32>
    %313 = arith.addf %312, %26 : vector<16x16xf32>
    %cst_181 = arith.constant dense<0xFF800000> : vector<16xf32>
    %314 = vector.multi_reduction <maximumf>, %313, %cst_181 [1] : vector<16x16xf32> to vector<16xf32>
    %315 = vector.shape_cast %314 : vector<16xf32> to vector<16x1xf32>
    %316 = vector.broadcast %315 : vector<16x1xf32> to vector<16x16xf32>
    %317 = arith.subf %313, %316 : vector<16x16xf32>
    %318 = math.exp %317 : vector<16x16xf32>
    %cst_182 = arith.constant dense<0.000000e+00> : vector<16xf32>
    %319 = vector.multi_reduction <add>, %318, %cst_182 [1] : vector<16x16xf32> to vector<16xf32>
    %320 = vector.shape_cast %319 : vector<16xf32> to vector<16x1xf32>
    %321 = tpu.reciprocal %320 {approx = true} : vector<16x1xf32> -> vector<16x1xf32>
    %322 = vector.broadcast %321 : vector<16x1xf32> to vector<16x16xf32>
    %323 = arith.mulf %318, %322 : vector<16x16xf32>
    %cst_183 = arith.constant dense<0.000000e+00> : vector<16x16xf32>
    %324 = tpu.matmul %323, %311, %cst_183 {dimension_numbers = #tpu.dot_dimension_numbers<[1], [0], [0], [1], [0, 0, 1, 1], [], []>} : vector<16x16xf32>, vector<16x16xf32>, vector<16x16xf32> -> vector<16x16xf32>
    %325 = tpu.concatenate %308, %324 in 1 : vector<16x16xf32>, vector<16x16xf32> -> vector<16x32xf32>
    %c1_184 = arith.constant 1 : index
    %c0_185 = arith.constant 0 : index
    %c0_186 = arith.constant 0 : index
    %c0_187 = arith.constant 0 : index
    %326 = vector.load %arg8[%c1_184, %c0_185, %c0_186, %c0_187] : memref<2x2x32x32xf32, #tpu.memory_space<vmem>>, vector<1x1x32x32xf32>
    %327 = vector.shape_cast %326 : vector<1x1x32x32xf32> to vector<32x32xf32>
    %cst_188 = arith.constant dense<0.000000e+00> : vector<16x32xf32>
    %328 = tpu.matmul %325, %327, %cst_188 {dimension_numbers = #tpu.dot_dimension_numbers<[1], [0], [0], [1], [0, 0, 1, 1], [], []>} : vector<16x32xf32>, vector<32x32xf32>, vector<16x32xf32> -> vector<16x32xf32>
    %c1_189 = arith.constant 1 : index
    %c0_190 = arith.constant 0 : index
    %c0_191 = arith.constant 0 : index
    %c0_192 = arith.constant 0 : index
    %329 = vector.load %arg9[%c1_189, %c0_190, %c0_191, %c0_192] : memref<2x2x1x32xf32, #tpu.memory_space<vmem>>, vector<1x1x1x32xf32>
    %330 = vector.shape_cast %329 : vector<1x1x1x32xf32> to vector<1x32xf32>
    %331 = vector.broadcast %330 : vector<1x32xf32> to vector<16x32xf32>
    %332 = arith.addf %328, %331 : vector<16x32xf32>
    %333 = arith.addf %332, %22 : vector<16x32xf32>
    %c1_193 = arith.constant 1 : index
    %c0_194 = arith.constant 0 : index
    %c0_195 = arith.constant 0 : index
    %c0_196 = arith.constant 0 : index
    %334 = vector.load %arg10[%c1_193, %c0_194, %c0_195, %c0_196] : memref<2x2x1x32xf32, #tpu.memory_space<vmem>>, vector<1x1x1x32xf32>
    %335 = vector.shape_cast %334 : vector<1x1x1x32xf32> to vector<1x32xf32>
    %c1_197 = arith.constant 1 : index
    %c0_198 = arith.constant 0 : index
    %c0_199 = arith.constant 0 : index
    %c0_200 = arith.constant 0 : index
    %336 = vector.load %arg11[%c1_197, %c0_198, %c0_199, %c0_200] : memref<2x2x1x32xf32, #tpu.memory_space<vmem>>, vector<1x1x1x32xf32>
    %337 = vector.shape_cast %336 : vector<1x1x1x32xf32> to vector<1x32xf32>
    %cst_201 = arith.constant dense<0.000000e+00> : vector<16xf32>
    %338 = vector.multi_reduction <add>, %333, %cst_201 [1] : vector<16x32xf32> to vector<16xf32>
    %339 = vector.shape_cast %338 : vector<16xf32> to vector<16x1xf32>
    %cst_202 = arith.constant 3.200000e+01 : f32
    %340 = vector.broadcast %cst_202 : f32 to vector<16x1xf32>
    %341 = arith.divf %339, %340 : vector<16x1xf32>
    %342 = vector.broadcast %341 : vector<16x1xf32> to vector<16x32xf32>
    %343 = arith.subf %333, %342 : vector<16x32xf32>
    %344 = arith.mulf %343, %343 : vector<16x32xf32>
    %cst_203 = arith.constant dense<0.000000e+00> : vector<16xf32>
    %345 = vector.multi_reduction <add>, %344, %cst_203 [1] : vector<16x32xf32> to vector<16xf32>
    %346 = vector.shape_cast %345 : vector<16xf32> to vector<16x1xf32>
    %cst_204 = arith.constant 3.200000e+01 : f32
    %347 = vector.broadcast %cst_204 : f32 to vector<16x1xf32>
    %348 = arith.divf %346, %347 : vector<16x1xf32>
    %cst_205 = arith.constant 9.99999996E-13 : f32
    %349 = vector.broadcast %cst_205 : f32 to vector<16x1xf32>
    %350 = arith.addf %348, %349 : vector<16x1xf32>
    %351 = math.rsqrt %350 : vector<16x1xf32>
    %352 = vector.broadcast %351 : vector<16x1xf32> to vector<16x32xf32>
    %353 = arith.mulf %343, %352 : vector<16x32xf32>
    %354 = vector.broadcast %335 : vector<1x32xf32> to vector<16x32xf32>
    %355 = arith.mulf %353, %354 : vector<16x32xf32>
    %356 = vector.broadcast %337 : vector<1x32xf32> to vector<16x32xf32>
    %357 = arith.addf %355, %356 : vector<16x32xf32>
    %c1_206 = arith.constant 1 : index
    %c0_207 = arith.constant 0 : index
    %c0_208 = arith.constant 0 : index
    %c0_209 = arith.constant 0 : index
    %358 = vector.load %arg12[%c1_206, %c0_207, %c0_208, %c0_209] : memref<2x2x32x64xf32, #tpu.memory_space<vmem>>, vector<1x1x32x64xf32>
    %359 = vector.shape_cast %358 : vector<1x1x32x64xf32> to vector<32x64xf32>
    %cst_210 = arith.constant dense<0.000000e+00> : vector<16x64xf32>
    %360 = tpu.matmul %357, %359, %cst_210 {dimension_numbers = #tpu.dot_dimension_numbers<[1], [0], [0], [1], [0, 0, 1, 1], [], []>} : vector<16x32xf32>, vector<32x64xf32>, vector<16x64xf32> -> vector<16x64xf32>
    %c1_211 = arith.constant 1 : index
    %c0_212 = arith.constant 0 : index
    %c0_213 = arith.constant 0 : index
    %c0_214 = arith.constant 0 : index
    %361 = vector.load %arg13[%c1_211, %c0_212, %c0_213, %c0_214] : memref<2x2x1x64xf32, #tpu.memory_space<vmem>>, vector<1x1x1x64xf32>
    %362 = vector.shape_cast %361 : vector<1x1x1x64xf32> to vector<1x64xf32>
    %363 = vector.broadcast %362 : vector<1x64xf32> to vector<16x64xf32>
    %364 = arith.addf %360, %363 : vector<16x64xf32>
    %365 = arith.mulf %364, %364 : vector<16x64xf32>
    %366 = arith.mulf %364, %365 : vector<16x64xf32>
    %cst_215 = arith.constant 4.471500e-02 : f32
    %367 = vector.broadcast %cst_215 : f32 to vector<16x64xf32>
    %368 = arith.mulf %367, %366 : vector<16x64xf32>
    %369 = arith.addf %364, %368 : vector<16x64xf32>
    %cst_216 = arith.constant 0.797884583 : f32
    %370 = vector.broadcast %cst_216 : f32 to vector<16x64xf32>
    %371 = arith.mulf %370, %369 : vector<16x64xf32>
    %372 = math.tanh %371 : vector<16x64xf32>
    %cst_217 = arith.constant 1.000000e+00 : f32
    %373 = vector.broadcast %cst_217 : f32 to vector<16x64xf32>
    %374 = arith.addf %373, %372 : vector<16x64xf32>
    %cst_218 = arith.constant 5.000000e-01 : f32
    %375 = vector.broadcast %cst_218 : f32 to vector<16x64xf32>
    %376 = arith.mulf %375, %374 : vector<16x64xf32>
    %377 = arith.mulf %364, %376 : vector<16x64xf32>
    %c1_219 = arith.constant 1 : index
    %c0_220 = arith.constant 0 : index
    %c0_221 = arith.constant 0 : index
    %c0_222 = arith.constant 0 : index
    %378 = vector.load %arg14[%c1_219, %c0_220, %c0_221, %c0_222] : memref<2x2x64x32xf32, #tpu.memory_space<vmem>>, vector<1x1x64x32xf32>
    %379 = vector.shape_cast %378 : vector<1x1x64x32xf32> to vector<64x32xf32>
    %cst_223 = arith.constant dense<0.000000e+00> : vector<16x32xf32>
    %380 = tpu.matmul %377, %379, %cst_223 {dimension_numbers = #tpu.dot_dimension_numbers<[1], [0], [0], [1], [0, 0, 1, 1], [], []>} : vector<16x64xf32>, vector<64x32xf32>, vector<16x32xf32> -> vector<16x32xf32>
    %c1_224 = arith.constant 1 : index
    %c0_225 = arith.constant 0 : index
    %c0_226 = arith.constant 0 : index
    %c0_227 = arith.constant 0 : index
    %381 = vector.load %arg15[%c1_224, %c0_225, %c0_226, %c0_227] : memref<2x2x1x32xf32, #tpu.memory_space<vmem>>, vector<1x1x1x32xf32>
    %382 = vector.shape_cast %381 : vector<1x1x1x32xf32> to vector<1x32xf32>
    %383 = vector.broadcast %382 : vector<1x32xf32> to vector<16x32xf32>
    %384 = arith.addf %380, %383 : vector<16x32xf32>
    %385 = arith.addf %384, %357 : vector<16x32xf32>
    %c1_228 = arith.constant 1 : index
    %c0_229 = arith.constant 0 : index
    %c0_230 = arith.constant 0 : index
    %c0_231 = arith.constant 0 : index
    %386 = vector.load %arg16[%c1_228, %c0_229, %c0_230, %c0_231] : memref<2x2x1x32xf32, #tpu.memory_space<vmem>>, vector<1x1x1x32xf32>
    %387 = vector.shape_cast %386 : vector<1x1x1x32xf32> to vector<1x32xf32>
    %c1_232 = arith.constant 1 : index
    %c0_233 = arith.constant 0 : index
    %c0_234 = arith.constant 0 : index
    %c0_235 = arith.constant 0 : index
    %388 = vector.load %arg17[%c1_232, %c0_233, %c0_234, %c0_235] : memref<2x2x1x32xf32, #tpu.memory_space<vmem>>, vector<1x1x1x32xf32>
    %389 = vector.shape_cast %388 : vector<1x1x1x32xf32> to vector<1x32xf32>
    %cst_236 = arith.constant dense<0.000000e+00> : vector<16xf32>
    %390 = vector.multi_reduction <add>, %385, %cst_236 [1] : vector<16x32xf32> to vector<16xf32>
    %391 = vector.shape_cast %390 : vector<16xf32> to vector<16x1xf32>
    %cst_237 = arith.constant 3.200000e+01 : f32
    %392 = vector.broadcast %cst_237 : f32 to vector<16x1xf32>
    %393 = arith.divf %391, %392 : vector<16x1xf32>
    %394 = vector.broadcast %393 : vector<16x1xf32> to vector<16x32xf32>
    %395 = arith.subf %385, %394 : vector<16x32xf32>
    %396 = arith.mulf %395, %395 : vector<16x32xf32>
    %cst_238 = arith.constant dense<0.000000e+00> : vector<16xf32>
    %397 = vector.multi_reduction <add>, %396, %cst_238 [1] : vector<16x32xf32> to vector<16xf32>
    %398 = vector.shape_cast %397 : vector<16xf32> to vector<16x1xf32>
    %cst_239 = arith.constant 3.200000e+01 : f32
    %399 = vector.broadcast %cst_239 : f32 to vector<16x1xf32>
    %400 = arith.divf %398, %399 : vector<16x1xf32>
    %cst_240 = arith.constant 9.99999996E-13 : f32
    %401 = vector.broadcast %cst_240 : f32 to vector<16x1xf32>
    %402 = arith.addf %400, %401 : vector<16x1xf32>
    %403 = math.rsqrt %402 : vector<16x1xf32>
    %404 = vector.broadcast %403 : vector<16x1xf32> to vector<16x32xf32>
    %405 = arith.mulf %395, %404 : vector<16x32xf32>
    %406 = vector.broadcast %387 : vector<1x32xf32> to vector<16x32xf32>
    %407 = arith.mulf %405, %406 : vector<16x32xf32>
    %408 = vector.broadcast %389 : vector<1x32xf32> to vector<16x32xf32>
    %409 = arith.addf %407, %408 : vector<16x32xf32>
    %c1_241 = arith.constant 1 : index
    %c1_242 = arith.constant 1 : index
    %c0_243 = arith.constant 0 : index
    %c0_244 = arith.constant 0 : index
    %410 = vector.load %arg6[%c1_241, %c1_242, %c0_243, %c0_244] : memref<2x2x32x96xf32, #tpu.memory_space<vmem>>, vector<1x1x32x96xf32>
    %411 = vector.shape_cast %410 : vector<1x1x32x96xf32> to vector<32x96xf32>
    %cst_245 = arith.constant dense<0.000000e+00> : vector<16x96xf32>
    %412 = tpu.matmul %409, %411, %cst_245 {dimension_numbers = #tpu.dot_dimension_numbers<[1], [0], [0], [1], [0, 0, 1, 1], [], []>} : vector<16x32xf32>, vector<32x96xf32>, vector<16x96xf32> -> vector<16x96xf32>
    %c1_246 = arith.constant 1 : index
    %c1_247 = arith.constant 1 : index
    %c0_248 = arith.constant 0 : index
    %c0_249 = arith.constant 0 : index
    %413 = vector.load %arg7[%c1_246, %c1_247, %c0_248, %c0_249] : memref<2x2x1x96xf32, #tpu.memory_space<vmem>>, vector<1x1x1x96xf32>
    %414 = vector.shape_cast %413 : vector<1x1x1x96xf32> to vector<1x96xf32>
    %415 = vector.broadcast %414 : vector<1x96xf32> to vector<16x96xf32>
    %416 = arith.addf %412, %415 : vector<16x96xf32>
    %417 = vector.extract_strided_slice %416 {offsets = [0, 0], sizes = [16, 16], strides = [1, 1]} : vector<16x96xf32> to vector<16x16xf32>
    %418 = vector.extract_strided_slice %416 {offsets = [0, 32], sizes = [16, 16], strides = [1, 1]} : vector<16x96xf32> to vector<16x16xf32>
    %419 = vector.extract_strided_slice %416 {offsets = [0, 64], sizes = [16, 16], strides = [1, 1]} : vector<16x96xf32> to vector<16x16xf32>
    %cst_250 = arith.constant dense<0.000000e+00> : vector<16x16xf32>
    %420 = tpu.matmul %417, %418, %cst_250 {dimension_numbers = #tpu.dot_dimension_numbers<[1], [1], [0], [0], [0, 0, 1, 0], [], []>} : vector<16x16xf32>, vector<16x16xf32>, vector<16x16xf32> -> vector<16x16xf32>
    %421 = arith.addf %420, %26 : vector<16x16xf32>
    %cst_251 = arith.constant dense<0xFF800000> : vector<16xf32>
    %422 = vector.multi_reduction <maximumf>, %421, %cst_251 [1] : vector<16x16xf32> to vector<16xf32>
    %423 = vector.shape_cast %422 : vector<16xf32> to vector<16x1xf32>
    %424 = vector.broadcast %423 : vector<16x1xf32> to vector<16x16xf32>
    %425 = arith.subf %421, %424 : vector<16x16xf32>
    %426 = math.exp %425 : vector<16x16xf32>
    %cst_252 = arith.constant dense<0.000000e+00> : vector<16xf32>
    %427 = vector.multi_reduction <add>, %426, %cst_252 [1] : vector<16x16xf32> to vector<16xf32>
    %428 = vector.shape_cast %427 : vector<16xf32> to vector<16x1xf32>
    %429 = tpu.reciprocal %428 {approx = true} : vector<16x1xf32> -> vector<16x1xf32>
    %430 = vector.broadcast %429 : vector<16x1xf32> to vector<16x16xf32>
    %431 = arith.mulf %426, %430 : vector<16x16xf32>
    %cst_253 = arith.constant dense<0.000000e+00> : vector<16x16xf32>
    %432 = tpu.matmul %431, %419, %cst_253 {dimension_numbers = #tpu.dot_dimension_numbers<[1], [0], [0], [1], [0, 0, 1, 1], [], []>} : vector<16x16xf32>, vector<16x16xf32>, vector<16x16xf32> -> vector<16x16xf32>
    %433 = vector.extract_strided_slice %416 {offsets = [0, 16], sizes = [16, 16], strides = [1, 1]} : vector<16x96xf32> to vector<16x16xf32>
    %434 = vector.extract_strided_slice %416 {offsets = [0, 48], sizes = [16, 16], strides = [1, 1]} : vector<16x96xf32> to vector<16x16xf32>
    %435 = vector.extract_strided_slice %416 {offsets = [0, 80], sizes = [16, 16], strides = [1, 1]} : vector<16x96xf32> to vector<16x16xf32>
    %cst_254 = arith.constant dense<0.000000e+00> : vector<16x16xf32>
    %436 = tpu.matmul %433, %434, %cst_254 {dimension_numbers = #tpu.dot_dimension_numbers<[1], [1], [0], [0], [0, 0, 1, 0], [], []>} : vector<16x16xf32>, vector<16x16xf32>, vector<16x16xf32> -> vector<16x16xf32>
    %437 = arith.addf %436, %26 : vector<16x16xf32>
    %cst_255 = arith.constant dense<0xFF800000> : vector<16xf32>
    %438 = vector.multi_reduction <maximumf>, %437, %cst_255 [1] : vector<16x16xf32> to vector<16xf32>
    %439 = vector.shape_cast %438 : vector<16xf32> to vector<16x1xf32>
    %440 = vector.broadcast %439 : vector<16x1xf32> to vector<16x16xf32>
    %441 = arith.subf %437, %440 : vector<16x16xf32>
    %442 = math.exp %441 : vector<16x16xf32>
    %cst_256 = arith.constant dense<0.000000e+00> : vector<16xf32>
    %443 = vector.multi_reduction <add>, %442, %cst_256 [1] : vector<16x16xf32> to vector<16xf32>
    %444 = vector.shape_cast %443 : vector<16xf32> to vector<16x1xf32>
    %445 = tpu.reciprocal %444 {approx = true} : vector<16x1xf32> -> vector<16x1xf32>
    %446 = vector.broadcast %445 : vector<16x1xf32> to vector<16x16xf32>
    %447 = arith.mulf %442, %446 : vector<16x16xf32>
    %cst_257 = arith.constant dense<0.000000e+00> : vector<16x16xf32>
    %448 = tpu.matmul %447, %435, %cst_257 {dimension_numbers = #tpu.dot_dimension_numbers<[1], [0], [0], [1], [0, 0, 1, 1], [], []>} : vector<16x16xf32>, vector<16x16xf32>, vector<16x16xf32> -> vector<16x16xf32>
    %449 = tpu.concatenate %432, %448 in 1 : vector<16x16xf32>, vector<16x16xf32> -> vector<16x32xf32>
    %c1_258 = arith.constant 1 : index
    %c1_259 = arith.constant 1 : index
    %c0_260 = arith.constant 0 : index
    %c0_261 = arith.constant 0 : index
    %450 = vector.load %arg8[%c1_258, %c1_259, %c0_260, %c0_261] : memref<2x2x32x32xf32, #tpu.memory_space<vmem>>, vector<1x1x32x32xf32>
    %451 = vector.shape_cast %450 : vector<1x1x32x32xf32> to vector<32x32xf32>
    %cst_262 = arith.constant dense<0.000000e+00> : vector<16x32xf32>
    %452 = tpu.matmul %449, %451, %cst_262 {dimension_numbers = #tpu.dot_dimension_numbers<[1], [0], [0], [1], [0, 0, 1, 1], [], []>} : vector<16x32xf32>, vector<32x32xf32>, vector<16x32xf32> -> vector<16x32xf32>
    %c1_263 = arith.constant 1 : index
    %c1_264 = arith.constant 1 : index
    %c0_265 = arith.constant 0 : index
    %c0_266 = arith.constant 0 : index
    %453 = vector.load %arg9[%c1_263, %c1_264, %c0_265, %c0_266] : memref<2x2x1x32xf32, #tpu.memory_space<vmem>>, vector<1x1x1x32xf32>
    %454 = vector.shape_cast %453 : vector<1x1x1x32xf32> to vector<1x32xf32>
    %455 = vector.broadcast %454 : vector<1x32xf32> to vector<16x32xf32>
    %456 = arith.addf %452, %455 : vector<16x32xf32>
    %457 = arith.addf %456, %409 : vector<16x32xf32>
    %c1_267 = arith.constant 1 : index
    %c1_268 = arith.constant 1 : index
    %c0_269 = arith.constant 0 : index
    %c0_270 = arith.constant 0 : index
    %458 = vector.load %arg10[%c1_267, %c1_268, %c0_269, %c0_270] : memref<2x2x1x32xf32, #tpu.memory_space<vmem>>, vector<1x1x1x32xf32>
    %459 = vector.shape_cast %458 : vector<1x1x1x32xf32> to vector<1x32xf32>
    %c1_271 = arith.constant 1 : index
    %c1_272 = arith.constant 1 : index
    %c0_273 = arith.constant 0 : index
    %c0_274 = arith.constant 0 : index
    %460 = vector.load %arg11[%c1_271, %c1_272, %c0_273, %c0_274] : memref<2x2x1x32xf32, #tpu.memory_space<vmem>>, vector<1x1x1x32xf32>
    %461 = vector.shape_cast %460 : vector<1x1x1x32xf32> to vector<1x32xf32>
    %cst_275 = arith.constant dense<0.000000e+00> : vector<16xf32>
    %462 = vector.multi_reduction <add>, %457, %cst_275 [1] : vector<16x32xf32> to vector<16xf32>
    %463 = vector.shape_cast %462 : vector<16xf32> to vector<16x1xf32>
    %cst_276 = arith.constant 3.200000e+01 : f32
    %464 = vector.broadcast %cst_276 : f32 to vector<16x1xf32>
    %465 = arith.divf %463, %464 : vector<16x1xf32>
    %466 = vector.broadcast %465 : vector<16x1xf32> to vector<16x32xf32>
    %467 = arith.subf %457, %466 : vector<16x32xf32>
    %468 = arith.mulf %467, %467 : vector<16x32xf32>
    %cst_277 = arith.constant dense<0.000000e+00> : vector<16xf32>
    %469 = vector.multi_reduction <add>, %468, %cst_277 [1] : vector<16x32xf32> to vector<16xf32>
    %470 = vector.shape_cast %469 : vector<16xf32> to vector<16x1xf32>
    %cst_278 = arith.constant 3.200000e+01 : f32
    %471 = vector.broadcast %cst_278 : f32 to vector<16x1xf32>
    %472 = arith.divf %470, %471 : vector<16x1xf32>
    %cst_279 = arith.constant 9.99999996E-13 : f32
    %473 = vector.broadcast %cst_279 : f32 to vector<16x1xf32>
    %474 = arith.addf %472, %473 : vector<16x1xf32>
    %475 = math.rsqrt %474 : vector<16x1xf32>
    %476 = vector.broadcast %475 : vector<16x1xf32> to vector<16x32xf32>
    %477 = arith.mulf %467, %476 : vector<16x32xf32>
    %478 = vector.broadcast %459 : vector<1x32xf32> to vector<16x32xf32>
    %479 = arith.mulf %477, %478 : vector<16x32xf32>
    %480 = vector.broadcast %461 : vector<1x32xf32> to vector<16x32xf32>
    %481 = arith.addf %479, %480 : vector<16x32xf32>
    %c1_280 = arith.constant 1 : index
    %c1_281 = arith.constant 1 : index
    %c0_282 = arith.constant 0 : index
    %c0_283 = arith.constant 0 : index
    %482 = vector.load %arg12[%c1_280, %c1_281, %c0_282, %c0_283] : memref<2x2x32x64xf32, #tpu.memory_space<vmem>>, vector<1x1x32x64xf32>
    %483 = vector.shape_cast %482 : vector<1x1x32x64xf32> to vector<32x64xf32>
    %cst_284 = arith.constant dense<0.000000e+00> : vector<16x64xf32>
    %484 = tpu.matmul %481, %483, %cst_284 {dimension_numbers = #tpu.dot_dimension_numbers<[1], [0], [0], [1], [0, 0, 1, 1], [], []>} : vector<16x32xf32>, vector<32x64xf32>, vector<16x64xf32> -> vector<16x64xf32>
    %c1_285 = arith.constant 1 : index
    %c1_286 = arith.constant 1 : index
    %c0_287 = arith.constant 0 : index
    %c0_288 = arith.constant 0 : index
    %485 = vector.load %arg13[%c1_285, %c1_286, %c0_287, %c0_288] : memref<2x2x1x64xf32, #tpu.memory_space<vmem>>, vector<1x1x1x64xf32>
    %486 = vector.shape_cast %485 : vector<1x1x1x64xf32> to vector<1x64xf32>
    %487 = vector.broadcast %486 : vector<1x64xf32> to vector<16x64xf32>
    %488 = arith.addf %484, %487 : vector<16x64xf32>
    %489 = arith.mulf %488, %488 : vector<16x64xf32>
    %490 = arith.mulf %488, %489 : vector<16x64xf32>
    %cst_289 = arith.constant 4.471500e-02 : f32
    %491 = vector.broadcast %cst_289 : f32 to vector<16x64xf32>
    %492 = arith.mulf %491, %490 : vector<16x64xf32>
    %493 = arith.addf %488, %492 : vector<16x64xf32>
    %cst_290 = arith.constant 0.797884583 : f32
    %494 = vector.broadcast %cst_290 : f32 to vector<16x64xf32>
    %495 = arith.mulf %494, %493 : vector<16x64xf32>
    %496 = math.tanh %495 : vector<16x64xf32>
    %cst_291 = arith.constant 1.000000e+00 : f32
    %497 = vector.broadcast %cst_291 : f32 to vector<16x64xf32>
    %498 = arith.addf %497, %496 : vector<16x64xf32>
    %cst_292 = arith.constant 5.000000e-01 : f32
    %499 = vector.broadcast %cst_292 : f32 to vector<16x64xf32>
    %500 = arith.mulf %499, %498 : vector<16x64xf32>
    %501 = arith.mulf %488, %500 : vector<16x64xf32>
    %c1_293 = arith.constant 1 : index
    %c1_294 = arith.constant 1 : index
    %c0_295 = arith.constant 0 : index
    %c0_296 = arith.constant 0 : index
    %502 = vector.load %arg14[%c1_293, %c1_294, %c0_295, %c0_296] : memref<2x2x64x32xf32, #tpu.memory_space<vmem>>, vector<1x1x64x32xf32>
    %503 = vector.shape_cast %502 : vector<1x1x64x32xf32> to vector<64x32xf32>
    %cst_297 = arith.constant dense<0.000000e+00> : vector<16x32xf32>
    %504 = tpu.matmul %501, %503, %cst_297 {dimension_numbers = #tpu.dot_dimension_numbers<[1], [0], [0], [1], [0, 0, 1, 1], [], []>} : vector<16x64xf32>, vector<64x32xf32>, vector<16x32xf32> -> vector<16x32xf32>
    %c1_298 = arith.constant 1 : index
    %c1_299 = arith.constant 1 : index
    %c0_300 = arith.constant 0 : index
    %c0_301 = arith.constant 0 : index
    %505 = vector.load %arg15[%c1_298, %c1_299, %c0_300, %c0_301] : memref<2x2x1x32xf32, #tpu.memory_space<vmem>>, vector<1x1x1x32xf32>
    %506 = vector.shape_cast %505 : vector<1x1x1x32xf32> to vector<1x32xf32>
    %507 = vector.broadcast %506 : vector<1x32xf32> to vector<16x32xf32>
    %508 = arith.addf %504, %507 : vector<16x32xf32>
    %509 = arith.addf %508, %481 : vector<16x32xf32>
    %c1_302 = arith.constant 1 : index
    %c1_303 = arith.constant 1 : index
    %c0_304 = arith.constant 0 : index
    %c0_305 = arith.constant 0 : index
    %510 = vector.load %arg16[%c1_302, %c1_303, %c0_304, %c0_305] : memref<2x2x1x32xf32, #tpu.memory_space<vmem>>, vector<1x1x1x32xf32>
    %511 = vector.shape_cast %510 : vector<1x1x1x32xf32> to vector<1x32xf32>
    %c1_306 = arith.constant 1 : index
    %c1_307 = arith.constant 1 : index
    %c0_308 = arith.constant 0 : index
    %c0_309 = arith.constant 0 : index
    %512 = vector.load %arg17[%c1_306, %c1_307, %c0_308, %c0_309] : memref<2x2x1x32xf32, #tpu.memory_space<vmem>>, vector<1x1x1x32xf32>
    %513 = vector.shape_cast %512 : vector<1x1x1x32xf32> to vector<1x32xf32>
    %cst_310 = arith.constant dense<0.000000e+00> : vector<16xf32>
    %514 = vector.multi_reduction <add>, %509, %cst_310 [1] : vector<16x32xf32> to vector<16xf32>
    %515 = vector.shape_cast %514 : vector<16xf32> to vector<16x1xf32>
    %cst_311 = arith.constant 3.200000e+01 : f32
    %516 = vector.broadcast %cst_311 : f32 to vector<16x1xf32>
    %517 = arith.divf %515, %516 : vector<16x1xf32>
    %518 = vector.broadcast %517 : vector<16x1xf32> to vector<16x32xf32>
    %519 = arith.subf %509, %518 : vector<16x32xf32>
    %520 = arith.mulf %519, %519 : vector<16x32xf32>
    %cst_312 = arith.constant dense<0.000000e+00> : vector<16xf32>
    %521 = vector.multi_reduction <add>, %520, %cst_312 [1] : vector<16x32xf32> to vector<16xf32>
    %522 = vector.shape_cast %521 : vector<16xf32> to vector<16x1xf32>
    %cst_313 = arith.constant 3.200000e+01 : f32
    %523 = vector.broadcast %cst_313 : f32 to vector<16x1xf32>
    %524 = arith.divf %522, %523 : vector<16x1xf32>
    %cst_314 = arith.constant 9.99999996E-13 : f32
    %525 = vector.broadcast %cst_314 : f32 to vector<16x1xf32>
    %526 = arith.addf %524, %525 : vector<16x1xf32>
    %527 = math.rsqrt %526 : vector<16x1xf32>
    %528 = vector.broadcast %527 : vector<16x1xf32> to vector<16x32xf32>
    %529 = arith.mulf %519, %528 : vector<16x32xf32>
    %530 = vector.broadcast %511 : vector<1x32xf32> to vector<16x32xf32>
    %531 = arith.mulf %529, %530 : vector<16x32xf32>
    %532 = vector.broadcast %513 : vector<1x32xf32> to vector<16x32xf32>
    %533 = arith.addf %531, %532 : vector<16x32xf32>
    %534 = vector.extract_strided_slice %533 {offsets = [0, 0], sizes = [1, 32], strides = [1, 1]} : vector<16x32xf32> to vector<1x32xf32>
    %535 = vector.extract_strided_slice %533 {offsets = [8, 0], sizes = [1, 32], strides = [1, 1]} : vector<16x32xf32> to vector<1x32xf32>
    %536 = tpu.concatenate %534, %535 in 0 : vector<1x32xf32>, vector<1x32xf32> -> vector<2x32xf32>
    %c1_315 = arith.constant 1 : index
    %c0_316 = arith.constant 0 : index
    %c0_317 = arith.constant 0 : index
    %537 = vector.load %arg18[%c1_315, %c0_316, %c0_317] : memref<2x32x32xf32, #tpu.memory_space<vmem>>, vector<1x32x32xf32>
    %538 = vector.shape_cast %537 : vector<1x32x32xf32> to vector<32x32xf32>
    %cst_318 = arith.constant dense<0.000000e+00> : vector<2x32xf32>
    %539 = tpu.matmul %536, %538, %cst_318 {dimension_numbers = #tpu.dot_dimension_numbers<[1], [0], [0], [1], [0, 0, 1, 1], [], []>} : vector<2x32xf32>, vector<32x32xf32>, vector<2x32xf32> -> vector<2x32xf32>
    %c1_319 = arith.constant 1 : index
    %c0_320 = arith.constant 0 : index
    %c0_321 = arith.constant 0 : index
    %540 = vector.load %arg19[%c1_319, %c0_320, %c0_321] : memref<2x1x32xf32, #tpu.memory_space<vmem>>, vector<1x1x32xf32>
    %541 = vector.shape_cast %540 : vector<1x1x32xf32> to vector<1x32xf32>
    %542 = vector.broadcast %541 : vector<1x32xf32> to vector<2x32xf32>
    %543 = arith.addf %539, %542 : vector<2x32xf32>
    %544 = math.tanh %543 : vector<2x32xf32>
    %c0_322 = arith.constant 0 : index
    %c0_323 = arith.constant 0 : index
    %545 = vector.load %arg23[%c0_322, %c0_323] : memref<2x32xf32, #tpu.memory_space<vmem>>, vector<2x32xf32>
    tpu.vector_store %arg23[%c0_322, %c0_323], %285 {strides = array<i32>} : memref<2x32xf32, #tpu.memory_space<vmem>>, vector<2x32xf32>,
    %c0_324 = arith.constant 0 : index
    %c0_325 = arith.constant 0 : index
    %546 = vector.load %arg24[%c0_324, %c0_325] : memref<2x32xf32, #tpu.memory_space<vmem>>, vector<2x32xf32>
    tpu.vector_store %arg24[%c0_324, %c0_325], %544 {strides = array<i32>} : memref<2x32xf32, #tpu.memory_space<vmem>>, vector<2x32xf32>,
    %547 = tpu.concatenate %544, %285 in 1 : vector<2x32xf32>, vector<2x32xf32> -> vector<2x64xf32>
    %c0_326 = arith.constant 0 : index
    %c0_327 = arith.constant 0 : index
    %548 = vector.load %arg20[%c0_326, %c0_327] : memref<64x3xf32, #tpu.memory_space<vmem>>, vector<64x3xf32>
    %cst_328 = arith.constant dense<0.000000e+00> : vector<2x3xf32>
    %549 = tpu.matmul %547, %548, %cst_328 {dimension_numbers = #tpu.dot_dimension_numbers<[1], [0], [0], [1], [0, 0, 1, 1], [], []>} : vector<2x64xf32>, vector<64x3xf32>, vector<2x3xf32> -> vector<2x3xf32>
    %c0_329 = arith.constant 0 : index
    %c0_330 = arith.constant 0 : index
    %550 = vector.load %arg21[%c0_329, %c0_330] : memref<1x3xf32, #tpu.memory_space<vmem>>, vector<1x3xf32>
    %551 = vector.broadcast %550 : vector<1x3xf32> to vector<2x3xf32>
    %552 = arith.addf %549, %551 : vector<2x3xf32>
    %c0_331 = arith.constant 0 : index
    %c0_332 = arith.constant 0 : index
    %553 = vector.load %arg22[%c0_331, %c0_332] : memref<2x3xf32, #tpu.memory_space<vmem>>, vector<2x3xf32>
    tpu.vector_store %arg22[%c0_331, %c0_332], %552 {strides = array<i32>} : memref<2x3xf32, #tpu.memory_space<vmem>>, vector<2x3xf32>,
    return
  }
  func.func @transform_0(%arg0: i32) -> (i32, i32) {
    %c0_i32 = arith.constant 0 : i32
    %c0_i32_0 = arith.constant 0 : i32
    %c0_i32_1 = arith.constant 0 : i32
    return %c0_i32, %c0_i32_0 : i32, i32
  }
  func.func @transform_1(%arg0: i32) -> (i32, i32) {
    %c0_i32 = arith.constant 0 : i32
    %c0_i32_0 = arith.constant 0 : i32
    %c0_i32_1 = arith.constant 0 : i32
    return %c0_i32, %c0_i32_0 : i32, i32
  }
  func.func @transform_2(%arg0: i32) -> (i32, i32) {
    %c0_i32 = arith.constant 0 : i32
    %c0_i32_0 = arith.constant 0 : i32
    %c0_i32_1 = arith.constant 0 : i32
    return %c0_i32, %c0_i32_0 : i32, i32
  }
  func.func @transform_3(%arg0: i32) -> (i32, i32) {
    %c0_i32 = arith.constant 0 : i32
    %c0_i32_0 = arith.constant 0 : i32
    %c0_i32_1 = arith.constant 0 : i32
    return %c0_i32, %c0_i32_0 : i32, i32
  }
  func.func @transform_4(%arg0: i32) -> (i32, i32) {
    %c0_i32 = arith.constant 0 : i32
    %c0_i32_0 = arith.constant 0 : i32
    %c0_i32_1 = arith.constant 0 : i32
    return %c0_i32, %c0_i32_0 : i32, i32
  }
  func.func @transform_5(%arg0: i32) -> (i32, i32, i32, i32) {
    %c0_i32 = arith.constant 0 : i32
    %c0_i32_0 = arith.constant 0 : i32
    %c0_i32_1 = arith.constant 0 : i32
    %c0_i32_2 = arith.constant 0 : i32
    %c0_i32_3 = arith.constant 0 : i32
    return %c0_i32, %c0_i32_0, %c0_i32_1, %c0_i32_2 : i32, i32, i32, i32
  }
  func.func @transform_6(%arg0: i32) -> (i32, i32, i32, i32) {
    %c0_i32 = arith.constant 0 : i32
    %c0_i32_0 = arith.constant 0 : i32
    %c0_i32_1 = arith.constant 0 : i32
    %c0_i32_2 = arith.constant 0 : i32
    %c0_i32_3 = arith.constant 0 : i32
    return %c0_i32, %c0_i32_0, %c0_i32_1, %c0_i32_2 : i32, i32, i32, i32
  }
  func.func @transform_7(%arg0: i32) -> (i32, i32, i32, i32) {
    %c0_i32 = arith.constant 0 : i32
    %c0_i32_0 = arith.constant 0 : i32
    %c0_i32_1 = arith.constant 0 : i32
    %c0_i32_2 = arith.constant 0 : i32
    %c0_i32_3 = arith.constant 0 : i32
    return %c0_i32, %c0_i32_0, %c0_i32_1, %c0_i32_2 : i32, i32, i32, i32
  }
  func.func @transform_8(%arg0: i32) -> (i32, i32, i32, i32) {
    %c0_i32 = arith.constant 0 : i32
    %c0_i32_0 = arith.constant 0 : i32
    %c0_i32_1 = arith.constant 0 : i32
    %c0_i32_2 = arith.constant 0 : i32
    %c0_i32_3 = arith.constant 0 : i32
    return %c0_i32, %c0_i32_0, %c0_i32_1, %c0_i32_2 : i32, i32, i32, i32
  }
  func.func @transform_9(%arg0: i32) -> (i32, i32, i32, i32) {
    %c0_i32 = arith.constant 0 : i32
    %c0_i32_0 = arith.constant 0 : i32
    %c0_i32_1 = arith.constant 0 : i32
    %c0_i32_2 = arith.constant 0 : i32
    %c0_i32_3 = arith.constant 0 : i32
    return %c0_i32, %c0_i32_0, %c0_i32_1, %c0_i32_2 : i32, i32, i32, i32
  }
  func.func @transform_10(%arg0: i32) -> (i32, i32, i32, i32) {
    %c0_i32 = arith.constant 0 : i32
    %c0_i32_0 = arith.constant 0 : i32
    %c0_i32_1 = arith.constant 0 : i32
    %c0_i32_2 = arith.constant 0 : i32
    %c0_i32_3 = arith.constant 0 : i32
    return %c0_i32, %c0_i32_0, %c0_i32_1, %c0_i32_2 : i32, i32, i32, i32
  }
  func.func @transform_11(%arg0: i32) -> (i32, i32, i32, i32) {
    %c0_i32 = arith.constant 0 : i32
    %c0_i32_0 = arith.constant 0 : i32
    %c0_i32_1 = arith.constant 0 : i32
    %c0_i32_2 = arith.constant 0 : i32
    %c0_i32_3 = arith.constant 0 : i32
    return %c0_i32, %c0_i32_0, %c0_i32_1, %c0_i32_2 : i32, i32, i32, i32
  }
  func.func @transform_12(%arg0: i32) -> (i32, i32, i32, i32) {
    %c0_i32 = arith.constant 0 : i32
    %c0_i32_0 = arith.constant 0 : i32
    %c0_i32_1 = arith.constant 0 : i32
    %c0_i32_2 = arith.constant 0 : i32
    %c0_i32_3 = arith.constant 0 : i32
    return %c0_i32, %c0_i32_0, %c0_i32_1, %c0_i32_2 : i32, i32, i32, i32
  }
  func.func @transform_13(%arg0: i32) -> (i32, i32, i32, i32) {
    %c0_i32 = arith.constant 0 : i32
    %c0_i32_0 = arith.constant 0 : i32
    %c0_i32_1 = arith.constant 0 : i32
    %c0_i32_2 = arith.constant 0 : i32
    %c0_i32_3 = arith.constant 0 : i32
    return %c0_i32, %c0_i32_0, %c0_i32_1, %c0_i32_2 : i32, i32, i32, i32
  }
  func.func @transform_14(%arg0: i32) -> (i32, i32, i32, i32) {
    %c0_i32 = arith.constant 0 : i32
    %c0_i32_0 = arith.constant 0 : i32
    %c0_i32_1 = arith.constant 0 : i32
    %c0_i32_2 = arith.constant 0 : i32
    %c0_i32_3 = arith.constant 0 : i32
    return %c0_i32, %c0_i32_0, %c0_i32_1, %c0_i32_2 : i32, i32, i32, i32
  }
  func.func @transform_15(%arg0: i32) -> (i32, i32, i32, i32) {
    %c0_i32 = arith.constant 0 : i32
    %c0_i32_0 = arith.constant 0 : i32
    %c0_i32_1 = arith.constant 0 : i32
    %c0_i32_2 = arith.constant 0 : i32
    %c0_i32_3 = arith.constant 0 : i32
    return %c0_i32, %c0_i32_0, %c0_i32_1, %c0_i32_2 : i32, i32, i32, i32
  }
  func.func @transform_16(%arg0: i32) -> (i32, i32, i32, i32) {
    %c0_i32 = arith.constant 0 : i32
    %c0_i32_0 = arith.constant 0 : i32
    %c0_i32_1 = arith.constant 0 : i32
    %c0_i32_2 = arith.constant 0 : i32
    %c0_i32_3 = arith.constant 0 : i32
    return %c0_i32, %c0_i32_0, %c0_i32_1, %c0_i32_2 : i32, i32, i32, i32
  }
  func.func @transform_17(%arg0: i32) -> (i32, i32, i32) {
    %c0_i32 = arith.constant 0 : i32
    %c0_i32_0 = arith.constant 0 : i32
    %c0_i32_1 = arith.constant 0 : i32
    %c0_i32_2 = arith.constant 0 : i32
    return %c0_i32, %c0_i32_0, %c0_i32_1 : i32, i32, i32
  }
  func.func @transform_18(%arg0: i32) -> (i32, i32, i32) {
    %c0_i32 = arith.constant 0 : i32
    %c0_i32_0 = arith.constant 0 : i32
    %c0_i32_1 = arith.constant 0 : i32
    %c0_i32_2 = arith.constant 0 : i32
    return %c0_i32, %c0_i32_0, %c0_i32_1 : i32, i32, i32
  }
  func.func @transform_19(%arg0: i32) -> (i32, i32) {
    %c0_i32 = arith.constant 0 : i32
    %c0_i32_0 = arith.constant 0 : i32
    %c0_i32_1 = arith.constant 0 : i32
    return %c0_i32, %c0_i32_0 : i32, i32
  }
  func.func @transform_20(%arg0: i32) -> (i32, i32) {
    %c0_i32 = arith.constant 0 : i32
    %c0_i32_0 = arith.constant 0 : i32
    %c0_i32_1 = arith.constant 0 : i32
    return %c0_i32, %c0_i32_0 : i32, i32
  }
  func.func @transform_21(%arg0: i32) -> (i32, i32) {
    %c0_i32 = arith.constant 0 : i32
    %c0_i32_0 = arith.constant 0 : i32
    %c0_i32_1 = arith.constant 0 : i32
    return %c0_i32, %c0_i32_0 : i32, i32
  }
  func.func @transform_22(%arg0: i32) -> (i32, i32) {
    %c0_i32 = arith.constant 0 : i32
    %c0_i32_0 = arith.constant 0 : i32
    %c0_i32_1 = arith.constant 0 : i32
    return %c0_i32, %c0_i32_0 : i32, i32
  }
  func.func @transform_23(%arg0: i32) -> (i32, i32) {
    %c0_i32 = arith.constant 0 : i32
    %c0_i32_0 = arith.constant 0 : i32
    %c0_i32_1 = arith.constant 0 : i32
    return %c0_i32, %c0_i32_0 : i32, i32
  }
}

</mosaic_0001>

<bundles_post_ra>
// kernel: specific_shared_forward.1
= control target key start
LH: loop header
LB: loop body
LE: loop exit
PB: predicated region body
PF: predicated region fallthrough
CT: control target
= control target key end

     0   :  { %s6248_s0 = inlined_call_operand.vmem [shape: f32[16,32], index: 0, kind: input, shape index: {}]   ;;  %s6249_s1 = inlined_call_operand.vmem [shape: f32[1,32], index: 1, kind: input, shape index: {}]   ;;  %s6250_s2 = inlined_call_operand.vmem [shape: f32[1,32], index: 2, kind: input, shape index: {}]   ;;  %s6251_s3 = inlined_call_operand.vmem [shape: f32[1,16], index: 3, kind: input, shape index: {}]   ;;  %s6252_s4 = inlined_call_operand.vmem [shape: f32[16,16], index: 4, kind: input, shape index: {}]   ;;  %s6253_s5 = inlined_call_operand.vmem [shape: f32[2,2,32,96], index: 5, kind: input, shape index: {}]   ;;  %s6254_s6 = inlined_call_operand.vmem [shape: f32[2,2,1,96], index: 6, kind: input, shape index: {}]   ;;  %s6255_s7 = inlined_call_operand.vmem [shape: f32[2,2,32,32], index: 7, kind: input, shape index: {}]   ;;  %s6256_s8 = inlined_call_operand.vmem [shape: f32[2,2,1,32], index: 8, kind: input, shape index: {}]   ;;  %s6257_s9 = inlined_call_operand.vmem [shape: f32[2,2,1,32], index: 9, kind: input, shape index: {}]   ;;  %s6258_s10 = inlined_call_operand.vmem [shape: f32[2,2,1,32], index: 10, kind: input, shape index: {}]   ;;  %s6259_s11 = inlined_call_operand.vmem [shape: f32[2,2,32,64], index: 11, kind: input, shape index: {}]   ;;  %s6260_s12 = inlined_call_operand.vmem [shape: f32[2,2,1,64], index: 12, kind: input, shape index: {}]   ;;  %s6261_s13 = inlined_call_operand.vmem [shape: f32[2,2,64,32], index: 13, kind: input, shape index: {}]   ;;  %s6262_s14 = inlined_call_operand.vmem [shape: f32[2,2,1,32], index: 14, kind: input, shape index: {}]   ;;  %s6263_s15 = inlined_call_operand.vmem [shape: f32[2,2,1,32], index: 15, kind: input, shape index: {}]   ;;  %s6264_s16 = inlined_call_operand.vmem [shape: f32[2,2,1,32], index: 16, kind: input, shape index: {}]   ;;  %s6265_s17 = inlined_call_operand.vmem [shape: f32[2,32,32], index: 17, kind: input, shape index: {}]   ;;  %s6266_s18 = inlined_call_operand.vmem [shape: f32[2,1,32], index: 18, kind: input, shape index: {}]   ;;  %s6267_s19 = inlined_call_operand.vmem [shape: f32[64,3], index: 19, kind: input, shape index: {}]   ;;  %s6268_s20 = inlined_call_operand.vmem [shape: f32[1,3], index: 20, kind: input, shape index: {}]   ;;  %s6269_s21 = inlined_call_operand.hbm [shape: f32[2,3], index: 21, kind: output, shape index: {0}]   ;;  %s6270_s22 = inlined_call_operand.hbm [shape: f32[2,32], index: 22, kind: output, shape index: {1}]   ;;  %s6271_s23 = inlined_call_operand.hbm [shape: f32[2,32], index: 23, kind: output, shape index: {2}]  }
   0x1   :  { %6289 = sst [smem:[#allocation9_spill]] %s6248_s0 }
   0x2   :  { %6290 = sst [smem:[#allocation10_spill]] %s6249_s1 }
   0x3   :  { %6291 = sst [smem:[#allocation11_spill]] %s6250_s2 }
   0x4   :  { %6292 = sst [smem:[#allocation12_spill]] %s6251_s3 }
   0x5   :  { %6293 = sst [smem:[#allocation13_spill]] %s6252_s4 }
   0x6   :  { %6294 = sst [smem:[#allocation14_spill]] %s6253_s5 }
   0x7   :  { %6295 = sst [smem:[#allocation15_spill]] %s6254_s6 }
   0x8   :  { %6296 = sst [smem:[#allocation16_spill]] %s6255_s7 }
   0x9   :  { %6297 = sst [smem:[#allocation17_spill]] %s6269_s21 }
   0xa   :  { %29 = vsyncpa [#allocation3], 0  ;;  %s6298_s24 = sld [smem:[#allocation9_spill]]  ;;  %vm77_vm0 = vcmask 261120  }
  0x10   :  { %v73_v0 = vld [vmem:[%s6298_s24] sm:$0xff]  ;;  %v74_v1 = vld [vmem:[%s6298_s24 + $0x8] sm:$0xff] }
  0x11   :  { %30 = vsyncpa [#allocation5], 0  ;;  %v78_v2 = vsel %vm77_vm0, %v73_v0, 0.0  ;;  %v81_v3 = vsel %vm77_vm0, %v74_v1, 0.0  ;;  %s6299_s2 = sld [smem:[#allocation14_spill]]  ;;  %s6300_s30 = sld [smem:[#allocation10_spill]] }
  0x12   :  { %79 = vadd.xlane.f32.xlu0 %v78_v2  ;;  %s6301_s5 = sld [smem:[#allocation11_spill]]  ;;  %s6302_s6 = sld [smem:[#allocation15_spill]]  ;;  %vm230_vm1 = vcmask 130048   ;;  %vm896_vm3 = vcmask 523264   ;;  %vm5364_vm4 = vmmov 0   ;;  %vm1929_vm5 = vcmask 1040384  }
  0x13   :  { %s6287_s27 = smov 80   ;;  %s6285_s7 = smov 96   ;;  %vm5540_vm2 = vmpackc.low %vm230_vm1, %vm230_vm1  ;;  %vm3905_vm6 = vcmask 254976  }
  0x14   :  { %s6283_s28 = smov 112   ;;  %s6305_s0 = sld [smem:[#allocation13_spill]] }
  0x15   :  { %s6306_s24 = sld [smem:[#allocation12_spill]]  ;;  %s6281_s1 = smov 48  }
  0x16   :  { %82 = vadd.xlane.f32.xlu0 %v81_v3  ;;  %s6277_s26 = smov 64   ;;  %s6279_s29 = smov 16  }
  0x17   :  { %v132_v14 = vld [vmem:[%s6299_s2] sm:$0xff]  ;;  %v133_v15 = vld [vmem:[%s6299_s2 + $0x8] sm:$0xff]  ;;  %v134_v16 = vld [vmem:[%s6299_s2 + $0x10] sm:$0xff]  ;;  %s6309_s3 = smov 16   ;;  %s6312_s4 = smov 48  }
  0x18   :  { %v4810_v17 = vpack.c.bf16 %v133_v15, %v132_v14  ;;  %v135_v18 = vld [vmem:[%s6299_s2 + $0x18] sm:$0xff]  ;;  %v4044_v27 = vld [vmem:[%s6300_s30] ss:$0 sm:$0xff]  ;;  %s6313_s25 = smov 80  }
  0x19   :  { %v4814_v19 = vpack.c.bf16 %v135_v18, %v134_v16  ;;  %v4045_v29 = vld [vmem:[%s6301_s5] ss:$0 sm:$0xff]  ;;  %s6310_s5 = smov 96  }
  0x1a   :  { %4811 = vmatprep.subr.bf16.mxu0 %v4810_v17  ;;  %v4047_v36 = vld [vmem:[%s6302_s6] ss:$0 sm:$0xff]  ;;  %v122_v53 = vld [vmem:[%s6305_s0 + $0x8] sm:$0xff] }
  0x1b   :  { %4813 = vmatpush3.bf16.msra.mxu0 %v4810_v17  ;;  %v4046_v54 = vld [vmem:[%s6306_s24] ss:$0 sm:$0xff] }
  0x1c   :  { %4815 = vmatprep.subr.bf16.mxu0 %v4814_v19  ;;  %v121_v55 = vld [vmem:[%s6305_s0] sm:$0xff]  ;;  %v5564_v56 = vadd.f32 %v4046_v54, %v122_v53  ;;  %s6307_s0 = sld [smem:[#allocation16_spill]] }
  0x1d   :  { %v5566_v57 = vadd.f32 %v4046_v54, %v121_v55 }
  0x1f   :  { %4817 = vmatpush3.bf16.msra.mxu0 %v4814_v19 }
  0x22   :  { %v636_v53 = vld [vmem:[%s6307_s0 + $0x18] sm:$0xff] }
  0x9f   :  { %v80_v4 = vpop.xlane.xlu0 %79 }
  0xa0   :  { %v85_v5 = vmul.f32 0.03125, %v80_v4 }
  0xa2   :  { %v87_v6 = vsub.f32 %v73_v0, %v85_v5 }
  0xa3   :  { %v83_v7 = vpop.xlane.xlu0 %82 }
  0xa4   :  { %v86_v8 = vmul.f32 0.03125, %v83_v7  ;;  %v89_v9 = vmul.f32 %v87_v6, %v87_v6 }
  0xa6   :  { %v88_v10 = vsub.f32 %v74_v1, %v86_v8  ;;  %v91_v11 = vsel %vm77_vm0, %v89_v9, 0.0 }
  0xa7   :  { %92 = vadd.xlane.f32.xlu1 %v91_v11 }
  0xa8   :  { %v90_v12 = vmul.f32 %v88_v10, %v88_v10 }
  0xaa   :  { %v94_v13 = vsel %vm77_vm0, %v90_v12, 0.0 }
  0xab   :  { %95 = vadd.xlane.f32.xlu1 %v94_v13 }
 0x134   :  { %v93_v20 = vpop.xlane.xlu1 %92 }
 0x135   :  { %v97_v21 = vmul.f32 0.03125, %v93_v20 }
 0x137   :  { %v99_v22 = vadd.f32 1e-12, %v97_v21 }
 0x138   :  { %v96_v23 = vpop.xlane.xlu1 %95 }
 0x139   :  { %5167 = vrsqrt.f32 %v99_v22  ;;  %v98_v24 = vmul.f32 0.03125, %v96_v23 }
 0x13b   :  { %v100_v25 = vadd.f32 1e-12, %v98_v24 }
 0x13d   :  { %5169 = vrsqrt.f32 %v100_v25 }
 0x143   :  { %v5168_v26 = vpop.eup %5167 }
 0x144   :  { %v103_v28 = vmul.f32 %v5168_v26, %v87_v6 }
 0x146   :  { %v111_v30 = vmul.f32 %v4044_v27, %v103_v28 }
 0x147   :  { %v5170_v31 = vpop.eup %5169 }
 0x148   :  { %v5518_v32 = vadd.f32 %v4045_v29, %v111_v30  ;;  %v104_v33 = vmul.f32 %v5170_v31, %v88_v10 }
 0x14a   :  { %4457 = vmatprep.mubr.msk.f32.mxu0 %vm77_vm0, %v5518_v32  ;;  %v112_v34 = vmul.f32 %v4044_v27, %v104_v33 }
 0x14c   :  { %v5522_v35 = vadd.f32 %v4045_v29, %v112_v34 }
 0x14e   :  { %4458 = vmatmul.mubr.msk.f32.vlgmr.msra.gmra.mrb[0].mxu0 %vm77_vm0, %v5522_v35 }
 0x221   :  { %v4459_v37 = vpop.f32.mrb[0].mxu0 }
 0x222   :  { %v221_v38 = vadd.f32 %v4459_v37, %v4047_v36  ;;  %v215_v39 = vpop.f32.mrb[1].mxu0 }
 0x223   :  { %v216_v40 = vadd.f32 %v4047_v36, %v215_v39 }
 0x225   :  { %4464 = vmatprep.mubr.msk.f32.mxu1 %vm230_vm1, %v216_v40  ;;  %v5530_v41 = vpack.i.bf16 %v221_v38, %v216_v40 }
 0x227   :  { %5093 = vrot.lane.b32.xlu1 %v5530_v41, %s6287_s27  ;;  %5088 = vrot.lane.b32.xlu0 %v5530_v41, %s6285_s7 }
 0x22b   :  { %423 = vrot.lane.b32.xlu1 %v216_v40, %s6283_s28 }
 0x22f   :  { %425 = vrot.lane.b32.xlu1 %v221_v38, %s6283_s28 }
 0x299   :  { %v5094_v42 = vpop.permute.xlu1 %5093  ;;  %v5089_v43 = vpop.permute.xlu0 %5088 }
 0x29a   :  { %v5096_v44 = vunpack.i.h.bf16 %v5094_v42  ;;  %v5095_v45 = vunpack.i.l.bf16 %v5094_v42  ;;  %v5091_v46 = vunpack.i.h.bf16 %v5089_v43  ;;  %v5090_v47 = vunpack.i.l.bf16 %v5089_v43 }
 0x29c   :  { %v4818_v49 = vpack.c.bf16 %v5091_v46, %v5090_v47  ;;  %v4828_v50 = vpack.c.bf16 %v5096_v44, %v5095_v45 }
 0x29d   :  { %v424_v51 = vpop.permute.xlu1 %423 }
 0x29e   :  { %4820 = vmatprep.subr.msk.bf16.mxu1 %vm5540_vm2, %v4818_v49 }
 0x29f   :  { %4823 = vmatpush3.bf16.xpose.msk.msra.mxu1 %vm5540_vm2, %v4818_v49  ;;  %v633_v49 = vld [vmem:[%s6307_s0] sm:$0xff] }
 0x2a0   :  { %4830 = vmatprep.subr.msk.bf16.mxu1 %vm5540_vm2, %v4828_v50 }
 0x2a1   :  { %v426_v52 = vpop.permute.xlu1 %425 }
 0x2a6   :  { %4465 = vmatmul.mubr.msk.f32.vlgmr.msra.gmra.mrb[0].mxu1 %vm230_vm1, %v221_v38 }
 0x2a7   :  { %4833 = vmatpush3.bf16.xpose.msk.msra.mxu1 %vm5540_vm2, %v4828_v50  ;;  %4478 = vmatprep.mubr.msk.f32.mxu1 %vm230_vm1, %v424_v51  ;;  %v634_v50 = vld [vmem:[%s6307_s0 + $0x8] sm:$0xff] }
 0x2a8   :  { %v4838_v51 = vpack.c.bf16 %v634_v50, %v633_v49  ;;  %v884_v49 = vld [vmem:[%s6261_s13 + $0x18] sm:$0xff] }
 0x2ae   :  { %4479 = vmatmul.mubr.msk.f32.vlgmr.msra.gmra.mrb[2].mxu1 %vm230_vm1, %v426_v52  ;;  %v635_v52 = vld [vmem:[%s6307_s0 + $0x10] sm:$0xff] }
 0x2af   :  { %v4842_v54 = vpack.c.bf16 %v636_v53, %v635_v52  ;;  %v886_v52 = vld [vmem:[%s6261_s13 + $0x28] sm:$0xff] }
 0x379   :  { %v4466_v58 = vpop.f32.mrb[0].mxu1 }
 0x37a   :  { %v311_v59 = vadd.f32 %v4466_v58, %v5564_v56  ;;  %v305_v60 = vpop.f32.mrb[1].mxu1 }
 0x37b   :  { %v306_v61 = vadd.f32 %v305_v60, %v5566_v57 }
 0x37c   :  { %v317_v62 = vsel %vm230_vm1, %v311_v59, -inf }
 0x37d   :  { %318 = vmax.xlane.f32.xlu1 %v317_v62  ;;  %v314_v63 = vsel %vm230_vm1, %v306_v61, -inf }
 0x37e   :  { %315 = vmax.xlane.f32.xlu0 %v314_v63 }
 0x381   :  { %v4480_v0 = vpop.f32.mrb[2].mxu1 }
 0x382   :  { %v505_v1 = vpop.f32.mrb[3].mxu1  ;;  %v511_v3 = vadd.f32 %v4480_v0, %v5564_v56 }
 0x383   :  { %v506_v2 = vadd.f32 %v505_v1, %v5566_v57  ;;  %v4062_v1 = vld [vmem:[%s6256_s8] ss:$0 sm:$0xff] }
 0x384   :  { %v517_v5 = vsel %vm230_vm1, %v511_v3, -inf }
 0x385   :  { %v514_v4 = vsel %vm230_vm1, %v506_v2, -inf }
 0x386   :  { %515 = vmax.xlane.f32.xlu0 %v514_v4 }
 0x38a   :  { %518 = vmax.xlane.f32.xlu0 %v517_v5 }
 0x40a   :  { %v319_v6 = vpop.xlane.xlu1 %318 }
 0x40b   :  { %v321_v7 = vsub.f32 %v311_v59, %v319_v6  ;;  %v316_v8 = vpop.xlane.xlu0 %315 }
 0x40c   :  { %v320_v9 = vsub.f32 %v306_v61, %v316_v8 }
 0x40d   :  { %v324_v10 = vmul.f32 1.442695, %v321_v7 }
 0x40e   :  { %v322_v11 = vmul.f32 1.442695, %v320_v9 }
 0x40f   :  { %5171 = vpow2.f32 %v324_v10 }
 0x410   :  { %5173 = vpow2.f32 %v322_v11 }
 0x413   :  { %v516_v12 = vpop.xlane.xlu0 %515 }
 0x414   :  { %v520_v13 = vsub.f32 %v506_v2, %v516_v12 }
 0x416   :  { %v522_v14 = vmul.f32 1.442695, %v520_v13 }
 0x417   :  { %v519_v15 = vpop.xlane.xlu0 %518 }
 0x418   :  { %5175 = vpow2.f32 %v522_v14  ;;  %v521_v16 = vsub.f32 %v511_v3, %v519_v15 }
 0x419   :  { %v5172_v17 = vpop.eup %5171 }
 0x41a   :  { %v5174_v18 = vpop.eup %5173  ;;  %v524_v19 = vmul.f32 1.442695, %v521_v16  ;;  %v329_v20 = vsel %vm230_vm1, %v5172_v17, 0.0 }
 0x41b   :  { %330 = vadd.xlane.f32.xlu1 %v329_v20  ;;  %v326_v21 = vsel %vm230_vm1, %v5174_v18, 0.0  ;;  %v771_v20 = vld [vmem:[%s6259_s11] sm:$0xff] }
 0x41c   :  { %5177 = vpow2.f32 %v524_v19  ;;  %327 = vadd.xlane.f32.xlu0 %v326_v21  ;;  %v772_v21 = vld [vmem:[%s6259_s11 + $0x8] sm:$0xff] }
 0x422   :  { %v5176_v22 = vpop.eup %5175 }
 0x423   :  { %v526_v23 = vsel %vm230_vm1, %v5176_v22, 0.0 }
 0x424   :  { %527 = vadd.xlane.f32.xlu0 %v526_v23  ;;  %v773_v23 = vld [vmem:[%s6259_s11 + $0x10] sm:$0xff] }
 0x426   :  { %v5178_v24 = vpop.eup %5177 }
 0x427   :  { %v529_v25 = vsel %vm230_vm1, %v5178_v24, 0.0 }
 0x428   :  { %530 = vadd.xlane.f32.xlu1 %v529_v25 }
 0x439   :  { %5103 = vrot.lane.b32.xlu1 %v5530_v41, %s6281_s1 }
 0x43a   :  { %5098 = vrot.lane.b32.xlu0 %v5530_v41, %s6277_s26  ;;  %s6308_s26 = smov 64  }
 0x4a8   :  { %v331_v27 = vpop.xlane.xlu1 %330 }
 0x4a9   :  { %v328_v26 = vpop.xlane.xlu0 %327 }
 0x4aa   :  { %5179 = vrcp.f32 %v328_v26 }
 0x4ab   :  { %5181 = vrcp.f32 %v331_v27 }
 0x4b1   :  { %v528_v28 = vpop.xlane.xlu0 %527 }
 0x4b2   :  { %5183 = vrcp.f32 %v528_v28 }
 0x4b4   :  { %v5180_v29 = vpop.eup %5179 }
 0x4b5   :  { %v531_v30 = vpop.xlane.xlu1 %530  ;;  %v5099_v31 = vpop.permute.xlu0 %5098  ;;  %v334_v33 = vmul.f32 %v5180_v29, %v5174_v18 }
 0x4b6   :  { %5185 = vrcp.f32 %v531_v30  ;;  %v5101_v34 = vunpack.i.h.bf16 %v5099_v31  ;;  %v5100_v36 = vunpack.i.l.bf16 %v5099_v31  ;;  %v5182_v38 = vpop.eup %5181 }
 0x4b7   :  { %4471 = vmatprep.mubr.msk.f32.mxu0 %vm230_vm1, %v334_v33  ;;  %v335_v43 = vmul.f32 %v5182_v38, %v5172_v17 }
 0x4b8   :  { %v4824_v37 = vpack.c.bf16 %v5101_v34, %v5100_v36  ;;  %v4065_v34 = vld [vmem:[%s6257_s9] ss:$0 sm:$0xff] }
 0x4b9   :  { %v5104_v39 = vpop.permute.xlu1 %5103 }
 0x4ba   :  { %v5106_v40 = vunpack.i.h.bf16 %v5104_v39  ;;  %v5105_v41 = vunpack.i.l.bf16 %v5104_v39  ;;  %4825 = vmatprep.subr.bf16.mxu0 %v4824_v37 }
 0x4bb   :  { %4827 = vmatpush3.bf16.msra.mxu0 %v4824_v37  ;;  %v4066_v37 = vld [vmem:[%s6258_s10] ss:$0 sm:$0xff] }
 0x4bc   :  { %v5184_v42 = vpop.eup %5183  ;;  %v4834_v44 = vpack.c.bf16 %v5106_v40, %v5105_v41 }
 0x4bd   :  { %v534_v45 = vmul.f32 %v5184_v42, %v5176_v22  ;;  %v4846_v22 = vpack.c.bf16 %v772_v21, %v771_v20 }
 0x4be   :  { %4472 = vmatmul.mubr.msk.f32.vlgmr.msra.gmra.mrb[2].mxu0 %vm230_vm1, %v335_v43  ;;  %4835 = vmatprep.subr.bf16.mxu0 %v4834_v44 }
 0x4bf   :  { %4837 = vmatpush3.bf16.msra.mxu0 %v4834_v44  ;;  %4485 = vmatprep.mubr.msk.f32.mxu0 %vm230_vm1, %v534_v45  ;;  %v881_v44 = vld [vmem:[%s6261_s13] sm:$0xff]  ;;  %v882_v45 = vld [vmem:[%s6261_s13 + $0x8] sm:$0xff] }
 0x4c0   :  { %v5186_v46 = vpop.eup %5185  ;;  %4839 = vmatprep.subr.bf16.mxu0 %v4838_v51  ;;  %4847 = vmatprep.subr.bf16.mxu1 %v4846_v22 }
 0x4c1   :  { %v535_v47 = vmul.f32 %v5186_v46, %v5178_v24  ;;  %4849 = vmatpush3.bf16.msra.mxu1 %v4846_v22  ;;  %v774_v24 = vld [vmem:[%s6259_s11 + $0x18] sm:$0xff]  ;;  %v4854_v46 = vpack.c.bf16 %v882_v45, %v881_v44 }
 0x4c2   :  { %v4850_v25 = vpack.c.bf16 %v774_v24, %v773_v23 }
 0x4c3   :  { %4486 = vmatmul.mubr.msk.f32.vlgmr.msra.gmra.mrb[4].mxu0 %vm230_vm1, %v535_v47  ;;  %v883_v47 = vld [vmem:[%s6261_s13 + $0x10] sm:$0xff] }
 0x4c4   :  { %4841 = vmatpush3.bf16.msra.mxu0 %v4838_v51  ;;  %4851 = vmatprep.subr.bf16.mxu1 %v4850_v25  ;;  %v4858_v50 = vpack.c.bf16 %v884_v49, %v883_v47  ;;  %v885_v51 = vld [vmem:[%s6261_s13 + $0x20] sm:$0xff] }
 0x4c5   :  { %4843 = vmatprep.subr.bf16.mxu0 %v4842_v54  ;;  %4853 = vmatpush3.bf16.msra.mxu1 %v4850_v25  ;;  %v4862_v53 = vpack.c.bf16 %v886_v52, %v885_v51 }
 0x4c8   :  { %4845 = vmatpush3.bf16.msra.mxu0 %v4842_v54  ;;  %v887_v54 = vld [vmem:[%s6261_s13 + $0x30] sm:$0xff] }
 0x4c9   :  { %4855 = vmatprep.subr.bf16.mxu0 %v4854_v46 }
 0x591   :  { %v4473_v55 = vpop.f32.mrb[2].mxu0 }
 0x592   :  { %v414_v58 = vpop.f32.mrb[3].mxu0 }
 0x596   :  { %v4487_v59 = vpop.f32.mrb[4].mxu0 }
 0x597   :  { %v614_v60 = vpop.f32.mrb[5].mxu0 }
 0x598   :  { %625 = vrot.lane.b32.xlu1 %v614_v60, %s6279_s29 }
 0x59c   :  { %627 = vrot.lane.b32.xlu1 %v4487_v59, %s6279_s29  ;;  %v4067_v59 = vld [vmem:[%s6260_s12] ss:$0 sm:$0xff] }
 0x60a   :  { %v626_v61 = vpop.permute.xlu1 %625 }
 0x60b   :  { %v631_v62 = vsel %vm230_vm1, %v414_v58, %v626_v61 }
 0x60c   :  { %4496 = vmatprep.mubr.msk.f32.mxu0 %vm77_vm0, %v631_v62 }
 0x60e   :  { %v628_v63 = vpop.permute.xlu1 %627 }
 0x60f   :  { %v632_v0 = vsel %vm230_vm1, %v4473_v55, %v628_v63  ;;  %v888_v55 = vld [vmem:[%s6261_s13 + $0x38] sm:$0xff] }
 0x610   :  { %4497 = vmatmul.mubr.msk.f32.vlgmr.msra.gmra.mrb[6].mxu0 %vm77_vm0, %v632_v0  ;;  %v4866_v58 = vpack.c.bf16 %v888_v55, %v887_v54 }
 0x611   :  { %4857 = vmatpush3.bf16.msra.mxu0 %v4854_v46 }
 0x612   :  { %4859 = vmatprep.subr.bf16.mxu0 %v4858_v50 }
 0x615   :  { %4861 = vmatpush3.bf16.msra.mxu0 %v4858_v50 }
 0x616   :  { %4863 = vmatprep.subr.bf16.mxu0 %v4862_v53 }
 0x619   :  { %4865 = vmatpush3.bf16.msra.mxu0 %v4862_v53  ;;  %v4073_v53 = vld [vmem:[%s6263_s15] ss:$0 sm:$0xff] }
 0x61a   :  { %4867 = vmatprep.subr.bf16.mxu0 %v4866_v58 }
 0x61d   :  { %4869 = vmatpush3.bf16.msra.mxu0 %v4866_v58 }
 0x6e3   :  { %v4498_v2 = vpop.f32.mrb[6].mxu0 }
 0x6e4   :  { %v722_v3 = vadd.f32 %v4498_v2, %v4062_v1  ;;  %v716_v4 = vpop.f32.mrb[7].mxu0 }
 0x6e5   :  { %v717_v5 = vadd.f32 %v4062_v1, %v716_v4 }
 0x6e6   :  { %v726_v6 = vadd.f32 %v722_v3, %v5522_v35 }
 0x6e7   :  { %v725_v7 = vadd.f32 %v717_v5, %v5518_v32 }
 0x6e8   :  { %v732_v8 = vsel %vm77_vm0, %v726_v6, 0.0 }
 0x6e9   :  { %733 = vadd.xlane.f32.xlu1 %v732_v8  ;;  %v729_v9 = vsel %vm77_vm0, %v725_v7, 0.0 }
 0x6ea   :  { %730 = vadd.xlane.f32.xlu0 %v729_v9 }
 0x776   :  { %v734_v10 = vpop.xlane.xlu1 %733 }
 0x777   :  { %v736_v11 = vmul.f32 0.03125, %v734_v10  ;;  %v731_v12 = vpop.xlane.xlu0 %730 }
 0x778   :  { %v735_v13 = vmul.f32 0.03125, %v731_v12 }
 0x779   :  { %v738_v14 = vsub.f32 %v726_v6, %v736_v11 }
 0x77a   :  { %v737_v15 = vsub.f32 %v725_v7, %v735_v13 }
 0x77b   :  { %v740_v18 = vmul.f32 %v738_v14, %v738_v14 }
 0x77c   :  { %v739_v16 = vmul.f32 %v737_v15, %v737_v15 }
 0x77d   :  { %v744_v19 = vsel %vm77_vm0, %v740_v18, 0.0  ;;  %v4070_v18 = vld [vmem:[%s6262_s14] ss:$0 sm:$0xff] }
 0x77e   :  { %v741_v17 = vsel %vm77_vm0, %v739_v16, 0.0 }
 0x77f   :  { %742 = vadd.xlane.f32.xlu0 %v741_v17 }
 0x783   :  { %745 = vadd.xlane.f32.xlu0 %v744_v19 }
 0x80c   :  { %v743_v26 = vpop.xlane.xlu0 %742 }
 0x80d   :  { %v747_v27 = vmul.f32 0.03125, %v743_v26 }
 0x80f   :  { %v749_v28 = vadd.f32 1e-12, %v747_v27 }
 0x810   :  { %v746_v29 = vpop.xlane.xlu0 %745 }
 0x811   :  { %5187 = vrsqrt.f32 %v749_v28  ;;  %v748_v30 = vmul.f32 0.03125, %v746_v29 }
 0x813   :  { %v750_v31 = vadd.f32 1e-12, %v748_v30 }
 0x815   :  { %5189 = vrsqrt.f32 %v750_v31 }
 0x81b   :  { %v5188_v33 = vpop.eup %5187 }
 0x81c   :  { %v753_v36 = vmul.f32 %v5188_v33, %v737_v15 }
 0x81e   :  { %v761_v38 = vmul.f32 %v4065_v34, %v753_v36 }
 0x81f   :  { %v5190_v39 = vpop.eup %5189 }
 0x820   :  { %v754_v40 = vmul.f32 %v5190_v39, %v738_v14  ;;  %v769_v41 = vadd.f32 %v4066_v37, %v761_v38  ;;  %v4075_v39 = vld [vmem:[%s6299_s2 + $0x20] sm:$0xff] }
 0x822   :  { %v762_v42 = vmul.f32 %v4065_v34, %v754_v40  ;;  %4507 = vmatprep.mubr.msk.f32.mxu1 %vm77_vm0, %v769_v41  ;;  %v4076_v40 = vld [vmem:[%s6299_s2 + $0x28] sm:$0xff] }
 0x824   :  { %v770_v43 = vadd.f32 %v4066_v37, %v762_v42  ;;  %v4077_v42 = vld [vmem:[%s6299_s2 + $0x30] sm:$0xff] }
 0x826   :  { %4508 = vmatmul.mubr.msk.f32.vlgmr.msra.gmra.mrb[4].mxu1 %vm77_vm0, %v770_v43 }
 0x8f9   :  { %v4509_v60 = vpop.f32.mrb[4].mxu1 }
 0x8fa   :  { %v860_v61 = vadd.f32 %v4509_v60, %v4067_v59  ;;  %v854_v62 = vpop.f32.mrb[5].mxu1 }
 0x8fb   :  { %v855_v63 = vadd.f32 %v4067_v59, %v854_v62  ;;  %v4074_v59 = vld [vmem:[%s6264_s16] ss:$0 sm:$0xff] }
 0x8fc   :  { %v864_v0 = vmul.f32 %v860_v61, %v860_v61 }
 0x8fd   :  { %v863_v1 = vmul.f32 %v855_v63, %v855_v63 }
 0x8fe   :  { %v866_v2 = vmul.f32 %v864_v0, %v860_v61  ;;  %v4080_v0 = vld [vmem:[%s6302_s6 + $0x1] ss:$0 sm:$0xff] }
 0x8ff   :  { %v865_v3 = vmul.f32 %v863_v1, %v855_v63 }
 0x900   :  { %v868_v4 = vmul.f32 0.044715, %v866_v2 }
 0x901   :  { %v867_v5 = vmul.f32 0.044715, %v865_v3 }
 0x902   :  { %v870_v6 = vadd.f32 %v868_v4, %v860_v61 }
 0x903   :  { %v869_v7 = vadd.f32 %v867_v5, %v855_v63 }
 0x904   :  { %v872_v8 = vmul.f32 0.7978846, %v870_v6 }
 0x905   :  { %v871_v9 = vmul.f32 0.7978846, %v869_v7 }
 0x906   :  { %5191 = vtanh.f32 %v872_v8 }
 0x907   :  { %5193 = vtanh.f32 %v871_v9 }
 0x910   :  { %v5192_v10 = vpop.eup %5191 }
 0x911   :  { %v5194_v11 = vpop.eup %5193  ;;  %v876_v12 = vadd.f32 1.0, %v5192_v10 }
 0x912   :  { %v875_v13 = vadd.f32 1.0, %v5194_v11 }
 0x913   :  { %v878_v14 = vmul.f32 0.5, %v876_v12 }
 0x914   :  { %v877_v15 = vmul.f32 0.5, %v875_v13 }
 0x915   :  { %v880_v17 = vmul.f32 %v878_v14, %v860_v61 }
 0x916   :  { %v879_v16 = vmul.f32 %v877_v15, %v855_v63 }
 0x918   :  { %4526 = vmatprep.mubr.msk.f32.mxu0 %vm896_vm3, %v879_v16 }
 0x919   :  { %4527 = vmatmul.mubr.msk.f32.vlgmr.msra.gmra.mrb[8].mxu0 %vm896_vm3, %v880_v17 }
 0x9ec   :  { %v4528_v19 = vpop.f32.mrb[8].mxu0 }
 0x9ed   :  { %v975_v20 = vadd.f32 %v4528_v19, %v4070_v18  ;;  %v969_v21 = vpop.f32.mrb[9].mxu0 }
 0x9ee   :  { %v970_v22 = vadd.f32 %v4070_v18, %v969_v21 }
 0x9ef   :  { %v979_v23 = vadd.f32 %v975_v20, %v770_v43  ;;  %v4078_v43 = vld [vmem:[%s6299_s2 + $0x38] sm:$0xff] }
 0x9f0   :  { %v978_v24 = vadd.f32 %v970_v22, %v769_v41  ;;  %v4870_v41 = vpack.c.bf16 %v4076_v40, %v4075_v39  ;;  %v4874_v44 = vpack.c.bf16 %v4078_v43, %v4077_v42 }
 0x9f1   :  { %v985_v25 = vsel %vm77_vm0, %v979_v23, 0.0 }
 0x9f2   :  { %986 = vadd.xlane.f32.xlu1 %v985_v25  ;;  %v982_v26 = vsel %vm77_vm0, %v978_v24, 0.0  ;;  %4871 = vmatprep.subr.bf16.mxu1 %v4870_v41 }
 0x9f3   :  { %983 = vadd.xlane.f32.xlu0 %v982_v26  ;;  %4873 = vmatpush3.bf16.msra.mxu1 %v4870_v41 }
 0x9f4   :  { %4875 = vmatprep.subr.bf16.mxu1 %v4874_v44 }
 0x9f7   :  { %4877 = vmatpush3.bf16.msra.mxu1 %v4874_v44 }
 0xa7f   :  { %v987_v27 = vpop.xlane.xlu1 %986 }
 0xa80   :  { %v989_v28 = vmul.f32 0.03125, %v987_v27  ;;  %v984_v29 = vpop.xlane.xlu0 %983 }
 0xa81   :  { %v988_v30 = vmul.f32 0.03125, %v984_v29 }
 0xa82   :  { %v991_v31 = vsub.f32 %v979_v23, %v989_v28 }
 0xa83   :  { %v990_v33 = vsub.f32 %v978_v24, %v988_v30 }
 0xa84   :  { %v993_v34 = vmul.f32 %v991_v31, %v991_v31 }
 0xa85   :  { %v992_v36 = vmul.f32 %v990_v33, %v990_v33 }
 0xa86   :  { %v997_v37 = vsel %vm77_vm0, %v993_v34, 0.0 }
 0xa87   :  { %998 = vadd.xlane.f32.xlu1 %v997_v37  ;;  %v994_v38 = vsel %vm77_vm0, %v992_v36, 0.0 }
 0xa88   :  { %995 = vadd.xlane.f32.xlu0 %v994_v38 }
 0xb14   :  { %v999_v45 = vpop.xlane.xlu1 %998 }
 0xb15   :  { %v1001_v46 = vmul.f32 0.03125, %v999_v45  ;;  %v996_v47 = vpop.xlane.xlu0 %995 }
 0xb16   :  { %v1000_v49 = vmul.f32 0.03125, %v996_v47 }
 0xb17   :  { %v1003_v50 = vadd.f32 1e-12, %v1001_v46 }
 0xb18   :  { %v1002_v51 = vadd.f32 1e-12, %v1000_v49 }
 0xb19   :  { %5195 = vrsqrt.f32 %v1003_v50 }
 0xb1a   :  { %5197 = vrsqrt.f32 %v1002_v51 }
 0xb23   :  { %v5196_v52 = vpop.eup %5195 }
 0xb24   :  { %v5198_v54 = vpop.eup %5197  ;;  %v1007_v55 = vmul.f32 %v5196_v52, %v991_v31 }
 0xb25   :  { %v1006_v58 = vmul.f32 %v5198_v54, %v990_v33 }
 0xb26   :  { %v1015_v60 = vmul.f32 %v4073_v53, %v1007_v55 }
 0xb27   :  { %v1014_v61 = vmul.f32 %v4073_v53, %v1006_v58 }
 0xb28   :  { %v5691_v63 = vadd.f32 %v4074_v59, %v1015_v60 }
 0xb29   :  { %v5689_v62 = vadd.f32 %v4074_v59, %v1014_v61 }
 0xb2b   :  { %4537 = vmatprep.mubr.msk.f32.mxu1 %vm77_vm0, %v5689_v62 }
 0xb2c   :  { %4538 = vmatmul.mubr.msk.f32.vlgmr.msra.gmra.mrb[6].mxu1 %vm77_vm0, %v5691_v63 }
 0xbff   :  { %v4539_v1 = vpop.f32.mrb[6].mxu1 }
 0xc00   :  { %v1115_v2 = vadd.f32 %v4539_v1, %v4080_v0  ;;  %v1109_v3 = vpop.f32.mrb[7].mxu1 }
 0xc01   :  { %v1110_v4 = vadd.f32 %v4080_v0, %v1109_v3 }
 0xc03   :  { %4544 = vmatprep.mubr.msk.f32.mxu1 %vm230_vm1, %v1110_v4  ;;  %v5701_v5 = vpack.i.bf16 %v1115_v2, %v1110_v4 }
 0xc05   :  { %5113 = vrot.lane.b32.xlu1 %v5701_v5, %s6287_s27  ;;  %5108 = vrot.lane.b32.xlu0 %v5701_v5, %s6285_s7 }
 0xc09   :  { %1316 = vrot.lane.b32.xlu1 %v1110_v4, %s6283_s28 }
 0xc0d   :  { %1318 = vrot.lane.b32.xlu1 %v1115_v2, %s6283_s28 }
 0xc77   :  { %v5114_v6 = vpop.permute.xlu1 %5113  ;;  %v5109_v7 = vpop.permute.xlu0 %5108 }
 0xc78   :  { %v5116_v8 = vunpack.i.h.bf16 %v5114_v6  ;;  %v5115_v9 = vunpack.i.l.bf16 %v5114_v6  ;;  %v5111_v10 = vunpack.i.h.bf16 %v5109_v7  ;;  %v5110_v11 = vunpack.i.l.bf16 %v5109_v7 }
 0xc7a   :  { %v4878_v12 = vpack.c.bf16 %v5111_v10, %v5110_v11  ;;  %v4888_v13 = vpack.c.bf16 %v5116_v8, %v5115_v9  ;;  %v4095_v11 = vld [vmem:[%s6307_s0 + $0x20] sm:$0xff] }
 0xc7b   :  { %v1317_v14 = vpop.permute.xlu1 %1316 }
 0xc7c   :  { %4880 = vmatprep.subr.msk.bf16.mxu1 %vm5540_vm2, %v4878_v12 }
 0xc7d   :  { %4883 = vmatpush3.bf16.xpose.msk.msra.mxu1 %vm5540_vm2, %v4878_v12  ;;  %v4096_v12 = vld [vmem:[%s6307_s0 + $0x28] sm:$0xff] }
 0xc7e   :  { %4890 = vmatprep.subr.msk.bf16.mxu1 %vm5540_vm2, %v4888_v13 }
 0xc7f   :  { %v1319_v15 = vpop.permute.xlu1 %1318 }
 0xc84   :  { %4545 = vmatmul.mubr.msk.f32.vlgmr.msra.gmra.mrb[8].mxu1 %vm230_vm1, %v1115_v2 }
 0xc85   :  { %4893 = vmatpush3.bf16.xpose.msk.msra.mxu1 %vm5540_vm2, %v4888_v13  ;;  %4558 = vmatprep.mubr.msk.f32.mxu1 %vm230_vm1, %v1317_v14  ;;  %v4898_v13 = vpack.c.bf16 %v4096_v12, %v4095_v11  ;;  %v4097_v14 = vld [vmem:[%s6307_s0 + $0x30] sm:$0xff]  ;;  %v4118_v11 = vld [vmem:[%s6261_s13 + $0x58] sm:$0xff] }
 0xc8c   :  { %4559 = vmatmul.mubr.msk.f32.vlgmr.msra.gmra.mrb[10].mxu1 %vm230_vm1, %v1319_v15  ;;  %v4098_v15 = vld [vmem:[%s6307_s0 + $0x38] sm:$0xff] }
 0xd57   :  { %v4546_v16 = vpop.f32.mrb[8].mxu1 }
 0xd58   :  { %v1204_v17 = vadd.f32 %v4546_v16, %v5564_v56  ;;  %v1198_v18 = vpop.f32.mrb[9].mxu1  ;;  %v4902_v16 = vpack.c.bf16 %v4098_v15, %v4097_v14  ;;  %v4120_v14 = vld [vmem:[%s6261_s13 + $0x68] sm:$0xff] }
 0xd59   :  { %v1199_v19 = vadd.f32 %v1198_v18, %v5566_v57 }
 0xd5a   :  { %v1210_v20 = vsel %vm230_vm1, %v1204_v17, -inf }
 0xd5b   :  { %1211 = vmax.xlane.f32.xlu1 %v1210_v20  ;;  %v1207_v21 = vsel %vm230_vm1, %v1199_v19, -inf }
 0xd5c   :  { %1208 = vmax.xlane.f32.xlu0 %v1207_v21 }
 0xd5f   :  { %v4560_v22 = vpop.f32.mrb[10].mxu1 }
 0xd60   :  { %v1398_v23 = vpop.f32.mrb[11].mxu1  ;;  %v1404_v25 = vadd.f32 %v4560_v22, %v5564_v56 }
 0xd61   :  { %v1399_v24 = vadd.f32 %v1398_v23, %v5566_v57 }
 0xd62   :  { %v1410_v27 = vsel %vm230_vm1, %v1404_v25, -inf }
 0xd63   :  { %v1407_v26 = vsel %vm230_vm1, %v1399_v24, -inf }
 0xd64   :  { %1408 = vmax.xlane.f32.xlu0 %v1407_v26 }
 0xd68   :  { %1411 = vmax.xlane.f32.xlu0 %v1410_v27 }
 0xde8   :  { %v1212_v28 = vpop.xlane.xlu1 %1211 }
 0xde9   :  { %v1214_v29 = vsub.f32 %v1204_v17, %v1212_v28  ;;  %v1209_v30 = vpop.xlane.xlu0 %1208 }
 0xdea   :  { %v1213_v31 = vsub.f32 %v1199_v19, %v1209_v30 }
 0xdeb   :  { %v1217_v33 = vmul.f32 1.442695, %v1214_v29 }
 0xdec   :  { %v1215_v34 = vmul.f32 1.442695, %v1213_v31 }
 0xded   :  { %5199 = vpow2.f32 %v1217_v33 }
 0xdee   :  { %5201 = vpow2.f32 %v1215_v34 }
 0xdf1   :  { %v1409_v36 = vpop.xlane.xlu0 %1408 }
 0xdf2   :  { %v1413_v37 = vsub.f32 %v1399_v24, %v1409_v36 }
 0xdf4   :  { %v1415_v38 = vmul.f32 1.442695, %v1413_v37 }
 0xdf5   :  { %v1412_v39 = vpop.xlane.xlu0 %1411 }
 0xdf6   :  { %5203 = vpow2.f32 %v1415_v38  ;;  %v1414_v40 = vsub.f32 %v1404_v25, %v1412_v39  ;;  %v4100_v25 = vld [vmem:[%s6256_s8 + $0x1] ss:$0 sm:$0xff] }
 0xdf7   :  { %v5200_v41 = vpop.eup %5199 }
 0xdf8   :  { %v5202_v42 = vpop.eup %5201  ;;  %v1417_v43 = vmul.f32 1.442695, %v1414_v40  ;;  %v1222_v44 = vsel %vm230_vm1, %v5200_v41, 0.0 }
 0xdf9   :  { %1223 = vadd.xlane.f32.xlu1 %v1222_v44  ;;  %v1219_v45 = vsel %vm230_vm1, %v5202_v42, 0.0 }
 0xdfa   :  { %5205 = vpow2.f32 %v1417_v43  ;;  %1220 = vadd.xlane.f32.xlu0 %v1219_v45  ;;  %v4108_v45 = vld [vmem:[%s6259_s11 + $0x28] sm:$0xff] }
 0xe00   :  { %v5204_v46 = vpop.eup %5203 }
 0xe01   :  { %v1419_v47 = vsel %vm230_vm1, %v5204_v46, 0.0 }
 0xe02   :  { %1420 = vadd.xlane.f32.xlu0 %v1419_v47  ;;  %v4109_v47 = vld [vmem:[%s6259_s11 + $0x30] sm:$0xff] }
 0xe04   :  { %v5206_v49 = vpop.eup %5205 }
 0xe05   :  { %v1422_v50 = vsel %vm230_vm1, %v5206_v49, 0.0 }
 0xe06   :  { %1423 = vadd.xlane.f32.xlu1 %v1422_v50 }
 0xe17   :  { %5123 = vrot.lane.b32.xlu1 %v5701_v5, %s6281_s1  ;;  %s6311_s1 = smov 112  }
 0xe18   :  { %5118 = vrot.lane.b32.xlu0 %v5701_v5, %s6308_s26 }
 0xe86   :  { %v1224_v52 = vpop.xlane.xlu1 %1223 }
 0xe87   :  { %v1221_v51 = vpop.xlane.xlu0 %1220 }
 0xe88   :  { %5207 = vrcp.f32 %v1221_v51 }
 0xe89   :  { %5209 = vrcp.f32 %v1224_v52 }
 0xe8f   :  { %v1421_v53 = vpop.xlane.xlu0 %1420 }
 0xe90   :  { %5211 = vrcp.f32 %v1421_v53 }
 0xe92   :  { %v5208_v54 = vpop.eup %5207 }
 0xe93   :  { %v1424_v55 = vpop.xlane.xlu1 %1423  ;;  %v5119_v58 = vpop.permute.xlu0 %5118  ;;  %v1227_v59 = vmul.f32 %v5208_v54, %v5202_v42 }
 0xe94   :  { %5213 = vrcp.f32 %v1424_v55  ;;  %v5121_v60 = vunpack.i.h.bf16 %v5119_v58  ;;  %v5120_v61 = vunpack.i.l.bf16 %v5119_v58  ;;  %v5210_v1 = vpop.eup %5209 }
 0xe95   :  { %4551 = vmatprep.mubr.msk.f32.mxu0 %vm230_vm1, %v1227_v59  ;;  %v1228_v6 = vmul.f32 %v5210_v1, %v5200_v41 }
 0xe96   :  { %v4884_v0 = vpack.c.bf16 %v5121_v60, %v5120_v61  ;;  %v4105_v60 = vld [vmem:[%s6257_s9 + $0x1] ss:$0 sm:$0xff] }
 0xe97   :  { %v5124_v2 = vpop.permute.xlu1 %5123 }
 0xe98   :  { %v5126_v3 = vunpack.i.h.bf16 %v5124_v2  ;;  %v5125_v4 = vunpack.i.l.bf16 %v5124_v2  ;;  %4885 = vmatprep.subr.bf16.mxu0 %v4884_v0 }
 0xe99   :  { %4887 = vmatpush3.bf16.msra.mxu0 %v4884_v0  ;;  %v4106_v0 = vld [vmem:[%s6258_s10 + $0x1] ss:$0 sm:$0xff] }
 0xe9a   :  { %v5212_v5 = vpop.eup %5211  ;;  %v4894_v7 = vpack.c.bf16 %v5126_v3, %v5125_v4 }
 0xe9b   :  { %v1427_v8 = vmul.f32 %v5212_v5, %v5204_v46 }
 0xe9c   :  { %4552 = vmatmul.mubr.msk.f32.vlgmr.msra.gmra.mrb[10].mxu0 %vm230_vm1, %v1228_v6  ;;  %4895 = vmatprep.subr.bf16.mxu0 %v4894_v7 }
 0xe9d   :  { %4897 = vmatpush3.bf16.msra.mxu0 %v4894_v7  ;;  %4565 = vmatprep.mubr.msk.f32.mxu0 %vm230_vm1, %v1427_v8  ;;  %v4115_v7 = vld [vmem:[%s6261_s13 + $0x40] sm:$0xff]  ;;  %v4116_v8 = vld [vmem:[%s6261_s13 + $0x48] sm:$0xff] }
 0xe9e   :  { %v5214_v9 = vpop.eup %5213  ;;  %4899 = vmatprep.subr.bf16.mxu0 %v4898_v13 }
 0xe9f   :  { %v1428_v10 = vmul.f32 %v5214_v9, %v5206_v49  ;;  %v4110_v49 = vld [vmem:[%s6259_s11 + $0x38] sm:$0xff]  ;;  %v4914_v9 = vpack.c.bf16 %v4116_v8, %v4115_v7  ;;  %v4133_v8 = vld [vmem:[%s6299_s2 + $0x40] sm:$0xff] }
 0xea0   :  { %v4910_v50 = vpack.c.bf16 %v4110_v49, %v4109_v47  ;;  %v1934_v7 = vld [vmem:[%s6265_s17 + $0x18] sm:$0xff] }
 0xea1   :  { %4566 = vmatmul.mubr.msk.f32.vlgmr.msra.gmra.mrb[12].mxu0 %vm230_vm1, %v1428_v10  ;;  %v4117_v10 = vld [vmem:[%s6261_s13 + $0x50] sm:$0xff] }
 0xea2   :  { %4901 = vmatpush3.bf16.msra.mxu0 %v4898_v13  ;;  %v4918_v12 = vpack.c.bf16 %v4118_v11, %v4117_v10  ;;  %v4119_v13 = vld [vmem:[%s6261_s13 + $0x60] sm:$0xff]  ;;  %v5365_v10 = vmov 0.0   ;;  %v4134_v11 = vld [vmem:[%s6299_s2 + $0x48] sm:$0xff] }
 0xea3   :  { %4903 = vmatprep.subr.bf16.mxu0 %v4902_v16  ;;  %v4922_v15 = vpack.c.bf16 %v4120_v14, %v4119_v13 }
 0xea6   :  { %4905 = vmatpush3.bf16.msra.mxu0 %v4902_v16  ;;  %v4121_v16 = vld [vmem:[%s6261_s13 + $0x70] sm:$0xff] }
 0xea7   :  { %4915 = vmatprep.subr.bf16.mxu0 %v4914_v9 }
 0xf6f   :  { %v4553_v17 = vpop.f32.mrb[10].mxu0 }
 0xf70   :  { %v1307_v18 = vpop.f32.mrb[11].mxu0 }
 0xf74   :  { %v4567_v19 = vpop.f32.mrb[12].mxu0 }
 0xf75   :  { %v1507_v20 = vpop.f32.mrb[13].mxu0 }
 0xf76   :  { %1518 = vrot.lane.b32.xlu1 %v1507_v20, %s6309_s3 }
 0xf7a   :  { %1520 = vrot.lane.b32.xlu1 %v4567_v19, %s6309_s3  ;;  %v4112_v19 = vld [vmem:[%s6260_s12 + $0x1] ss:$0 sm:$0xff] }
 0xfe8   :  { %v1519_v21 = vpop.permute.xlu1 %1518 }
 0xfe9   :  { %v1524_v22 = vsel %vm230_vm1, %v1307_v18, %v1519_v21 }
 0xfea   :  { %4576 = vmatprep.mubr.msk.f32.mxu0 %vm77_vm0, %v1524_v22 }
 0xfec   :  { %v1521_v23 = vpop.permute.xlu1 %1520 }
 0xfed   :  { %v1525_v24 = vsel %vm230_vm1, %v4553_v17, %v1521_v23  ;;  %v4122_v17 = vld [vmem:[%s6261_s13 + $0x78] sm:$0xff] }
 0xfee   :  { %4577 = vmatmul.mubr.msk.f32.vlgmr.msra.gmra.mrb[14].mxu0 %vm77_vm0, %v1525_v24  ;;  %v4926_v18 = vpack.c.bf16 %v4122_v17, %v4121_v16 }
 0xfef   :  { %4917 = vmatpush3.bf16.msra.mxu0 %v4914_v9 }
 0xff0   :  { %4919 = vmatprep.subr.bf16.mxu0 %v4918_v12 }
 0xff3   :  { %4921 = vmatpush3.bf16.msra.mxu0 %v4918_v12  ;;  %v4936_v12 = vpack.c.bf16 %v4134_v11, %v4133_v8 }
 0xff4   :  { %4923 = vmatprep.subr.bf16.mxu0 %v4922_v15 }
 0xff7   :  { %4925 = vmatpush3.bf16.msra.mxu0 %v4922_v15 }
 0xff8   :  { %4927 = vmatprep.subr.bf16.mxu0 %v4926_v18 }
 0xffb   :  { %4929 = vmatpush3.bf16.msra.mxu0 %v4926_v18 }
0x10c1   :  { %v4578_v26 = vpop.f32.mrb[14].mxu0 }
0x10c2   :  { %v1617_v27 = vadd.f32 %v4578_v26, %v4100_v25  ;;  %v1611_v28 = vpop.f32.mrb[15].mxu0 }
0x10c3   :  { %v1612_v29 = vadd.f32 %v4100_v25, %v1611_v28 }
0x10c4   :  { %v1621_v30 = vadd.f32 %v1617_v27, %v5691_v63 }
0x10c5   :  { %v1620_v31 = vadd.f32 %v1612_v29, %v5689_v62  ;;  %v4107_v62 = vld [vmem:[%s6259_s11 + $0x20] sm:$0xff] }
0x10c6   :  { %v1629_v33 = vsel %vm77_vm0, %v1621_v30, 0.0  ;;  %v4906_v46 = vpack.c.bf16 %v4108_v45, %v4107_v62 }
0x10c7   :  { %1630 = vadd.xlane.f32.xlu1 %v1629_v33  ;;  %v1626_v34 = vsel %vm77_vm0, %v1620_v31, 0.0 }
0x10c8   :  { %1627 = vadd.xlane.f32.xlu0 %v1626_v34  ;;  %4907 = vmatprep.subr.bf16.mxu1 %v4906_v46 }
0x10c9   :  { %4909 = vmatpush3.bf16.msra.mxu1 %v4906_v46 }
0x10ca   :  { %4911 = vmatprep.subr.bf16.mxu1 %v4910_v50 }
0x10cd   :  { %4913 = vmatpush3.bf16.msra.mxu1 %v4910_v50 }
0x1154   :  { %v1631_v36 = vpop.xlane.xlu1 %1630 }
0x1155   :  { %v1633_v37 = vmul.f32 0.03125, %v1631_v36  ;;  %v1628_v38 = vpop.xlane.xlu0 %1627 }
0x1156   :  { %v1632_v39 = vmul.f32 0.03125, %v1628_v38 }
0x1157   :  { %v1635_v40 = vsub.f32 %v1621_v30, %v1633_v37 }
0x1158   :  { %v1634_v41 = vsub.f32 %v1620_v31, %v1632_v39 }
0x1159   :  { %v1637_v44 = vmul.f32 %v1635_v40, %v1635_v40 }
0x115a   :  { %v1636_v42 = vmul.f32 %v1634_v41, %v1634_v41 }
0x115b   :  { %v1641_v63 = vsel %vm77_vm0, %v1637_v44, 0.0  ;;  %v4124_v44 = vld [vmem:[%s6262_s14 + $0x1] ss:$0 sm:$0xff] }
0x115c   :  { %v1638_v43 = vsel %vm77_vm0, %v1636_v42, 0.0 }
0x115d   :  { %1639 = vadd.xlane.f32.xlu0 %v1638_v43 }
0x1161   :  { %1642 = vadd.xlane.f32.xlu0 %v1641_v63 }
0x11ea   :  { %v1640_v51 = vpop.xlane.xlu0 %1639 }
0x11eb   :  { %v1644_v52 = vmul.f32 0.03125, %v1640_v51 }
0x11ed   :  { %v1646_v53 = vadd.f32 1e-12, %v1644_v52 }
0x11ee   :  { %v1643_v54 = vpop.xlane.xlu0 %1642 }
0x11ef   :  { %5215 = vrsqrt.f32 %v1646_v53  ;;  %v1645_v55 = vmul.f32 0.03125, %v1643_v54 }
0x11f1   :  { %v1647_v58 = vadd.f32 1e-12, %v1645_v55 }
0x11f3   :  { %5217 = vrsqrt.f32 %v1647_v58 }
0x11f9   :  { %v5216_v59 = vpop.eup %5215 }
0x11fa   :  { %v1650_v61 = vmul.f32 %v5216_v59, %v1634_v41 }
0x11fc   :  { %v1658_v1 = vmul.f32 %v4105_v60, %v1650_v61 }
0x11fd   :  { %v5218_v2 = vpop.eup %5217 }
0x11fe   :  { %v1651_v3 = vmul.f32 %v5218_v2, %v1635_v40  ;;  %v1666_v4 = vadd.f32 %v4106_v0, %v1658_v1  ;;  %v1931_v2 = vld [vmem:[%s6265_s17] sm:$0xff] }
0x1200   :  { %v1659_v5 = vmul.f32 %v4105_v60, %v1651_v3  ;;  %4587 = vmatprep.mubr.msk.f32.mxu1 %vm77_vm0, %v1666_v4  ;;  %v1932_v3 = vld [vmem:[%s6265_s17 + $0x8] sm:$0xff] }
0x1202   :  { %v1667_v6 = vadd.f32 %v4106_v0, %v1659_v5  ;;  %v5363_v5 = vmov 0.0|0.0  }
0x1203   :  { %4930 = vmatprep.subr.bf16.mxu1 %v5363_v5 }
0x1204   :  { %4588 = vmatmul.mubr.msk.f32.vlgmr.msra.gmra.mrb[12].mxu1 %vm77_vm0, %v1667_v6 }
0x1205   :  { %4617 = vmatprep.mubr.msk.f32.mxu1 %vm5364_vm4, %v5365_v10 }
0x12d7   :  { %v4589_v20 = vpop.f32.mrb[12].mxu1 }
0x12d8   :  { %v1759_v21 = vadd.f32 %v4589_v20, %v4112_v19  ;;  %v1753_v22 = vpop.f32.mrb[13].mxu1  ;;  %v4129_v20 = vld [vmem:[%s6263_s15 + $0x1] ss:$0 sm:$0xff] }
0x12d9   :  { %v1754_v23 = vadd.f32 %v4112_v19, %v1753_v22 }
0x12da   :  { %v1763_v24 = vmul.f32 %v1759_v21, %v1759_v21 }
0x12db   :  { %v1762_v25 = vmul.f32 %v1754_v23, %v1754_v23 }
0x12dc   :  { %v1765_v26 = vmul.f32 %v1763_v24, %v1759_v21  ;;  %v4130_v24 = vld [vmem:[%s6264_s16 + $0x1] ss:$0 sm:$0xff] }
0x12dd   :  { %v1764_v27 = vmul.f32 %v1762_v25, %v1754_v23 }
0x12de   :  { %v1767_v28 = vmul.f32 0.044715, %v1765_v26 }
0x12df   :  { %v1766_v29 = vmul.f32 0.044715, %v1764_v27 }
0x12e0   :  { %v1769_v30 = vadd.f32 %v1767_v28, %v1759_v21  ;;  %v4135_v28 = vld [vmem:[%s6299_s2 + $0x50] sm:$0xff] }
0x12e1   :  { %v1768_v31 = vadd.f32 %v1766_v29, %v1754_v23  ;;  %v4136_v29 = vld [vmem:[%s6299_s2 + $0x58] sm:$0xff] }
0x12e2   :  { %v1771_v33 = vmul.f32 0.7978846, %v1769_v30 }
0x12e3   :  { %v1770_v34 = vmul.f32 0.7978846, %v1768_v31 }
0x12e4   :  { %5219 = vtanh.f32 %v1771_v33  ;;  %v4940_v33 = vpack.c.bf16 %v4136_v29, %v4135_v28 }
0x12e5   :  { %5221 = vtanh.f32 %v1770_v34 }
0x12ee   :  { %v5220_v36 = vpop.eup %5219 }
0x12ef   :  { %v5222_v37 = vpop.eup %5221  ;;  %v1775_v38 = vadd.f32 1.0, %v5220_v36  ;;  %v4131_v36 = vld [vmem:[%s6266_s18] ss:$0 sm:$0xff] }
0x12f0   :  { %v1774_v39 = vadd.f32 1.0, %v5222_v37 }
0x12f1   :  { %v1777_v40 = vmul.f32 0.5, %v1775_v38 }
0x12f2   :  { %v1776_v41 = vmul.f32 0.5, %v1774_v39 }
0x12f3   :  { %v1779_v43 = vmul.f32 %v1777_v40, %v1759_v21  ;;  %v4138_v40 = vld [vmem:[%s6302_s6 + $0x2] ss:$0 sm:$0xff] }
0x12f4   :  { %v1778_v42 = vmul.f32 %v1776_v41, %v1754_v23 }
0x12f6   :  { %4606 = vmatprep.mubr.msk.f32.mxu0 %vm896_vm3, %v1778_v42 }
0x12f7   :  { %4607 = vmatmul.mubr.msk.f32.vlgmr.msra.gmra.mrb[16].mxu0 %vm896_vm3, %v1779_v43 }
0x13ca   :  { %v4608_v63 = vpop.f32.mrb[16].mxu0 }
0x13cb   :  { %v1875_v62 = vadd.f32 %v4608_v63, %v4124_v44  ;;  %v1869_v45 = vpop.f32.mrb[17].mxu0 }
0x13cc   :  { %v1870_v46 = vadd.f32 %v4124_v44, %v1869_v45 }
0x13cd   :  { %v1879_v47 = vadd.f32 %v1875_v62, %v1667_v6  ;;  %v1933_v6 = vld [vmem:[%s6265_s17 + $0x10] sm:$0xff] }
0x13ce   :  { %v1878_v49 = vadd.f32 %v1870_v46, %v1666_v4  ;;  %v4931_v4 = vpack.c.bf16 %v1932_v3, %v1931_v2  ;;  %v4934_v9 = vpack.c.bf16 %v1934_v7, %v1933_v6 }
0x13cf   :  { %v1887_v50 = vsel %vm77_vm0, %v1879_v47, 0.0 }
0x13d0   :  { %1888 = vadd.xlane.f32.xlu0 %v1887_v50  ;;  %v1884_v51 = vsel %vm77_vm0, %v1878_v49, 0.0  ;;  %4932 = vmatpush3.bf16.msra.mxu1 %v4931_v4 }
0x13d1   :  { %1885 = vadd.xlane.f32.xlu1 %v1884_v51  ;;  %4933 = vmatprep.subr.bf16.mxu1 %v5363_v5 }
0x13d4   :  { %4935 = vmatpush3.bf16.msra.mxu1 %v4934_v9 }
0x13d5   :  { %4937 = vmatprep.subr.bf16.mxu1 %v4936_v12 }
0x145d   :  { %v1889_v52 = vpop.xlane.xlu0 %1888 }
0x145e   :  { %v1891_v53 = vmul.f32 0.03125, %v1889_v52  ;;  %v1886_v54 = vpop.xlane.xlu1 %1885 }
0x145f   :  { %v1890_v55 = vmul.f32 0.03125, %v1886_v54 }
0x1460   :  { %v1893_v58 = vsub.f32 %v1879_v47, %v1891_v53 }
0x1461   :  { %v1892_v59 = vsub.f32 %v1878_v49, %v1890_v55 }
0x1462   :  { %v1895_v60 = vmul.f32 %v1893_v58, %v1893_v58 }
0x1463   :  { %v1894_v61 = vmul.f32 %v1892_v59, %v1892_v59 }
0x1464   :  { %v1899_v0 = vsel %vm77_vm0, %v1895_v60, 0.0 }
0x1465   :  { %1900 = vadd.xlane.f32.xlu0 %v1899_v0  ;;  %v1896_v1 = vsel %vm77_vm0, %v1894_v61, 0.0 }
0x1466   :  { %1897 = vadd.xlane.f32.xlu1 %v1896_v1 }
0x14f2   :  { %v1901_v13 = vpop.xlane.xlu0 %1900 }
0x14f3   :  { %v1903_v14 = vmul.f32 0.03125, %v1901_v13  ;;  %v1898_v15 = vpop.xlane.xlu1 %1897 }
0x14f4   :  { %v1902_v16 = vmul.f32 0.03125, %v1898_v15 }
0x14f5   :  { %v1905_v17 = vadd.f32 1e-12, %v1903_v14 }
0x14f6   :  { %v1904_v18 = vadd.f32 1e-12, %v1902_v16 }
0x14f7   :  { %5223 = vrsqrt.f32 %v1905_v17 }
0x14f8   :  { %5225 = vrsqrt.f32 %v1904_v18 }
0x1501   :  { %v5224_v19 = vpop.eup %5223 }
0x1502   :  { %v5226_v21 = vpop.eup %5225  ;;  %v1909_v22 = vmul.f32 %v5224_v19, %v1893_v58 }
0x1503   :  { %v1908_v23 = vmul.f32 %v5226_v21, %v1892_v59 }
0x1504   :  { %v1917_v25 = vmul.f32 %v4129_v20, %v1909_v22 }
0x1505   :  { %v1916_v26 = vmul.f32 %v4129_v20, %v1908_v23 }
0x1506   :  { %v1925_v27 = vadd.f32 %v4130_v24, %v1917_v25 }
0x1507   :  { %v1924_v30 = vadd.f32 %v4130_v24, %v1916_v26 }
0x1508   :  { %v1927_v31 = vrot.slane %v1925_v27, 7 }
0x150a   :  { %v1930_v34 = vsel %vm1929_vm5, %v1924_v30, %v1927_v31 }
0x150b   :  { %4618 = vmatmul.mubr.msk.f32.vlgmr.msra.gmra.mrb[14].mxu1 %vm77_vm0, %v1930_v34 }
0x150c   :  { %4939 = vmatpush3.bf16.msra.mxu1 %v4936_v12  ;;  %4628 = vmatprep.mubr.msk.f32.mxu1 %vm77_vm0, %v5518_v32 }
0x150d   :  { %4941 = vmatprep.subr.bf16.mxu1 %v4940_v33 }
0x1510   :  { %4943 = vmatpush3.bf16.msra.mxu1 %v4940_v33 }
0x1513   :  { %4629 = vmatmul.mubr.msk.f32.vlgmr.msra.gmra.mrb[16].mxu1 %vm77_vm0, %v5522_v35 }
0x15de   :  { %v2011_v37 = vpop.f32.mrb[14].mxu1 }
0x15df   :  { %v2012_v38 = vadd.f32 %v4131_v36, %v2011_v37  ;;  %v4619_v39 = vpop.f32.mrb[15].mxu1 }
0x15e1   :  { %5227 = vtanh.f32 %v2012_v38 }
0x15e6   :  { %v4630_v41 = vpop.f32.mrb[16].mxu1 }
0x15e7   :  { %v2101_v42 = vadd.f32 %v4630_v41, %v4138_v40  ;;  %v2095_v43 = vpop.f32.mrb[17].mxu1 }
0x15e8   :  { %v2096_v44 = vadd.f32 %v4138_v40, %v2095_v43 }
0x15ea   :  { %4635 = vmatprep.mubr.msk.f32.mxu0 %vm230_vm1, %v2096_v44  ;;  %v5870_v63 = vpack.i.bf16 %v2101_v42, %v2096_v44 }
0x15eb   :  { %v5872_v62 = vpop.eup %5227 }
0x15ec   :  { %5133 = vrot.lane.b32.xlu1 %v5870_v63, %s6287_s27  ;;  %5128 = vrot.lane.b32.xlu0 %v5870_v63, %s6310_s5  ;;  %3906 = vst.msk [vmem:[#allocation4] sm:$0x3] %vm3905_vm6, %v5872_v62 }
0x15f0   :  { %2302 = vrot.lane.b32.xlu1 %v2096_v44, %s6311_s1 }
0x15f4   :  { %2304 = vrot.lane.b32.xlu1 %v2101_v42, %s6311_s1 }
0x165e   :  { %v5134_v45 = vpop.permute.xlu1 %5133  ;;  %v5129_v46 = vpop.permute.xlu0 %5128 }
0x165f   :  { %v5136_v47 = vunpack.i.h.bf16 %v5134_v45  ;;  %v5135_v49 = vunpack.i.l.bf16 %v5134_v45  ;;  %v5131_v50 = vunpack.i.h.bf16 %v5129_v46  ;;  %v5130_v51 = vunpack.i.l.bf16 %v5129_v46 }
0x1661   :  { %v4954_v52 = vpack.c.bf16 %v5136_v47, %v5135_v49  ;;  %v4944_v53 = vpack.c.bf16 %v5131_v50, %v5130_v51 }
0x1662   :  { %v2303_v54 = vpop.permute.xlu1 %2302 }
0x1663   :  { %4946 = vmatprep.subr.msk.bf16.mxu0 %vm5540_vm2, %v4944_v53  ;;  %4956 = vmatprep.subr.msk.bf16.mxu1 %vm5540_vm2, %v4954_v52 }
0x1664   :  { %4649 = vmatprep.mubr.msk.f32.mxu1 %vm230_vm1, %v2303_v54  ;;  %4949 = vmatpush3.bf16.xpose.msk.msra.mxu0 %vm5540_vm2, %v4944_v53  ;;  %v4154_v53 = vld [vmem:[%s6307_s0 + $0x48] sm:$0xff] }
0x1665   :  { %4959 = vmatpush3.bf16.xpose.msk.msra.mxu1 %vm5540_vm2, %v4954_v52  ;;  %v4153_v52 = vld [vmem:[%s6307_s0 + $0x40] sm:$0xff] }
0x1666   :  { %v2305_v55 = vpop.permute.xlu1 %2304  ;;  %v4964_v54 = vpack.c.bf16 %v4154_v53, %v4153_v52  ;;  %v4175_v52 = vld [vmem:[%s6261_s13 + $0x90] sm:$0xff]  ;;  %v4176_v53 = vld [vmem:[%s6261_s13 + $0x98] sm:$0xff] }
0x166b   :  { %4636 = vmatmul.mubr.msk.f32.vlgmr.msra.gmra.mrb[18].mxu0 %vm230_vm1, %v2101_v42 }
0x166c   :  { %4650 = vmatmul.mubr.msk.f32.vlgmr.msra.gmra.mrb[18].mxu1 %vm230_vm1, %v2305_v55  ;;  %v4155_v55 = vld [vmem:[%s6307_s0 + $0x50] sm:$0xff] }
0x173e   :  { %v4637_v58 = vpop.f32.mrb[18].mxu0 }
0x173f   :  { %v2190_v59 = vadd.f32 %v4637_v58, %v5564_v56  ;;  %v4651_v60 = vpop.f32.mrb[18].mxu1  ;;  %v2184_v61 = vpop.f32.mrb[19].mxu0  ;;  %v4156_v58 = vld [vmem:[%s6307_s0 + $0x58] sm:$0xff] }
0x1740   :  { %v2185_v0 = vadd.f32 %v2184_v61, %v5566_v57  ;;  %v2384_v1 = vpop.f32.mrb[19].mxu1  ;;  %v2390_v6 = vadd.f32 %v4651_v60, %v5564_v56 }
0x1741   :  { %v2196_v2 = vsel %vm230_vm1, %v2190_v59, -inf  ;;  %v2385_v3 = vadd.f32 %v2384_v1, %v5566_v57 }
0x1742   :  { %2197 = vmax.xlane.f32.xlu1 %v2196_v2  ;;  %v2193_v4 = vsel %vm230_vm1, %v2185_v0, -inf  ;;  %v2396_v8 = vsel %vm230_vm1, %v2390_v6, -inf }
0x1743   :  { %2194 = vmax.xlane.f32.xlu0 %v2193_v4  ;;  %v2393_v7 = vsel %vm230_vm1, %v2385_v3, -inf }
0x1747   :  { %2394 = vmax.xlane.f32.xlu0 %v2393_v7  ;;  %v4158_v7 = vld [vmem:[%s6256_s8 + $0x2] ss:$0 sm:$0xff] }
0x174b   :  { %2397 = vmax.xlane.f32.xlu0 %v2396_v8 }
0x17cf   :  { %v2198_v9 = vpop.xlane.xlu1 %2197 }
0x17d0   :  { %v2200_v11 = vsub.f32 %v2190_v59, %v2198_v9  ;;  %v2195_v12 = vpop.xlane.xlu0 %2194  ;;  %v4968_v59 = vpack.c.bf16 %v4156_v58, %v4155_v55  ;;  %v4177_v55 = vld [vmem:[%s6261_s13 + $0xa0] sm:$0xff]  ;;  %v4178_v58 = vld [vmem:[%s6261_s13 + $0xa8] sm:$0xff] }
0x17d1   :  { %v2199_v13 = vsub.f32 %v2185_v0, %v2195_v12 }
0x17d2   :  { %v2203_v14 = vmul.f32 1.442695, %v2200_v11 }
0x17d3   :  { %v2201_v15 = vmul.f32 1.442695, %v2199_v13 }
0x17d4   :  { %5229 = vpow2.f32 %v2203_v14  ;;  %v2395_v16 = vpop.xlane.xlu0 %2394 }
0x17d5   :  { %5231 = vpow2.f32 %v2201_v15  ;;  %v2399_v17 = vsub.f32 %v2385_v3, %v2395_v16 }
0x17d7   :  { %v2401_v18 = vmul.f32 1.442695, %v2399_v17 }
0x17d8   :  { %v2398_v19 = vpop.xlane.xlu0 %2397 }
0x17d9   :  { %5233 = vpow2.f32 %v2401_v18  ;;  %v2400_v20 = vsub.f32 %v2390_v6, %v2398_v19 }
0x17db   :  { %v2403_v21 = vmul.f32 1.442695, %v2400_v20 }
0x17dd   :  { %5235 = vpow2.f32 %v2403_v21 }
0x17de   :  { %v5230_v22 = vpop.eup %5229 }
0x17df   :  { %v5232_v23 = vpop.eup %5231  ;;  %v2208_v24 = vsel %vm230_vm1, %v5230_v22, 0.0 }
0x17e0   :  { %2209 = vadd.xlane.f32.xlu1 %v2208_v24  ;;  %v2205_v25 = vsel %vm230_vm1, %v5232_v23, 0.0 }
0x17e1   :  { %2206 = vadd.xlane.f32.xlu0 %v2205_v25 }
0x17e3   :  { %v5234_v26 = vpop.eup %5233 }
0x17e4   :  { %v2405_v27 = vsel %vm230_vm1, %v5234_v26, 0.0 }
0x17e5   :  { %2406 = vadd.xlane.f32.xlu0 %v2405_v27 }
0x17e7   :  { %v5236_v28 = vpop.eup %5235 }
0x17e8   :  { %v2408_v29 = vsel %vm230_vm1, %v5236_v28, 0.0 }
0x17e9   :  { %2409 = vadd.xlane.f32.xlu1 %v2408_v29  ;;  %v4168_v29 = vld [vmem:[%s6259_s11 + $0x58] sm:$0xff] }
0x17fa   :  { %5143 = vrot.lane.b32.xlu1 %v5870_v63, %s6312_s4 }
0x17fb   :  { %5138 = vrot.lane.b32.xlu0 %v5870_v63, %s6308_s26 }
0x186d   :  { %v2210_v30 = vpop.xlane.xlu1 %2209 }
0x186e   :  { %v2207_v31 = vpop.xlane.xlu0 %2206 }
0x186f   :  { %5237 = vrcp.f32 %v2207_v31 }
0x1870   :  { %5239 = vrcp.f32 %v2210_v30 }
0x1872   :  { %v2407_v33 = vpop.xlane.xlu0 %2406 }
0x1873   :  { %5241 = vrcp.f32 %v2407_v33 }
0x1876   :  { %v2410_v34 = vpop.xlane.xlu1 %2409  ;;  %v5139_v36 = vpop.permute.xlu0 %5138 }
0x1877   :  { %5243 = vrcp.f32 %v2410_v34  ;;  %v5141_v37 = vunpack.i.h.bf16 %v5139_v36  ;;  %v5140_v38 = vunpack.i.l.bf16 %v5139_v36 }
0x1879   :  { %v5238_v39 = vpop.eup %5237  ;;  %v4950_v40 = vpack.c.bf16 %v5141_v37, %v5140_v38 }
0x187a   :  { %v5240_v41 = vpop.eup %5239  ;;  %v5144_v42 = vpop.permute.xlu1 %5143  ;;  %v2213_v43 = vmul.f32 %v5238_v39, %v5232_v23 }
0x187b   :  { %v5146_v44 = vunpack.i.h.bf16 %v5144_v42  ;;  %v5145_v45 = vunpack.i.l.bf16 %v5144_v42  ;;  %4951 = vmatprep.subr.bf16.mxu0 %v4950_v40  ;;  %v2214_v46 = vmul.f32 %v5240_v41, %v5230_v22  ;;  %v4164_v42 = vld [vmem:[%s6258_s10 + $0x2] ss:$0 sm:$0xff] }
0x187c   :  { %4953 = vmatpush3.bf16.msra.mxu0 %v4950_v40  ;;  %4642 = vmatprep.mubr.msk.f32.mxu0 %vm230_vm1, %v2213_v43  ;;  %v4163_v40 = vld [vmem:[%s6257_s9 + $0x2] ss:$0 sm:$0xff] }
0x187d   :  { %v5242_v63 = vpop.eup %5241  ;;  %v4960_v47 = vpack.c.bf16 %v5146_v44, %v5145_v45 }
0x187e   :  { %v2413_v49 = vmul.f32 %v5242_v63, %v5234_v26  ;;  %v4166_v26 = vld [vmem:[%s6259_s11 + $0x48] sm:$0xff] }
0x187f   :  { %4643 = vmatmul.mubr.msk.f32.vlgmr.msra.gmra.mrb[20].mxu0 %vm230_vm1, %v2214_v46  ;;  %4961 = vmatprep.subr.bf16.mxu0 %v4960_v47 }
0x1880   :  { %4963 = vmatpush3.bf16.msra.mxu0 %v4960_v47  ;;  %4656 = vmatprep.mubr.msk.f32.mxu0 %vm230_vm1, %v2413_v49  ;;  %v4173_v49 = vld [vmem:[%s6261_s13 + $0x80] sm:$0xff] }
0x1881   :  { %v5244_v50 = vpop.eup %5243  ;;  %4965 = vmatprep.subr.bf16.mxu0 %v4964_v54 }
0x1882   :  { %v2414_v51 = vmul.f32 %v5244_v50, %v5236_v28  ;;  %v4167_v28 = vld [vmem:[%s6259_s11 + $0x50] sm:$0xff]  ;;  %v4174_v50 = vld [vmem:[%s6261_s13 + $0x88] sm:$0xff] }
0x1883   :  { %v4976_v30 = vpack.c.bf16 %v4168_v29, %v4167_v28 }
0x1884   :  { %4657 = vmatmul.mubr.msk.f32.vlgmr.msra.gmra.mrb[22].mxu0 %vm230_vm1, %v2414_v51  ;;  %v4980_v51 = vpack.c.bf16 %v4174_v50, %v4173_v49  ;;  %v4192_v49 = vld [vmem:[%s6299_s2 + $0x78] sm:$0xff] }
0x1885   :  { %4967 = vmatpush3.bf16.msra.mxu0 %v4964_v54  ;;  %v4984_v54 = vpack.c.bf16 %v4176_v53, %v4175_v52 }
0x1886   :  { %4969 = vmatprep.subr.bf16.mxu0 %v4968_v59 }
0x1889   :  { %4971 = vmatpush3.bf16.msra.mxu0 %v4968_v59  ;;  %v4988_v59 = vpack.c.bf16 %v4178_v58, %v4177_v55 }
0x188a   :  { %4981 = vmatprep.subr.bf16.mxu0 %v4980_v51 }
0x1952   :  { %v4644_v60 = vpop.f32.mrb[20].mxu0 }
0x1953   :  { %v2293_v61 = vpop.f32.mrb[21].mxu0 }
0x1957   :  { %v4658_v0 = vpop.f32.mrb[22].mxu0 }
0x1958   :  { %v2493_v1 = vpop.f32.mrb[23].mxu0 }
0x1959   :  { %2504 = vrot.lane.b32.xlu1 %v2493_v1, %s6309_s3  ;;  %v4170_v1 = vld [vmem:[%s6260_s12 + $0x2] ss:$0 sm:$0xff] }
0x195d   :  { %2506 = vrot.lane.b32.xlu1 %v4658_v0, %s6309_s3 }
0x19cb   :  { %v2505_v2 = vpop.permute.xlu1 %2504 }
0x19cc   :  { %v2510_v3 = vsel %vm230_vm1, %v2293_v61, %v2505_v2  ;;  %v4180_v61 = vld [vmem:[%s6261_s13 + $0xb8] sm:$0xff] }
0x19cd   :  { %4667 = vmatprep.mubr.msk.f32.mxu0 %vm77_vm0, %v2510_v3 }
0x19cf   :  { %v2507_v4 = vpop.permute.xlu1 %2506 }
0x19d0   :  { %v2511_v6 = vsel %vm230_vm1, %v4644_v60, %v2507_v4  ;;  %v4179_v60 = vld [vmem:[%s6261_s13 + $0xb0] sm:$0xff] }
0x19d1   :  { %4668 = vmatmul.mubr.msk.f32.vlgmr.msra.gmra.mrb[24].mxu0 %vm77_vm0, %v2511_v6  ;;  %v4992_v0 = vpack.c.bf16 %v4180_v61, %v4179_v60  ;;  %v4187_v60 = vld [vmem:[%s6263_s15 + $0x2] ss:$0 sm:$0xff] }
0x19d2   :  { %4983 = vmatpush3.bf16.msra.mxu0 %v4980_v51 }
0x19d3   :  { %4985 = vmatprep.subr.bf16.mxu0 %v4984_v54 }
0x19d6   :  { %4987 = vmatpush3.bf16.msra.mxu0 %v4984_v54 }
0x19d7   :  { %4989 = vmatprep.subr.bf16.mxu0 %v4988_v59 }
0x19da   :  { %4991 = vmatpush3.bf16.msra.mxu0 %v4988_v59 }
0x19db   :  { %4993 = vmatprep.subr.bf16.mxu0 %v4992_v0 }
0x19de   :  { %4995 = vmatpush3.bf16.msra.mxu0 %v4992_v0 }
0x1aa4   :  { %v4669_v8 = vpop.f32.mrb[24].mxu0 }
0x1aa5   :  { %v2603_v9 = vadd.f32 %v4669_v8, %v4158_v7  ;;  %v2597_v11 = vpop.f32.mrb[25].mxu0 }
0x1aa6   :  { %v2598_v12 = vadd.f32 %v4158_v7, %v2597_v11 }
0x1aa7   :  { %v2607_v13 = vadd.f32 %v2603_v9, %v5522_v35 }
0x1aa8   :  { %v2606_v14 = vadd.f32 %v2598_v12, %v5518_v32  ;;  %v4165_v32 = vld [vmem:[%s6259_s11 + $0x40] sm:$0xff] }
0x1aa9   :  { %v2615_v15 = vsel %vm77_vm0, %v2607_v13, 0.0  ;;  %v4972_v27 = vpack.c.bf16 %v4166_v26, %v4165_v32 }
0x1aaa   :  { %2616 = vadd.xlane.f32.xlu1 %v2615_v15  ;;  %v2612_v16 = vsel %vm77_vm0, %v2606_v14, 0.0 }
0x1aab   :  { %2613 = vadd.xlane.f32.xlu0 %v2612_v16  ;;  %4973 = vmatprep.subr.bf16.mxu1 %v4972_v27 }
0x1aac   :  { %4975 = vmatpush3.bf16.msra.mxu1 %v4972_v27 }
0x1aad   :  { %4977 = vmatprep.subr.bf16.mxu1 %v4976_v30 }
0x1ab0   :  { %4979 = vmatpush3.bf16.msra.mxu1 %v4976_v30 }
0x1b37   :  { %v2617_v17 = vpop.xlane.xlu1 %2616 }
0x1b38   :  { %v2619_v18 = vmul.f32 0.03125, %v2617_v17  ;;  %v2614_v19 = vpop.xlane.xlu0 %2613 }
0x1b39   :  { %v2618_v20 = vmul.f32 0.03125, %v2614_v19 }
0x1b3a   :  { %v2621_v21 = vsub.f32 %v2607_v13, %v2619_v18 }
0x1b3b   :  { %v2620_v22 = vsub.f32 %v2606_v14, %v2618_v20 }
0x1b3c   :  { %v2623_v25 = vmul.f32 %v2621_v21, %v2621_v21 }
0x1b3d   :  { %v2622_v23 = vmul.f32 %v2620_v22, %v2620_v22 }
0x1b3e   :  { %v2627_v35 = vsel %vm77_vm0, %v2623_v25, 0.0 }
0x1b3f   :  { %v2624_v24 = vsel %vm77_vm0, %v2622_v23, 0.0 }
0x1b40   :  { %2625 = vadd.xlane.f32.xlu0 %v2624_v24 }
0x1b44   :  { %2628 = vadd.xlane.f32.xlu0 %v2627_v35  ;;  %v4182_v35 = vld [vmem:[%s6262_s14 + $0x2] ss:$0 sm:$0xff] }
0x1bcd   :  { %v2626_v31 = vpop.xlane.xlu0 %2625 }
0x1bce   :  { %v2630_v33 = vmul.f32 0.03125, %v2626_v31 }
0x1bd0   :  { %v2632_v34 = vadd.f32 1e-12, %v2630_v33 }
0x1bd1   :  { %v2629_v36 = vpop.xlane.xlu0 %2628 }
0x1bd2   :  { %5245 = vrsqrt.f32 %v2632_v34  ;;  %v2631_v37 = vmul.f32 0.03125, %v2629_v36 }
0x1bd4   :  { %v2633_v38 = vadd.f32 1e-12, %v2631_v37 }
0x1bd6   :  { %5247 = vrsqrt.f32 %v2633_v38 }
0x1bdc   :  { %v5246_v39 = vpop.eup %5245 }
0x1bdd   :  { %v2636_v41 = vmul.f32 %v5246_v39, %v2620_v22 }
0x1bdf   :  { %v2644_v43 = vmul.f32 %v4163_v40, %v2636_v41 }
0x1be0   :  { %v5248_v44 = vpop.eup %5247 }
0x1be1   :  { %v2637_v45 = vmul.f32 %v5248_v44, %v2621_v21  ;;  %v2652_v63 = vadd.f32 %v4164_v42, %v2644_v43 }
0x1be3   :  { %v2645_v46 = vmul.f32 %v4163_v40, %v2637_v45  ;;  %4678 = vmatprep.mubr.msk.f32.mxu1 %vm77_vm0, %v2652_v63  ;;  %v4189_v45 = vld [vmem:[%s6299_s2 + $0x60] sm:$0xff] }
0x1be5   :  { %v2653_v47 = vadd.f32 %v4164_v42, %v2645_v46 }
0x1be7   :  { %4679 = vmatmul.mubr.msk.f32.vlgmr.msra.gmra.mrb[20].mxu1 %vm77_vm0, %v2653_v47 }
0x1cba   :  { %v4680_v2 = vpop.f32.mrb[20].mxu1 }
0x1cbb   :  { %v2745_v3 = vadd.f32 %v4680_v2, %v4170_v1  ;;  %v2739_v4 = vpop.f32.mrb[21].mxu1  ;;  %v4188_v2 = vld [vmem:[%s6264_s16 + $0x2] ss:$0 sm:$0xff] }
0x1cbc   :  { %v2740_v6 = vadd.f32 %v4170_v1, %v2739_v4 }
0x1cbd   :  { %v2749_v7 = vmul.f32 %v2745_v3, %v2745_v3 }
0x1cbe   :  { %v2748_v8 = vmul.f32 %v2740_v6, %v2740_v6 }
0x1cbf   :  { %v2751_v9 = vmul.f32 %v2749_v7, %v2745_v3 }
0x1cc0   :  { %v2750_v11 = vmul.f32 %v2748_v8, %v2740_v6  ;;  %v4194_v8 = vld [vmem:[%s6302_s6 + $0x3] ss:$0 sm:$0xff] }
0x1cc1   :  { %v2753_v12 = vmul.f32 0.044715, %v2751_v9 }
0x1cc2   :  { %v2752_v13 = vmul.f32 0.044715, %v2750_v11 }
0x1cc3   :  { %v2755_v14 = vadd.f32 %v2753_v12, %v2745_v3 }
0x1cc4   :  { %v2754_v15 = vadd.f32 %v2752_v13, %v2740_v6 }
0x1cc5   :  { %v2757_v16 = vmul.f32 0.7978846, %v2755_v14 }
0x1cc6   :  { %v2756_v17 = vmul.f32 0.7978846, %v2754_v15 }
0x1cc7   :  { %5249 = vtanh.f32 %v2757_v16 }
0x1cc8   :  { %5251 = vtanh.f32 %v2756_v17 }
0x1cd1   :  { %v5250_v18 = vpop.eup %5249 }
0x1cd2   :  { %v5252_v19 = vpop.eup %5251  ;;  %v2761_v20 = vadd.f32 1.0, %v5250_v18 }
0x1cd3   :  { %v2760_v21 = vadd.f32 1.0, %v5252_v19 }
0x1cd4   :  { %v2763_v22 = vmul.f32 0.5, %v2761_v20 }
0x1cd5   :  { %v2762_v23 = vmul.f32 0.5, %v2760_v21 }
0x1cd6   :  { %v2765_v25 = vmul.f32 %v2763_v22, %v2745_v3 }
0x1cd7   :  { %v2764_v24 = vmul.f32 %v2762_v23, %v2740_v6 }
0x1cd9   :  { %4697 = vmatprep.mubr.msk.f32.mxu0 %vm896_vm3, %v2764_v24 }
0x1cda   :  { %4698 = vmatmul.mubr.msk.f32.vlgmr.msra.gmra.mrb[26].mxu0 %vm896_vm3, %v2765_v25 }
0x1dad   :  { %v4699_v32 = vpop.f32.mrb[26].mxu0 }
0x1dae   :  { %v2861_v26 = vadd.f32 %v4699_v32, %v4182_v35  ;;  %v2855_v27 = vpop.f32.mrb[27].mxu0 }
0x1daf   :  { %v2856_v28 = vadd.f32 %v4182_v35, %v2855_v27 }
0x1db0   :  { %v2865_v29 = vadd.f32 %v2861_v26, %v2653_v47  ;;  %v4191_v47 = vld [vmem:[%s6299_s2 + $0x70] sm:$0xff] }
0x1db1   :  { %v2864_v30 = vadd.f32 %v2856_v28, %v2652_v63  ;;  %v4190_v63 = vld [vmem:[%s6299_s2 + $0x68] sm:$0xff]  ;;  %v5000_v50 = vpack.c.bf16 %v4192_v49, %v4191_v47 }
0x1db2   :  { %v2873_v31 = vsel %vm77_vm0, %v2865_v29, 0.0  ;;  %v4996_v46 = vpack.c.bf16 %v4190_v63, %v4189_v45 }
0x1db3   :  { %2874 = vadd.xlane.f32.xlu1 %v2873_v31  ;;  %v2870_v33 = vsel %vm77_vm0, %v2864_v30, 0.0 }
0x1db4   :  { %2871 = vadd.xlane.f32.xlu0 %v2870_v33  ;;  %4997 = vmatprep.subr.bf16.mxu1 %v4996_v46 }
0x1db5   :  { %4999 = vmatpush3.bf16.msra.mxu1 %v4996_v46 }
0x1db6   :  { %5001 = vmatprep.subr.bf16.mxu1 %v5000_v50 }
0x1db9   :  { %5003 = vmatpush3.bf16.msra.mxu1 %v5000_v50 }
0x1e40   :  { %v2875_v34 = vpop.xlane.xlu1 %2874 }
0x1e41   :  { %v2877_v36 = vmul.f32 0.03125, %v2875_v34  ;;  %v2872_v37 = vpop.xlane.xlu0 %2871 }
0x1e42   :  { %v2876_v38 = vmul.f32 0.03125, %v2872_v37 }
0x1e43   :  { %v2879_v39 = vsub.f32 %v2865_v29, %v2877_v36 }
0x1e44   :  { %v2878_v40 = vsub.f32 %v2864_v30, %v2876_v38 }
0x1e45   :  { %v2881_v41 = vmul.f32 %v2879_v39, %v2879_v39 }
0x1e46   :  { %v2880_v42 = vmul.f32 %v2878_v40, %v2878_v40 }
0x1e47   :  { %v2885_v43 = vsel %vm77_vm0, %v2881_v41, 0.0 }
0x1e48   :  { %2886 = vadd.xlane.f32.xlu1 %v2885_v43  ;;  %v2882_v44 = vsel %vm77_vm0, %v2880_v42, 0.0 }
0x1e49   :  { %2883 = vadd.xlane.f32.xlu0 %v2882_v44 }
0x1ed5   :  { %v2887_v51 = vpop.xlane.xlu1 %2886 }
0x1ed6   :  { %v2889_v52 = vmul.f32 0.03125, %v2887_v51  ;;  %v2884_v53 = vpop.xlane.xlu0 %2883 }
0x1ed7   :  { %v2888_v54 = vmul.f32 0.03125, %v2884_v53 }
0x1ed8   :  { %v2891_v55 = vadd.f32 1e-12, %v2889_v52 }
0x1ed9   :  { %v2890_v58 = vadd.f32 1e-12, %v2888_v54 }
0x1eda   :  { %5253 = vrsqrt.f32 %v2891_v55 }
0x1edb   :  { %5255 = vrsqrt.f32 %v2890_v58 }
0x1ee4   :  { %v5254_v59 = vpop.eup %5253 }
0x1ee5   :  { %v5256_v61 = vpop.eup %5255  ;;  %v2895_v0 = vmul.f32 %v5254_v59, %v2879_v39 }
0x1ee6   :  { %v2894_v1 = vmul.f32 %v5256_v61, %v2878_v40 }
0x1ee7   :  { %v2903_v3 = vmul.f32 %v4187_v60, %v2895_v0 }
0x1ee8   :  { %v2902_v4 = vmul.f32 %v4187_v60, %v2894_v1 }
0x1ee9   :  { %v6016_v7 = vadd.f32 %v4188_v2, %v2903_v3 }
0x1eea   :  { %v6014_v6 = vadd.f32 %v4188_v2, %v2902_v4 }
0x1eec   :  { %4708 = vmatprep.mubr.msk.f32.mxu1 %vm77_vm0, %v6014_v6 }
0x1eed   :  { %4709 = vmatmul.mubr.msk.f32.vlgmr.msra.gmra.mrb[22].mxu1 %vm77_vm0, %v6016_v7 }
0x1fc0   :  { %v4710_v9 = vpop.f32.mrb[22].mxu1 }
0x1fc1   :  { %v3003_v11 = vadd.f32 %v4710_v9, %v4194_v8  ;;  %v2997_v12 = vpop.f32.mrb[23].mxu1 }
0x1fc2   :  { %v2998_v13 = vadd.f32 %v4194_v8, %v2997_v12 }
0x1fc4   :  { %4715 = vmatprep.mubr.msk.f32.mxu1 %vm230_vm1, %v2998_v13  ;;  %v6026_v14 = vpack.i.bf16 %v3003_v11, %v2998_v13 }
0x1fc6   :  { %5153 = vrot.lane.b32.xlu1 %v6026_v14, %s6313_s25  ;;  %5148 = vrot.lane.b32.xlu0 %v6026_v14, %s6310_s5 }
0x1fca   :  { %3204 = vrot.lane.b32.xlu1 %v2998_v13, %s6311_s1 }
0x1fce   :  { %3206 = vrot.lane.b32.xlu1 %v3003_v11, %s6311_s1 }
0x2038   :  { %v5154_v15 = vpop.permute.xlu1 %5153  ;;  %v5149_v16 = vpop.permute.xlu0 %5148 }
0x2039   :  { %v5156_v17 = vunpack.i.h.bf16 %v5154_v15  ;;  %v5155_v18 = vunpack.i.l.bf16 %v5154_v15  ;;  %v5151_v19 = vunpack.i.h.bf16 %v5149_v16  ;;  %v5150_v20 = vunpack.i.l.bf16 %v5149_v16 }
0x203b   :  { %v5004_v21 = vpack.c.bf16 %v5151_v19, %v5150_v20  ;;  %v5014_v22 = vpack.c.bf16 %v5156_v17, %v5155_v18  ;;  %v4209_v18 = vld [vmem:[%s6307_s0 + $0x60] sm:$0xff]  ;;  %v4210_v19 = vld [vmem:[%s6307_s0 + $0x68] sm:$0xff] }
0x203c   :  { %v3205_v23 = vpop.permute.xlu1 %3204  ;;  %v5024_v20 = vpack.c.bf16 %v4210_v19, %v4209_v18  ;;  %v4233_v18 = vld [vmem:[%s6261_s13 + $0xe0] sm:$0xff]  ;;  %v4234_v19 = vld [vmem:[%s6261_s13 + $0xe8] sm:$0xff] }
0x203d   :  { %5006 = vmatprep.subr.msk.bf16.mxu1 %vm5540_vm2, %v5004_v21 }
0x203e   :  { %5009 = vmatpush3.bf16.xpose.msk.msra.mxu1 %vm5540_vm2, %v5004_v21  ;;  %v4211_v21 = vld [vmem:[%s6307_s0 + $0x70] sm:$0xff] }
0x203f   :  { %5016 = vmatprep.subr.msk.bf16.mxu1 %vm5540_vm2, %v5014_v22 }
0x2040   :  { %v3207_v24 = vpop.permute.xlu1 %3206 }
0x2045   :  { %4716 = vmatmul.mubr.msk.f32.vlgmr.msra.gmra.mrb[24].mxu1 %vm230_vm1, %v3003_v11 }
0x2046   :  { %5019 = vmatpush3.bf16.xpose.msk.msra.mxu1 %vm5540_vm2, %v5014_v22  ;;  %4729 = vmatprep.mubr.msk.f32.mxu1 %vm230_vm1, %v3205_v23  ;;  %v4212_v22 = vld [vmem:[%s6307_s0 + $0x78] sm:$0xff] }
0x2047   :  { %v5028_v23 = vpack.c.bf16 %v4212_v22, %v4211_v21  ;;  %v4235_v21 = vld [vmem:[%s6261_s13 + $0xf0] sm:$0xff]  ;;  %v4236_v22 = vld [vmem:[%s6261_s13 + $0xf8] sm:$0xff] }
0x204d   :  { %4730 = vmatmul.mubr.msk.f32.vlgmr.msra.gmra.mrb[26].mxu1 %vm230_vm1, %v3207_v24 }
0x2118   :  { %v4717_v25 = vpop.f32.mrb[24].mxu1 }
0x2119   :  { %v3092_v35 = vadd.f32 %v4717_v25, %v5564_v56  ;;  %v3086_v32 = vpop.f32.mrb[25].mxu1 }
0x211a   :  { %v3087_v26 = vadd.f32 %v3086_v32, %v5566_v57 }
0x211b   :  { %v3098_v27 = vsel %vm230_vm1, %v3092_v35, -inf }
0x211c   :  { %3099 = vmax.xlane.f32.xlu1 %v3098_v27  ;;  %v3095_v28 = vsel %vm230_vm1, %v3087_v26, -inf }
0x211d   :  { %3096 = vmax.xlane.f32.xlu0 %v3095_v28 }
0x2120   :  { %v4731_v29 = vpop.f32.mrb[26].mxu1 }
0x2121   :  { %v3286_v48 = vpop.f32.mrb[27].mxu1  ;;  %v3292_v31 = vadd.f32 %v4731_v29, %v5564_v56 }
0x2122   :  { %v3287_v30 = vadd.f32 %v3286_v48, %v5566_v57  ;;  %v4214_v48 = vld [vmem:[%s6256_s8 + $0x3] ss:$0 sm:$0xff] }
0x2123   :  { %v3298_v34 = vsel %vm230_vm1, %v3292_v31, -inf }
0x2124   :  { %v3295_v33 = vsel %vm230_vm1, %v3287_v30, -inf }
0x2125   :  { %3296 = vmax.xlane.f32.xlu0 %v3295_v33 }
0x2129   :  { %3299 = vmax.xlane.f32.xlu0 %v3298_v34 }
0x21a9   :  { %v3100_v36 = vpop.xlane.xlu1 %3099 }
0x21aa   :  { %v3102_v37 = vsub.f32 %v3092_v35, %v3100_v36  ;;  %v3097_v38 = vpop.xlane.xlu0 %3096 }
0x21ab   :  { %v3101_v39 = vsub.f32 %v3087_v26, %v3097_v38 }
0x21ac   :  { %v3105_v40 = vmul.f32 1.442695, %v3102_v37 }
0x21ad   :  { %v3103_v41 = vmul.f32 1.442695, %v3101_v39 }
0x21ae   :  { %5257 = vpow2.f32 %v3105_v40 }
0x21af   :  { %5259 = vpow2.f32 %v3103_v41 }
0x21b2   :  { %v3297_v42 = vpop.xlane.xlu0 %3296 }
0x21b3   :  { %v3301_v43 = vsub.f32 %v3287_v30, %v3297_v42 }
0x21b5   :  { %v3303_v44 = vmul.f32 1.442695, %v3301_v43 }
0x21b6   :  { %v3300_v57 = vpop.xlane.xlu0 %3299 }
0x21b7   :  { %5261 = vpow2.f32 %v3303_v44  ;;  %v3302_v56 = vsub.f32 %v3292_v31, %v3300_v57 }
0x21b8   :  { %v5258_v45 = vpop.eup %5257 }
0x21b9   :  { %v5260_v63 = vpop.eup %5259  ;;  %v3305_v46 = vmul.f32 1.442695, %v3302_v56  ;;  %v3110_v47 = vsel %vm230_vm1, %v5258_v45, 0.0 }
0x21ba   :  { %3111 = vadd.xlane.f32.xlu1 %v3110_v47  ;;  %v3107_v49 = vsel %vm230_vm1, %v5260_v63, 0.0 }
0x21bb   :  { %5263 = vpow2.f32 %v3305_v46  ;;  %3108 = vadd.xlane.f32.xlu0 %v3107_v49  ;;  %v4222_v46 = vld [vmem:[%s6259_s11 + $0x68] sm:$0xff]  ;;  %v4223_v49 = vld [vmem:[%s6259_s11 + $0x70] sm:$0xff] }
0x21c1   :  { %v5262_v50 = vpop.eup %5261 }
0x21c2   :  { %v3307_v51 = vsel %vm230_vm1, %v5262_v50, 0.0 }
0x21c3   :  { %3308 = vadd.xlane.f32.xlu0 %v3307_v51 }
0x21c5   :  { %v5264_v52 = vpop.eup %5263 }
0x21c6   :  { %v3310_v53 = vsel %vm230_vm1, %v5264_v52, 0.0 }
0x21c7   :  { %3311 = vadd.xlane.f32.xlu1 %v3310_v53 }
0x21d8   :  { %5163 = vrot.lane.b32.xlu1 %v6026_v14, %s6312_s4 }
0x21d9   :  { %5158 = vrot.lane.b32.xlu0 %v6026_v14, %s6308_s26 }
0x2247   :  { %v3112_v55 = vpop.xlane.xlu1 %3111 }
0x2248   :  { %v3109_v54 = vpop.xlane.xlu0 %3108 }
0x2249   :  { %5265 = vrcp.f32 %v3109_v54 }
0x224a   :  { %5267 = vrcp.f32 %v3112_v55 }
0x2250   :  { %v3309_v58 = vpop.xlane.xlu0 %3308 }
0x2251   :  { %5269 = vrcp.f32 %v3309_v58 }
0x2253   :  { %v5266_v59 = vpop.eup %5265 }
0x2254   :  { %v3312_v60 = vpop.xlane.xlu1 %3311  ;;  %v5159_v61 = vpop.permute.xlu0 %5158  ;;  %v3115_v0 = vmul.f32 %v5266_v59, %v5260_v63 }
0x2255   :  { %5271 = vrcp.f32 %v3312_v60  ;;  %v5161_v1 = vunpack.i.h.bf16 %v5159_v61  ;;  %v5160_v2 = vunpack.i.l.bf16 %v5159_v61  ;;  %v5268_v4 = vpop.eup %5267  ;;  %v4219_v61 = vld [vmem:[%s6257_s9 + $0x3] ss:$0 sm:$0xff] }
0x2256   :  { %4722 = vmatprep.mubr.msk.f32.mxu0 %vm230_vm1, %v3115_v0  ;;  %v3116_v13 = vmul.f32 %v5268_v4, %v5258_v45 }
0x2257   :  { %v5010_v3 = vpack.c.bf16 %v5161_v1, %v5160_v2  ;;  %v4220_v1 = vld [vmem:[%s6258_s10 + $0x3] ss:$0 sm:$0xff] }
0x2258   :  { %v5164_v8 = vpop.permute.xlu1 %5163 }
0x2259   :  { %v5166_v9 = vunpack.i.h.bf16 %v5164_v8  ;;  %v5165_v11 = vunpack.i.l.bf16 %v5164_v8  ;;  %5011 = vmatprep.subr.bf16.mxu0 %v5010_v3 }
0x225a   :  { %5013 = vmatpush3.bf16.msra.mxu0 %v5010_v3 }
0x225b   :  { %v5270_v12 = vpop.eup %5269  ;;  %v5020_v14 = vpack.c.bf16 %v5166_v9, %v5165_v11 }
0x225c   :  { %v3315_v15 = vmul.f32 %v5270_v12, %v5262_v50  ;;  %v4224_v50 = vld [vmem:[%s6259_s11 + $0x78] sm:$0xff]  ;;  %v4229_v12 = vld [vmem:[%s6261_s13 + $0xc0] sm:$0xff] }
0x225d   :  { %4723 = vmatmul.mubr.msk.f32.vlgmr.msra.gmra.mrb[28].mxu0 %vm230_vm1, %v3116_v13  ;;  %5021 = vmatprep.subr.bf16.mxu0 %v5020_v14  ;;  %v5036_v51 = vpack.c.bf16 %v4224_v50, %v4223_v49  ;;  %v4230_v13 = vld [vmem:[%s6261_s13 + $0xc8] sm:$0xff] }
0x225e   :  { %5023 = vmatpush3.bf16.msra.mxu0 %v5020_v14  ;;  %4736 = vmatprep.mubr.msk.f32.mxu0 %vm230_vm1, %v3315_v15  ;;  %v5040_v14 = vpack.c.bf16 %v4230_v13, %v4229_v12  ;;  %v4231_v15 = vld [vmem:[%s6261_s13 + $0xd0] sm:$0xff] }
0x225f   :  { %v5272_v16 = vpop.eup %5271  ;;  %5025 = vmatprep.subr.bf16.mxu0 %v5024_v20 }
0x2260   :  { %v3316_v17 = vmul.f32 %v5272_v16, %v5264_v52  ;;  %v4232_v16 = vld [vmem:[%s6261_s13 + $0xd8] sm:$0xff] }
0x2262   :  { %4737 = vmatmul.mubr.msk.f32.vlgmr.msra.gmra.mrb[30].mxu0 %vm230_vm1, %v3316_v17  ;;  %v5044_v17 = vpack.c.bf16 %v4232_v16, %v4231_v15 }
0x2263   :  { %5027 = vmatpush3.bf16.msra.mxu0 %v5024_v20  ;;  %v5048_v20 = vpack.c.bf16 %v4234_v19, %v4233_v18 }
0x2264   :  { %5029 = vmatprep.subr.bf16.mxu0 %v5028_v23 }
0x2267   :  { %5031 = vmatpush3.bf16.msra.mxu0 %v5028_v23  ;;  %v5052_v23 = vpack.c.bf16 %v4236_v22, %v4235_v21  ;;  %v4244_v21 = vld [vmem:[%s6264_s16 + $0x3] ss:$0 sm:$0xff] }
0x2268   :  { %5041 = vmatprep.subr.bf16.mxu0 %v5040_v14 }
0x2330   :  { %v4724_v24 = vpop.f32.mrb[28].mxu0 }
0x2331   :  { %v3195_v25 = vpop.f32.mrb[29].mxu0 }
0x2335   :  { %v4738_v35 = vpop.f32.mrb[30].mxu0 }
0x2336   :  { %v3395_v32 = vpop.f32.mrb[31].mxu0 }
0x2337   :  { %3406 = vrot.lane.b32.xlu1 %v3395_v32, %s6309_s3 }
0x233b   :  { %3408 = vrot.lane.b32.xlu1 %v4738_v35, %s6309_s3 }
0x23a9   :  { %v3407_v26 = vpop.permute.xlu1 %3406 }
0x23aa   :  { %v3412_v27 = vsel %vm230_vm1, %v3195_v25, %v3407_v26 }
0x23ab   :  { %4747 = vmatprep.mubr.msk.f32.mxu0 %vm77_vm0, %v3412_v27 }
0x23ad   :  { %v3409_v28 = vpop.permute.xlu1 %3408 }
0x23ae   :  { %v3413_v29 = vsel %vm230_vm1, %v4724_v24, %v3409_v28  ;;  %v4226_v24 = vld [vmem:[%s6260_s12 + $0x3] ss:$0 sm:$0xff] }
0x23af   :  { %4748 = vmatmul.mubr.msk.f32.vlgmr.msra.gmra.mrb[32].mxu0 %vm77_vm0, %v3413_v29 }
0x23b0   :  { %5043 = vmatpush3.bf16.msra.mxu0 %v5040_v14 }
0x23b1   :  { %5045 = vmatprep.subr.bf16.mxu0 %v5044_v17 }
0x23b4   :  { %5047 = vmatpush3.bf16.msra.mxu0 %v5044_v17  ;;  %v4243_v17 = vld [vmem:[%s6263_s15 + $0x3] ss:$0 sm:$0xff] }
0x23b5   :  { %5049 = vmatprep.subr.bf16.mxu0 %v5048_v20 }
0x23b8   :  { %5051 = vmatpush3.bf16.msra.mxu0 %v5048_v20 }
0x23b9   :  { %5053 = vmatprep.subr.bf16.mxu0 %v5052_v23 }
0x23bc   :  { %5055 = vmatpush3.bf16.msra.mxu0 %v5052_v23 }
0x2482   :  { %v4749_v30 = vpop.f32.mrb[32].mxu0 }
0x2483   :  { %v3505_v31 = vadd.f32 %v4749_v30, %v4214_v48  ;;  %v3499_v33 = vpop.f32.mrb[33].mxu0 }
0x2484   :  { %v3500_v34 = vadd.f32 %v4214_v48, %v3499_v33 }
0x2485   :  { %v3509_v36 = vadd.f32 %v3505_v31, %v6016_v7 }
0x2486   :  { %v3508_v37 = vadd.f32 %v3500_v34, %v6014_v6  ;;  %v4221_v6 = vld [vmem:[%s6259_s11 + $0x60] sm:$0xff] }
0x2487   :  { %v3517_v38 = vsel %vm77_vm0, %v3509_v36, 0.0  ;;  %v5032_v47 = vpack.c.bf16 %v4222_v46, %v4221_v6 }
0x2488   :  { %3518 = vadd.xlane.f32.xlu1 %v3517_v38  ;;  %v3514_v39 = vsel %vm77_vm0, %v3508_v37, 0.0 }
0x2489   :  { %3515 = vadd.xlane.f32.xlu0 %v3514_v39  ;;  %5033 = vmatprep.subr.bf16.mxu1 %v5032_v47 }
0x248a   :  { %5035 = vmatpush3.bf16.msra.mxu1 %v5032_v47 }
0x248b   :  { %5037 = vmatprep.subr.bf16.mxu1 %v5036_v51 }
0x248e   :  { %5039 = vmatpush3.bf16.msra.mxu1 %v5036_v51 }
0x248f   :  { %5056 = vmatprep.subr.bf16.mxu1 %v5363_v5 }
0x2515   :  { %v3519_v40 = vpop.xlane.xlu1 %3518 }
0x2516   :  { %v3521_v41 = vmul.f32 0.03125, %v3519_v40  ;;  %v3516_v42 = vpop.xlane.xlu0 %3515 }
0x2517   :  { %v3520_v43 = vmul.f32 0.03125, %v3516_v42 }
0x2518   :  { %v3523_v44 = vsub.f32 %v3509_v36, %v3521_v41 }
0x2519   :  { %v3522_v57 = vsub.f32 %v3508_v37, %v3520_v43 }
0x251a   :  { %v3525_v63 = vmul.f32 %v3523_v44, %v3523_v44 }
0x251b   :  { %v3524_v56 = vmul.f32 %v3522_v57, %v3522_v57 }
0x251c   :  { %v3529_v7 = vsel %vm77_vm0, %v3525_v63, 0.0 }
0x251d   :  { %v3526_v45 = vsel %vm77_vm0, %v3524_v56, 0.0  ;;  %v4238_v56 = vld [vmem:[%s6262_s14 + $0x3] ss:$0 sm:$0xff]  ;;  %s5366_s14 = smov 32  }
0x251e   :  { %3527 = vadd.xlane.f32.xlu0 %v3526_v45 }
0x2522   :  { %3530 = vadd.xlane.f32.xlu0 %v3529_v7 }
0x25ab   :  { %v3528_v52 = vpop.xlane.xlu0 %3527 }
0x25ac   :  { %v3532_v53 = vmul.f32 0.03125, %v3528_v52 }
0x25ae   :  { %v3534_v54 = vadd.f32 1e-12, %v3532_v53 }
0x25af   :  { %v3531_v55 = vpop.xlane.xlu0 %3530 }
0x25b0   :  { %5273 = vrsqrt.f32 %v3534_v54  ;;  %v3533_v58 = vmul.f32 0.03125, %v3531_v55 }
0x25b2   :  { %v3535_v59 = vadd.f32 1e-12, %v3533_v58 }
0x25b4   :  { %5275 = vrsqrt.f32 %v3535_v59 }
0x25ba   :  { %v5274_v60 = vpop.eup %5273 }
0x25bb   :  { %v3538_v0 = vmul.f32 %v5274_v60, %v3522_v57 }
0x25bd   :  { %v3546_v2 = vmul.f32 %v4219_v61, %v3538_v0 }
0x25be   :  { %v5276_v3 = vpop.eup %5275 }
0x25bf   :  { %v3539_v4 = vmul.f32 %v5276_v3, %v3523_v44  ;;  %v3554_v8 = vadd.f32 %v4220_v1, %v3546_v2  ;;  %v4246_v2 = vld [vmem:[%s6265_s17 + $0x28] sm:$0xff] }
0x25c1   :  { %v3547_v9 = vmul.f32 %v4219_v61, %v3539_v4  ;;  %4758 = vmatprep.mubr.msk.f32.mxu1 %vm77_vm0, %v3554_v8  ;;  %v4247_v4 = vld [vmem:[%s6265_s17 + $0x30] sm:$0xff] }
0x25c3   :  { %v3555_v11 = vadd.f32 %v4220_v1, %v3547_v9  ;;  %v4245_v1 = vld [vmem:[%s6265_s17 + $0x20] sm:$0xff] }
0x25c4   :  { %v5057_v3 = vpack.c.bf16 %v4246_v2, %v4245_v1 }
0x25c5   :  { %4759 = vmatmul.mubr.msk.f32.vlgmr.msra.gmra.mrb[28].mxu1 %vm77_vm0, %v3555_v11 }
0x25c6   :  { %4788 = vmatprep.mubr.msk.f32.mxu1 %vm5364_vm4, %v5365_v10  ;;  %5058 = vmatpush3.bf16.msra.mxu1 %v5057_v3 }
0x25c7   :  { %5059 = vmatprep.subr.bf16.mxu1 %v5363_v5 }
0x2698   :  { %v4760_v25 = vpop.f32.mrb[28].mxu1 }
0x2699   :  { %v3647_v35 = vadd.f32 %v4760_v25, %v4226_v24  ;;  %v3641_v32 = vpop.f32.mrb[29].mxu1 }
0x269a   :  { %v3642_v26 = vadd.f32 %v4226_v24, %v3641_v32 }
0x269b   :  { %v3651_v27 = vmul.f32 %v3647_v35, %v3647_v35 }
0x269c   :  { %v3650_v28 = vmul.f32 %v3642_v26, %v3642_v26 }
0x269d   :  { %v3653_v29 = vmul.f32 %v3651_v27, %v3647_v35  ;;  %v3914_v27 = vld [vmem:[%s6267_s19 + $0x8] sm:$0xff] }
0x269e   :  { %v3652_v48 = vmul.f32 %v3650_v28, %v3642_v26 }
0x269f   :  { %v3655_v30 = vmul.f32 0.044715, %v3653_v29  ;;  %v3915_v29 = vld [vmem:[%s6267_s19 + $0x10] sm:$0xff] }
0x26a0   :  { %v3654_v31 = vmul.f32 0.044715, %v3652_v48 }
0x26a1   :  { %v3657_v33 = vadd.f32 %v3655_v30, %v3647_v35  ;;  %v3917_v30 = vld [vmem:[%s6267_s19 + $0x20] sm:$0xff] }
0x26a2   :  { %v3656_v34 = vadd.f32 %v3654_v31, %v3642_v26  ;;  %v3918_v31 = vld [vmem:[%s6267_s19 + $0x28] sm:$0xff] }
0x26a3   :  { %v3659_v36 = vmul.f32 0.7978846, %v3657_v33  ;;  %v5069_v33 = vpack.c.bf16 %v3918_v31, %v3917_v30 }
0x26a4   :  { %v3658_v37 = vmul.f32 0.7978846, %v3656_v34  ;;  %v3919_v34 = vld [vmem:[%s6267_s19 + $0x30] sm:$0xff] }
0x26a5   :  { %5277 = vtanh.f32 %v3659_v36  ;;  %v3920_v36 = vld [vmem:[%s6267_s19 + $0x38] sm:$0xff] }
0x26a6   :  { %5279 = vtanh.f32 %v3658_v37  ;;  %v5072_v37 = vpack.c.bf16 %v3920_v36, %v3919_v34 }
0x26af   :  { %v5278_v38 = vpop.eup %5277 }
0x26b0   :  { %v5280_v39 = vpop.eup %5279  ;;  %v3663_v40 = vadd.f32 1.0, %v5278_v38  ;;  %v4250_v38 = vld [vmem:[%s6266_s18 + $0x1] ss:$0 sm:$0xff] }
0x26b1   :  { %v3662_v41 = vadd.f32 1.0, %v5280_v39 }
0x26b2   :  { %v3665_v42 = vmul.f32 0.5, %v3663_v40 }
0x26b3   :  { %v3664_v43 = vmul.f32 0.5, %v3662_v41 }
0x26b4   :  { %v3667_v57 = vmul.f32 %v3665_v42, %v3647_v35 }
0x26b5   :  { %v3666_v44 = vmul.f32 %v3664_v43, %v3642_v26  ;;  %v3913_v26 = vld [vmem:[%s6267_s19] sm:$0xff] }
0x26b6   :  { %v5063_v28 = vpack.c.bf16 %v3914_v27, %v3913_v26 }
0x26b7   :  { %4777 = vmatprep.mubr.msk.f32.mxu0 %vm896_vm3, %v3666_v44 }
0x26b8   :  { %4778 = vmatmul.mubr.msk.f32.vlgmr.msra.gmra.mrb[34].mxu0 %vm896_vm3, %v3667_v57 }
0x278b   :  { %v4779_v45 = vpop.f32.mrb[34].mxu0 }
0x278c   :  { %v3763_v63 = vadd.f32 %v4779_v45, %v4238_v56  ;;  %v3757_v7 = vpop.f32.mrb[35].mxu0 }
0x278d   :  { %v3758_v6 = vadd.f32 %v4238_v56, %v3757_v7 }
0x278e   :  { %v3767_v46 = vadd.f32 %v3763_v63, %v3555_v11 }
0x278f   :  { %v3766_v47 = vadd.f32 %v3758_v6, %v3554_v8  ;;  %v4248_v8 = vld [vmem:[%s6265_s17 + $0x38] sm:$0xff] }
0x2790   :  { %v3775_v49 = vsel %vm77_vm0, %v3767_v46, 0.0  ;;  %v5060_v9 = vpack.c.bf16 %v4248_v8, %v4247_v4 }
0x2791   :  { %3776 = vadd.xlane.f32.xlu0 %v3775_v49  ;;  %v3772_v50 = vsel %vm77_vm0, %v3766_v47, 0.0 }
0x2792   :  { %3773 = vadd.xlane.f32.xlu1 %v3772_v50  ;;  %5061 = vmatpush3.bf16.msra.mxu1 %v5060_v9 }
0x2793   :  { %5062 = vmatprep.subr.bf16.mxu1 %v5363_v5 }
0x281e   :  { %v3777_v51 = vpop.xlane.xlu0 %3776 }
0x281f   :  { %v3779_v52 = vmul.f32 0.03125, %v3777_v51  ;;  %v3774_v53 = vpop.xlane.xlu1 %3773 }
0x2820   :  { %v3778_v54 = vmul.f32 0.03125, %v3774_v53 }
0x2821   :  { %v3781_v55 = vsub.f32 %v3767_v46, %v3779_v52 }
0x2822   :  { %v3780_v58 = vsub.f32 %v3766_v47, %v3778_v54 }
0x2823   :  { %v3783_v59 = vmul.f32 %v3781_v55, %v3781_v55 }
0x2824   :  { %v3782_v60 = vmul.f32 %v3780_v58, %v3780_v58 }
0x2825   :  { %v3787_v61 = vsel %vm77_vm0, %v3783_v59, 0.0 }
0x2826   :  { %3788 = vadd.xlane.f32.xlu0 %v3787_v61  ;;  %v3784_v0 = vsel %vm77_vm0, %v3782_v60, 0.0 }
0x2827   :  { %3785 = vadd.xlane.f32.xlu1 %v3784_v0 }
0x283c   :  { %3909 = vrot.lane.b32.xlu0 %v5872_v62, %s5366_s14 }
0x28b3   :  { %v3789_v62 = vpop.xlane.xlu0 %3788 }
0x28b4   :  { %v3791_v11 = vmul.f32 0.03125, %v3789_v62  ;;  %v3786_v12 = vpop.xlane.xlu1 %3785 }
0x28b5   :  { %v3790_v13 = vmul.f32 0.03125, %v3786_v12 }
0x28b6   :  { %v3793_v14 = vadd.f32 1e-12, %v3791_v11 }
0x28b7   :  { %v3792_v15 = vadd.f32 1e-12, %v3790_v13  ;;  %v3910_v43 = vpop.permute.xlu0 %3909 }
0x28b8   :  { %5281 = vrsqrt.f32 %v3793_v14 }
0x28b9   :  { %5283 = vrsqrt.f32 %v3792_v15 }
0x28c2   :  { %v5282_v16 = vpop.eup %5281 }
0x28c3   :  { %v5284_v18 = vpop.eup %5283  ;;  %v3797_v19 = vmul.f32 %v5282_v16, %v3781_v55 }
0x28c4   :  { %v3796_v20 = vmul.f32 %v5284_v18, %v3780_v58 }
0x28c5   :  { %v3805_v22 = vmul.f32 %v4243_v17, %v3797_v19 }
0x28c6   :  { %v3804_v23 = vmul.f32 %v4243_v17, %v3796_v20 }
0x28c7   :  { %v3813_v24 = vadd.f32 %v4244_v21, %v3805_v22 }
0x28c8   :  { %v3812_v25 = vadd.f32 %v4244_v21, %v3804_v23 }
0x28c9   :  { %v3815_v35 = vrot.slane %v3813_v24, 7 }
0x28cb   :  { %v3817_v32 = vsel %vm1929_vm5, %v3812_v25, %v3815_v35 }
0x28cc   :  { %4789 = vmatmul.mubr.msk.f32.vlgmr.msra.gmra.mrb[30].mxu1 %vm77_vm0, %v3817_v32 }
0x28cd   :  { %4807 = vmatprep.mubr.msk.f32.mxu1 %vm5364_vm4, %v5365_v10  ;;  %5064 = vmatpush3.bf16.msra.mxu1 %v5063_v28  ;;  %v3916_v10 = vld [vmem:[%s6267_s19 + $0x18] sm:$0xff]  ;;  %s5367_s19 = smov [#allocation4]  }
0x28ce   :  { %5065 = vmatprep.subr.bf16.mxu1 %v5363_v5  ;;  %v5066_v48 = vpack.c.bf16 %v3916_v10, %v3915_v29  ;;  %s4019_s21 = sshll.u32 %s5367_s19, 4  ;;  %s4020_s21 = int_to_ptr.vmem [resolvable:$true] %s4019_s21 }
0x28cf   :  { %s5287_s27 = scalar_lea.vmem %s4020_s21, 32  ;;  %p5292_p1 = scmp.lt.s32.totalorder %s4020_s21, %s4020_s21 }
0x28d0   :  { %p5288_p0 = scmp.ne.s32.totalorder %s4020_s21, %s5287_s27  ;;  %p5293_p2 = scmp.lt.s32.totalorder %s5287_s27, %s5287_s27 }
0x28d1   :  { %5067 = vmatpush3.bf16.msra.mxu1 %v5066_v48 }
0x28d2   :  { %5068 = vmatprep.subr.bf16.mxu1 %v5363_v5  ;;  %p5294_p3 = por %p5293_p2, %p5292_p1 }
0x28d4   :  { %p5295_p4 = pnand %p5294_p3, %p5288_p0 }
0x28d5   :  { %5070 = vmatpush3.bf16.msra.mxu1 %v5069_v33 }
0x28d6   :  { %5071 = vmatprep.subr.bf16.mxu1 %v5363_v5 }
0x28d9   :  { %5073 = vmatpush3.bf16.msra.mxu1 %v5072_v37 }
0x299f   :  { %v3900_v39 = vpop.f32.mrb[30].mxu1 }
0x29a0   :  { %v3901_v40 = vadd.f32 %v4250_v38, %v3900_v39  ;;  %v4790_v41 = vpop.f32.mrb[31].mxu1 }
0x29a2   :  { %5285 = vtanh.f32 %v3901_v40 }
0x29ac   :  { %v5286_v42 = vpop.eup %5285 }
0x29ad   :  { %v3912_v44 = vsel %vm77_vm0, %v5286_v42, %v3910_v43  ;;  %3907 = vst.msk [vmem:[#allocation6] sm:$0x3] %vm3905_vm6, %v5286_v42 }
0x29ae   :  { %4808 = vmatmul.mubr.msk.f32.vlgmr.msra.gmra.mrb[32].mxu1 %vm896_vm3, %v3912_v44 }
0x29af   :  { %5298 = shalt.err (!%p5295_p4)
}
0x29b0   :  { %s5299_s30 = scalar_lea.hbm %s6270_s22, 32 }
0x29b1   :  { %p5300_p5 = scmp.ne.s32.totalorder %s6270_s22, %s5299_s30  ;;  %p5303_p6 = scmp.lt.u32.totalorder %s5299_s30, %s6270_s22 }
0x29b3   :  { %p5305_p7 = pnand %p5303_p6, %p5300_p5 }
0x29b5   :  { %5308 = shalt.err (!%p5305_p7)
}
0x29b6   :  { %4022 = dma.vmem_to_hbm [thread:$0]  %s4020_s21, 32, %s6270_s22, [#allocation5]  }
0x29b7   :  { %s5368_s2 = smov [#allocation6]  }
0x29b8   :  { %s4029_s29 = sshll.u32 %s5368_s2, 4  ;;  %s4030_s29 = int_to_ptr.vmem [resolvable:$true] %s4029_s29 }
0x29b9   :  { %s5309_s16 = scalar_lea.vmem %s4030_s29, 32  ;;  %p5314_p9 = scmp.lt.s32.totalorder %s4030_s29, %s4030_s29 }
0x29ba   :  { %p5310_p8 = scmp.ne.s32.totalorder %s4030_s29, %s5309_s16  ;;  %p5315_p10 = scmp.lt.s32.totalorder %s5309_s16, %s5309_s16 }
0x29bc   :  { %p5316_p11 = por %p5315_p10, %p5314_p9 }
0x29be   :  { %p5317_p12 = pnand %p5316_p11, %p5310_p8 }
0x29c0   :  { %5320 = shalt.err (!%p5317_p12)
}
0x29c1   :  { %s5321_s25 = scalar_lea.hbm %s6271_s23, 32 }
0x29c2   :  { %p5322_p13 = scmp.ne.s32.totalorder %s6271_s23, %s5321_s25  ;;  %p5325_p0 = scmp.lt.u32.totalorder %s5321_s25, %s6271_s23 }
0x29c4   :  { %p5327_p1 = pnand %p5325_p0, %p5322_p13 }
0x29c6   :  { %5330 = shalt.err (!%p5327_p1)
}
0x29c7   :  { %4032 = dma.vmem_to_hbm [thread:$0]  %s4030_s29, 32, %s6271_s23, [#allocation5]   ;;  %v4252_v5 = vld [vmem:[%s6268_s20] ss:$0 sm:$0xff]  ;;  %vm4001_vm7 = vcmask 17408  }
0x29c8   :  { %s5369_s1 = smov [#allocation2]  }
0x29c9   :  { %s4009_s4 = sshll.u32 %s5369_s1, 4  ;;  %s4010_s4 = int_to_ptr.vmem [resolvable:$true] %s4009_s4 }
0x29ca   :  { %s5331_s9 = scalar_lea.vmem %s4010_s4, 32  ;;  %p5336_p3 = scmp.lt.s32.totalorder %s4010_s4, %s4010_s4 }
0x29cb   :  { %p5332_p2 = scmp.ne.s32.totalorder %s4010_s4, %s5331_s9  ;;  %p5337_p4 = scmp.lt.s32.totalorder %s5331_s9, %s5331_s9 }
0x29cd   :  { %p5338_p5 = por %p5337_p4, %p5336_p3 }
0x29cf   :  { %p5339_p6 = pnand %p5338_p5, %p5332_p2 }
0x2a81   :  { %v3997_v57 = vpop.f32.mrb[32].mxu1 }
0x2a82   :  { %v3998_v56 = vadd.f32 %v4252_v5, %v3997_v57  ;;  %v4809_v45 = vpop.f32.mrb[33].mxu1 }
0x2a84   :  { %4002 = vst.msk [vmem:[#allocation2] sm:$0x3] %vm4001_vm7, %v3998_v56 }
0x2a85   :  { %5342 = shalt.err (!%p5339_p6)
}
0x2a86   :  { %s6314_s21 = sld [smem:[#allocation17_spill]] }
0x2a8c   :  { %s5343_s27 = scalar_lea.hbm %s6314_s21, 32 }
0x2a8d   :  { %p5344_p7 = scmp.ne.s32.totalorder %s6314_s21, %s5343_s27  ;;  %p5347_p8 = scmp.lt.u32.totalorder %s5343_s27, %s6314_s21 }
0x2a8f   :  { %p5349_p9 = pnand %p5347_p8, %p5344_p7 }
0x2a91   :  { %5352 = shalt.err (!%p5349_p9)
}
0x2a92   :  { %4012 = dma.vmem_to_hbm [thread:$0]  %s4010_s4, 32, %s6314_s21, [#allocation3]  }
0x2a93   :  { %5353 = dma.done.wait [#allocation3], 32  }
0x2a94   :  { %5354 = vsyncadd [#allocation3], 4294967264 }
0x2a95   :  { %5355 = dma.done.wait [#allocation5], 64  }
0x2a96   :  { %5356 = vsyncadd [#allocation5], 4294967232 }
0x2a97   :  { %4042 = vsyncpa [#allocation3], 1 }
0x2a98   :  { %4043 = vsyncpa [#allocation5], 1 }

</bundles_post_ra>
